<compile_context>
chip_gen: v7x
topology: tpu7x:2x2x1
jax: 0.10.0
libtpu: 0.0.40
codegen_flags: <defaults>
</compile_context>

<pallas_src>
import functools

import jax
import jax.numpy as jnp
from jax.experimental import pallas as pl
from jax.experimental.pallas import tpu as pltpu


# bf16 MXU operands (f32 accumulation / f32 state & elementwise math).
MXU_DTYPE = jnp.bfloat16

_VMEM_LIMIT = 48 * 1024 * 1024  # safe on v5e/v6e (128 MiB) and v7x (64 MiB)


def _sigmoid(x):
    # tanh form keeps the whole nonlinearity on the EUP (no VALU divide).
    return 0.5 * jnp.tanh(0.5 * x) + 0.5


def _round_up(x, m):
    return ((x + m - 1) // m) * m


def _pick_b_tile(batch):
    """Pad batch to a sublane multiple and pick the largest MXU-friendly tile."""
    bp = _round_up(batch, 8)
    if bp <= 128:
        return bp, bp                  # single batch tile, full MXU rows if >=128
    bp = _round_up(batch, 128)
    return bp, 128


def _pick_t_chunk(seq_len, max_chunk=32):
    """Largest chunk size (multiple of 8, <= max_chunk) with minimal T padding."""
    best_tc, best_tp = 8, _round_up(seq_len, 8)
    for tc in (16, 24, 32):
        if tc > max_chunk:
            break
        tp = _round_up(seq_len, tc)
        if tp <= best_tp:
            best_tc, best_tp = tc, tp
    return best_tc


# ---------------------------------------------------------------------------
# Encoder LSTM: fused input-gate matmul + recurrence + mu/logvar heads +
# reparameterization.  grid = (batch_tiles, time_chunks); h/c in VMEM scratch.
# Gate order matches PyTorch nn.LSTM: [i, f, g, o].
# ---------------------------------------------------------------------------
def _encoder_lstm_kernel(emb_ref, wih_ref, whh_ref, b_ref, wmu_ref, bmu_ref,
                         wlv_ref, blv_ref, eps_ref, mu_ref, lv_ref, z_ref,
                         h_scr, c_scr, *, seq_len, t_chunk):
    t = pl.program_id(1)
    nt = pl.num_programs(1)
    H = h_scr.shape[-1]
    Tc, Bt, E = emb_ref.shape

    @pl.when(t == 0)
    def _():
        h_scr[...] = jnp.zeros_like(h_scr)
        c_scr[...] = jnp.zeros_like(c_scr)

    whh = whh_ref[...]          # hoisted: loaded once per chunk
    bias = b_ref[...]

    # Fused input-to-hidden matmul for the whole chunk (one MXU pass; the
    # (T,B,4H) gate tensor never touches HBM).
    x = emb_ref[...].reshape(Tc * Bt, E)
    xg = (jnp.dot(x, wih_ref[...], preferred_element_type=jnp.float32)
          + bias).reshape(Tc, Bt, 4 * H)

    # Only the last chunk can contain padded timesteps (T padded up to Tp).
    rem = seq_len % t_chunk
    keep = (t < nt - 1).astype(jnp.float32) if rem != 0 else None

    h = h_scr[...]
    c = c_scr[...]
    for k in range(Tc):                       # static, fully unrolled
        g = xg[k] + jnp.dot(h.astype(whh.dtype), whh,
                            preferred_element_type=jnp.float32)
        i_g = _sigmoid(g[:, 0 * H:1 * H])
        f_g = _sigmoid(g[:, 1 * H:2 * H])
        g_g = jnp.tanh(g[:, 2 * H:3 * H])
        o_g = _sigmoid(g[:, 3 * H:4 * H])
        c_new = f_g * c + i_g * g_g
        h_new = o_g * jnp.tanh(c_new)
        if rem != 0 and k >= rem:
            # Padded timestep whenever this is the last chunk: freeze state.
            c = keep * c_new + (1.0 - keep) * c
            h = keep * h_new + (1.0 - keep) * h
        else:
            c, h = c_new, h_new
    h_scr[...] = h
    c_scr[...] = c

    @pl.when(t == nt - 1)
    def _():
        hh = h.astype(wmu_ref.dtype)
        mu = jnp.dot(hh, wmu_ref[...], preferred_element_type=jnp.float32) + bmu_ref[...]
        lv = jnp.dot(hh, wlv_ref[...], preferred_element_type=jnp.float32) + blv_ref[...]
        mu_ref[...] = mu
        lv_ref[...] = lv
        z_ref[...] = mu + eps_ref[...] * jnp.exp(0.5 * lv)


def encoder_lstm(emb_tm, wih, whh, b, w_mu, b_mu, w_lv, b_lv, eps,
                 *, b_tile, t_chunk, seq_len):
    Tp, Bp, E = emb_tm.shape
    H = whh.shape[0]
    G = 4 * H
    Lp = w_mu.shape[1]
    grid = (Bp // b_tile, Tp // t_chunk)
    out_sds = jax.ShapeDtypeStruct((Bp, Lp), jnp.float32)
    out_spec = pl.BlockSpec((b_tile, Lp), lambda bi, ti: (bi, 0))
    kernel = functools.partial(_encoder_lstm_kernel, seq_len=seq_len,
                               t_chunk=t_chunk)
    return pl.pallas_call(
        kernel,
        out_shape=(out_sds, out_sds, out_sds),
        grid_spec=pltpu.PrefetchScalarGridSpec(
            num_scalar_prefetch=0,
            grid=grid,
            in_specs=[
                pl.BlockSpec((t_chunk, b_tile, E), lambda bi, ti: (ti, bi, 0)),
                pl.BlockSpec((E, G), lambda bi, ti: (0, 0)),
                pl.BlockSpec((H, G), lambda bi, ti: (0, 0)),
                pl.BlockSpec((1, G), lambda bi, ti: (0, 0)),
                pl.BlockSpec((H, Lp), lambda bi, ti: (0, 0)),
                pl.BlockSpec((1, Lp), lambda bi, ti: (0, 0)),
                pl.BlockSpec((H, Lp), lambda bi, ti: (0, 0)),
                pl.BlockSpec((1, Lp), lambda bi, ti: (0, 0)),
                pl.BlockSpec((b_tile, Lp), lambda bi, ti: (bi, 0)),
            ],
            out_specs=[out_spec, out_spec, out_spec],
            scratch_shapes=[pltpu.VMEM((b_tile, H), jnp.float32),
                            pltpu.VMEM((b_tile, H), jnp.float32)],
        ),
        compiler_params=pltpu.CompilerParams(
            dimension_semantics=("parallel", "arbitrary"),
            vmem_limit_bytes=_VMEM_LIMIT),
    )(emb_tm, wih, whh, b, w_mu, b_mu, w_lv, b_lv, eps)


# ---------------------------------------------------------------------------
# Decoder LSTM: fused input-gate matmul (z contribution cached once per batch
# tile), recurrence, and chunk-batched fc_out writing logits directly in
# (B, T, V) layout with a dense lane-aligned store.
# ---------------------------------------------------------------------------
def _decoder_lstm_kernel(emb_ref, z_ref, wx_ref, wz_ref, whh_ref, b_ref,
                         wout_ref, bout_ref, logits_ref,
                         h_scr, c_scr, zg_scr, hbuf):
    t = pl.program_id(1)
    H = h_scr.shape[-1]
    Tc, Bt, E = emb_ref.shape
    Vp = wout_ref.shape[1]

    @pl.when(t == 0)
    def _():
        h_scr[...] = jnp.zeros_like(h_scr)
        c_scr[...] = jnp.zeros_like(c_scr)
        # z @ Wih_z is time-invariant: one matmul per batch tile, cached.
        zg_scr[...] = jnp.dot(z_ref[...].astype(wz_ref.dtype), wz_ref[...],
                              preferred_element_type=jnp.float32)

    whh = whh_ref[...]                       # hoisted: loaded once per chunk
    gate_const = zg_scr[...] + b_ref[...]    # (Bt, 4H): z contribution + bias

    # Chunk-batched input-to-hidden matmul (one MXU pass, no HBM xg tensor).
    x = emb_ref[...].reshape(Tc * Bt, E)
    xg = jnp.dot(x, wx_ref[...],
                 preferred_element_type=jnp.float32).reshape(Tc, Bt, 4 * H)

    h = h_scr[...]
    c = c_scr[...]
    for k in range(Tc):                      # static, fully unrolled
        g = xg[k] + gate_const + jnp.dot(h.astype(whh.dtype), whh,
                                         preferred_element_type=jnp.float32)
        i_g = _sigmoid(g[:, 0 * H:1 * H])
        f_g = _sigmoid(g[:, 1 * H:2 * H])
        g_g = jnp.tanh(g[:, 2 * H:3 * H])
        o_g = _sigmoid(g[:, 3 * H:4 * H])
        c = f_g * c + i_g * g_g
        h = o_g * jnp.tanh(c)
        # Buffer h already in (batch, time) order so fc_out needs no transpose.
        hbuf[:, k:k + 1, :] = h[:, None, :]
    h_scr[...] = h
    c_scr[...] = c

    # Chunk-batched fc_out: (Bt*Tc, H) @ (H, Vp); result is already in
    # (B, T, V) order -> dense, lane-aligned store of the whole block.
    h_all = hbuf[...].reshape(Bt * Tc, H).astype(wout_ref.dtype)
    logits = (jnp.dot(h_all, wout_ref[...], preferred_element_type=jnp.float32)
              + bout_ref[...])
    logits_ref[...] = logits.reshape(Bt, Tc, Vp)


def decoder_lstm(emb_tm, z, wih_x, wih_z, whh, b, w_out, b_out,
                 *, b_tile, t_chunk):
    Tp, Bp, E = emb_tm.shape
    H = whh.shape[0]
    G = 4 * H
    Lp = wih_z.shape[0]
    Vp = w_out.shape[1]
    grid = (Bp // b_tile, Tp // t_chunk)
    return pl.pallas_call(
        _decoder_lstm_kernel,
        out_shape=jax.ShapeDtypeStruct((Bp, Tp, Vp), jnp.float32),
        grid_spec=pltpu.PrefetchScalarGridSpec(
            num_scalar_prefetch=0,
            grid=grid,
            in_specs=[
                pl.BlockSpec((t_chunk, b_tile, E), lambda bi, ti: (ti, bi, 0)),
                pl.BlockSpec((b_tile, Lp), lambda bi, ti: (bi, 0)),
                pl.BlockSpec((E, G), lambda bi, ti: (0, 0)),
                pl.BlockSpec((Lp, G), lambda bi, ti: (0, 0)),
                pl.BlockSpec((H, G), lambda bi, ti: (0, 0)),
                pl.BlockSpec((1, G), lambda bi, ti: (0, 0)),
                pl.BlockSpec((H, Vp), lambda bi, ti: (0, 0)),
                pl.BlockSpec((1, Vp), lambda bi, ti: (0, 0)),
            ],
            out_specs=pl.BlockSpec((b_tile, t_chunk, Vp),
                                   lambda bi, ti: (bi, ti, 0)),
            scratch_shapes=[pltpu.VMEM((b_tile, H), jnp.float32),
                            pltpu.VMEM((b_tile, H), jnp.float32),
                            pltpu.VMEM((b_tile, G), jnp.float32),
                            pltpu.VMEM((b_tile, t_chunk, H), jnp.float32)],
        ),
        compiler_params=pltpu.CompilerParams(
            dimension_semantics=("parallel", "arbitrary"),
            vmem_limit_bytes=_VMEM_LIMIT),
    )(emb_tm, z, wih_x, wih_z, whh, b, w_out, b_out)


# ---------------------------------------------------------------------------
# Parameter construction (deterministic, synthetic) and the forward wrapper.
# ---------------------------------------------------------------------------
def init_params(key, vocab_size, embed_dim, hidden_dim, latent_dim, pad_idx=0):
    ks = jax.random.split(key, 12)

    def nrm(k, shape, scale=0.1):
        return (jax.random.normal(k, shape) * scale).astype(jnp.float32)

    embed = nrm(ks[0], (vocab_size, embed_dim))
    embed = embed.at[pad_idx].set(0.0)  # padding_idx row is zero

    return dict(
        embed=embed,
        # encoder LSTM (stored as (in, 4H) / (H, 4H); bias = b_ih + b_hh)
        enc_wih=nrm(ks[1], (embed_dim, 4 * hidden_dim)),
        enc_whh=nrm(ks[2], (hidden_dim, 4 * hidden_dim)),
        enc_b=nrm(ks[3], (1, 4 * hidden_dim)),
        # mu / logvar heads (stored as (in, out))
        w_mu=nrm(ks[4], (hidden_dim, latent_dim)),
        b_mu=nrm(ks[5], (1, latent_dim)),
        w_lv=nrm(ks[6], (hidden_dim, latent_dim)),
        b_lv=nrm(ks[7], (1, latent_dim)),
        # decoder LSTM (input = embed_dim + latent_dim)
        dec_wih=nrm(ks[8], (embed_dim + latent_dim, 4 * hidden_dim)),
        dec_whh=nrm(ks[9], (hidden_dim, 4 * hidden_dim)),
        dec_b=nrm(ks[10], (1, 4 * hidden_dim)),
        # output projection
        w_out=nrm(ks[11], (hidden_dim, vocab_size)),
        b_out=jnp.zeros((1, vocab_size), jnp.float32),
    )


def smiles_vae_forward(params, x_ids, eps):
    """x_ids: (B, T) int32 token ids; eps: (B, latent_dim) ~ N(0,1)."""
    B, T = x_ids.shape
    E = params["embed"].shape[1]
    L = params["w_mu"].shape[1]
    V = params["w_out"].shape[1]

    Bp, b_tile = _pick_b_tile(B)
    t_chunk = _pick_t_chunk(T)
    Tp = _round_up(T, t_chunk)
    Lp = _round_up(L, 128)
    Vp = _round_up(V, 128)
    cdt = MXU_DTYPE

    # --- pad batch / time / latent / vocab so stores are lane & sublane dense
    x_ids_p = jnp.pad(x_ids, ((0, Bp - B), (0, Tp - T)))       # pad = token 0
    eps_p = jnp.pad(eps, ((0, Bp - B), (0, Lp - L)))

    enc_wih = params["enc_wih"].astype(cdt)
    enc_whh = params["enc_whh"].astype(cdt)
    w_mu_p = jnp.pad(params["w_mu"], ((0, 0), (0, Lp - L))).astype(cdt)
    b_mu_p = jnp.pad(params["b_mu"], ((0, 0), (0, Lp - L)))
    w_lv_p = jnp.pad(params["w_lv"], ((0, 0), (0, Lp - L))).astype(cdt)
    b_lv_p = jnp.pad(params["b_lv"], ((0, 0), (0, Lp - L)))
    dec_whh = params["dec_whh"].astype(cdt)
    # split decoder input weights: no (B,T,E+L) concat is ever materialized
    wih_x = params["dec_wih"][:E, :].astype(cdt)
    wih_z_p = jnp.pad(params["dec_wih"][E:, :], ((0, Lp - L), (0, 0))).astype(cdt)
    w_out_p = jnp.pad(params["w_out"], ((0, 0), (0, Vp - V))).astype(cdt)
    b_out_p = jnp.pad(params["b_out"], ((0, 0), (0, Vp - V)))

    # embeddings built directly in (T, B, E) order (gather on x_ids.T);
    # cast once to the MXU operand dtype (halves the HBM stream).
    emb_tm = jnp.take(params["embed"], x_ids_p.T, axis=0).astype(cdt)

    # --- encode (+ fused reparameterization) ---
    mu_p, lv_p, z_p = encoder_lstm(
        emb_tm, enc_wih, enc_whh, params["enc_b"],
        w_mu_p, b_mu_p, w_lv_p, b_lv_p, eps_p,
        b_tile=b_tile, t_chunk=t_chunk, seq_len=T)              # (Bp, Lp) each
    # dropout(p=0.3) on z: eval-mode identity (see TODO at top of file)

    # --- decode ---
    logits_p = decoder_lstm(
        emb_tm, z_p, wih_x, wih_z_p, dec_whh, params["dec_b"],
        w_out_p, b_out_p, b_tile=b_tile, t_chunk=t_chunk)       # (Bp, Tp, Vp)

    logits = logits_p[:B, :T, :V]
    mu = mu_p[:B, :L]
    logvar = lv_p[:B, :L]
    return logits, mu, logvar


# ---------------------------------------------------------------------------
# Pure-JAX f32 reference (same fused-bias convention) for a correctness check.
# ---------------------------------------------------------------------------
def _ref_forward(params, x_ids, eps):
    emb = jnp.take(params["embed"], x_ids, axis=0)              # (B, T, E)
    B, T, _ = emb.shape
    H = params["enc_whh"].shape[0]

    def lstm(xs_bf, wih, whh, b):
        def step(carry, x_t):
            h, c = carry
            g = x_t @ wih + h @ whh + b[0]
            i = jax.nn.sigmoid(g[:, 0 * H:1 * H])
            f = jax.nn.sigmoid(g[:, 1 * H:2 * H])
            gg = jnp.tanh(g[:, 2 * H:3 * H])
            o = jax.nn.sigmoid(g[:, 3 * H:4 * H])
            c = f * c + i * gg
            h = o * jnp.tanh(c)
            return (h, c), h
        init = (jnp.zeros((B, H), jnp.float32), jnp.zeros((B, H), jnp.float32))
        (h, _), hs = jax.lax.scan(step, init, jnp.transpose(xs_bf, (1, 0, 2)))
        return h, jnp.transpose(hs, (1, 0, 2))

    h_enc, _ = lstm(emb, params["enc_wih"], params["enc_whh"], params["enc_b"])
    mu = h_enc @ params["w_mu"] + params["b_mu"][0]
    logvar = h_enc @ params["w_lv"] + params["b_lv"][0]
    z = mu + eps * jnp.exp(0.5 * logvar)
    z_exp = jnp.broadcast_to(z[:, None, :], (B, T, z.shape[-1]))
    dec_in = jnp.concatenate([emb, z_exp], axis=-1)
    _, hs = lstm(dec_in, params["dec_wih"], params["dec_whh"], params["dec_b"])
    logits = hs @ params["w_out"] + params["b_out"][0]
    return logits, mu, logvar


if __name__ == "__main__":
    # Small shapes consistent with the module (defaults: E=64, H=128, L=64).
    VOCAB, EMBED, HIDDEN, LATENT = 40, 64, 128, 64

    def run_case(B, T, case_idx):
        key = jax.random.fold_in(jax.random.PRNGKey(0), case_idx)
        k_param, k_x, k_eps = jax.random.split(key, 3)
        params = init_params(k_param, VOCAB, EMBED, HIDDEN, LATENT, pad_idx=0)
        x_ids = jax.random.randint(k_x, (B, T), 0, VOCAB, dtype=jnp.int32)
        eps = jax.random.normal(k_eps, (B, LATENT), dtype=jnp.float32)

        logits, mu, logvar = smiles_vae_forward(params, x_ids, eps)
        jax.block_until_ready((logits, mu, logvar))

        assert logits.shape == (B, T, VOCAB)
        assert mu.shape == (B, LATENT) and logvar.shape == (B, LATENT)

        # Correctness vs. the pure-JAX f32 reference.  Tolerances account for
        # bf16 MXU operands (f32 accumulation); with MXU_DTYPE=float32 the
        # agreement is <1e-3.
        ref_logits, ref_mu, ref_lv = _ref_forward(params, x_ids, eps)
        assert float(jnp.max(jnp.abs(mu - ref_mu))) < 1.5e-2
        assert float(jnp.max(jnp.abs(logvar - ref_lv))) < 1.5e-2
        assert float(jnp.max(jnp.abs(logits - ref_logits))) < 7.5e-2

    # Case 1: T a multiple of the chunk size, B padded 4 -> 8 (clean path).
    run_case(4, 16, 0)
    # Case 2: B padded 5 -> 8, T padded 35 -> 40, multi-chunk time axis with a
    # masked tail chunk (exercises the state-freeze path and T-slicing).
    run_case(5, 35, 1)

    print("KERNEL_OK")
</pallas_src>

<mosaic_0001>
module attributes {stable_mosaic.version = 11 : i64} {
  func.func @_encoder_lstm_kernel(%arg0: i32, %arg1: i32, %arg2: memref<16x8x64xbf16, #tpu.memory_space<vmem>>, %arg3: memref<64x512xbf16, #tpu.memory_space<vmem>>, %arg4: memref<128x512xbf16, #tpu.memory_space<vmem>>, %arg5: memref<1x512xf32, #tpu.memory_space<vmem>>, %arg6: memref<128x128xbf16, #tpu.memory_space<vmem>>, %arg7: memref<1x128xf32, #tpu.memory_space<vmem>>, %arg8: memref<128x128xbf16, #tpu.memory_space<vmem>>, %arg9: memref<1x128xf32, #tpu.memory_space<vmem>>, %arg10: memref<8x128xf32, #tpu.memory_space<vmem>>, %arg11: memref<8x128xf32, #tpu.memory_space<vmem>>, %arg12: memref<8x128xf32, #tpu.memory_space<vmem>>, %arg13: memref<8x128xf32, #tpu.memory_space<vmem>>, %arg14: memref<8x128xf32, #tpu.memory_space<vmem>>, %arg15: memref<8x128xf32, #tpu.memory_space<vmem>>) attributes {dimension_semantics = [#tpu.dimension_semantics<parallel>, #tpu.dimension_semantics<arbitrary>], iteration_bounds = array<i64: 1, 1>, scalar_prefetch = 0 : i64, scratch_operands = 2 : i64, tpu.core_type = #tpu.core_type<tc>, window_params = [{transform_indices = @transform_0, window_bounds = array<i64: 16, 8, 64>}, {pipeline_mode = #tpu.pipeline_mode<synchronous>, transform_indices = @transform_1, window_bounds = array<i64: 64, 512>}, {pipeline_mode = #tpu.pipeline_mode<synchronous>, transform_indices = @transform_2, window_bounds = array<i64: 128, 512>}, {pipeline_mode = #tpu.pipeline_mode<synchronous>, transform_indices = @transform_3, window_bounds = array<i64: 1, 512>}, {pipeline_mode = #tpu.pipeline_mode<synchronous>, transform_indices = @transform_4, window_bounds = array<i64: 128, 128>}, {pipeline_mode = #tpu.pipeline_mode<synchronous>, transform_indices = @transform_5, window_bounds = array<i64: 1, 128>}, {pipeline_mode = #tpu.pipeline_mode<synchronous>, transform_indices = @transform_6, window_bounds = array<i64: 128, 128>}, {pipeline_mode = #tpu.pipeline_mode<synchronous>, transform_indices = @transform_7, window_bounds = array<i64: 1, 128>}, {transform_indices = @transform_8, window_bounds = array<i64: 8, 128>}, {transform_indices = @transform_9, window_bounds = array<i64: 8, 128>}, {transform_indices = @transform_10, window_bounds = array<i64: 8, 128>}, {transform_indices = @transform_11, window_bounds = array<i64: 8, 128>}]} {
    %c0_i32 = arith.constant 0 : i32
    %0 = arith.cmpi eq, %arg1, %c0_i32 : i32
    %1 = arith.extui %0 : i1 to i32
    %c0_i32_0 = arith.constant 0 : i32
    %2 = arith.cmpi ne, %1, %c0_i32_0 : i32
    scf.if %2 {
      %cst_179 = arith.constant 0.000000e+00 : f32
      %595 = vector.broadcast %cst_179 : f32 to vector<8x128xf32>
      %c0_180 = arith.constant 0 : index
      %c0_181 = arith.constant 0 : index
      %596 = vector.load %arg14[%c0_180, %c0_181] : memref<8x128xf32, #tpu.memory_space<vmem>>, vector<8x128xf32>
      tpu.vector_store %arg14[%c0_180, %c0_181], %595 {strides = array<i32>} : memref<8x128xf32, #tpu.memory_space<vmem>>, vector<8x128xf32>,
      %cst_182 = arith.constant 0.000000e+00 : f32
      %597 = vector.broadcast %cst_182 : f32 to vector<8x128xf32>
      %c0_183 = arith.constant 0 : index
      %c0_184 = arith.constant 0 : index
      %598 = vector.load %arg15[%c0_183, %c0_184] : memref<8x128xf32, #tpu.memory_space<vmem>>, vector<8x128xf32>
      tpu.vector_store %arg15[%c0_183, %c0_184], %597 {strides = array<i32>} : memref<8x128xf32, #tpu.memory_space<vmem>>, vector<8x128xf32>,
    } else {
    }
    %c0 = arith.constant 0 : index
    %c0_1 = arith.constant 0 : index
    %3 = vector.load %arg4[%c0, %c0_1] : memref<128x512xbf16, #tpu.memory_space<vmem>>, vector<128x512xbf16>
    %c0_2 = arith.constant 0 : index
    %c0_3 = arith.constant 0 : index
    %4 = vector.load %arg5[%c0_2, %c0_3] : memref<1x512xf32, #tpu.memory_space<vmem>>, vector<1x512xf32>
    %c0_4 = arith.constant 0 : index
    %c0_5 = arith.constant 0 : index
    %c0_6 = arith.constant 0 : index
    %5 = vector.load %arg2[%c0_4, %c0_5, %c0_6] : memref<16x8x64xbf16, #tpu.memory_space<vmem>>, vector<16x8x64xbf16>
    %6 = vector.shape_cast %5 : vector<16x8x64xbf16> to vector<128x64xbf16>
    %c0_7 = arith.constant 0 : index
    %c0_8 = arith.constant 0 : index
    %7 = vector.load %arg3[%c0_7, %c0_8] : memref<64x512xbf16, #tpu.memory_space<vmem>>, vector<64x512xbf16>
    %cst = arith.constant dense<0.000000e+00> : vector<128x512xf32>
    %8 = tpu.matmul %6, %7, %cst {dimension_numbers = #tpu.dot_dimension_numbers<[1], [0], [0], [1], [0, 0, 1, 1], [], []>} : vector<128x64xbf16>, vector<64x512xbf16>, vector<128x512xf32> -> vector<128x512xf32>
    %9 = vector.broadcast %4 : vector<1x512xf32> to vector<128x512xf32>
    %10 = arith.addf %8, %9 : vector<128x512xf32>
    %11 = vector.shape_cast %10 : vector<128x512xf32> to vector<16x8x512xf32>
    %c0_9 = arith.constant 0 : index
    %c0_10 = arith.constant 0 : index
    %12 = vector.load %arg14[%c0_9, %c0_10] : memref<8x128xf32, #tpu.memory_space<vmem>>, vector<8x128xf32>
    %c0_11 = arith.constant 0 : index
    %c0_12 = arith.constant 0 : index
    %13 = vector.load %arg15[%c0_11, %c0_12] : memref<8x128xf32, #tpu.memory_space<vmem>>, vector<8x128xf32>
    %14 = vector.extract_strided_slice %11 {offsets = [0, 0, 0], sizes = [1, 8, 512], strides = [1, 1, 1]} : vector<16x8x512xf32> to vector<1x8x512xf32>
    %15 = vector.shape_cast %14 : vector<1x8x512xf32> to vector<8x512xf32>
    %16 = arith.truncf %12 : vector<8x128xf32> to vector<8x128xbf16>
    %cst_13 = arith.constant dense<0.000000e+00> : vector<8x512xf32>
    %17 = tpu.matmul %16, %3, %cst_13 {dimension_numbers = #tpu.dot_dimension_numbers<[1], [0], [0], [1], [0, 0, 1, 1], [], []>} : vector<8x128xbf16>, vector<128x512xbf16>, vector<8x512xf32> -> vector<8x512xf32>
    %18 = arith.addf %15, %17 : vector<8x512xf32>
    %19 = vector.extract_strided_slice %18 {offsets = [0, 0], sizes = [8, 128], strides = [1, 1]} : vector<8x512xf32> to vector<8x128xf32>
    %cst_14 = arith.constant 5.000000e-01 : f32
    %20 = vector.broadcast %cst_14 : f32 to vector<8x128xf32>
    %21 = arith.mulf %20, %19 : vector<8x128xf32>
    %22 = math.tanh %21 : vector<8x128xf32>
    %cst_15 = arith.constant 5.000000e-01 : f32
    %23 = vector.broadcast %cst_15 : f32 to vector<8x128xf32>
    %24 = arith.mulf %23, %22 : vector<8x128xf32>
    %cst_16 = arith.constant 5.000000e-01 : f32
    %25 = vector.broadcast %cst_16 : f32 to vector<8x128xf32>
    %26 = arith.addf %24, %25 : vector<8x128xf32>
    %27 = vector.extract_strided_slice %18 {offsets = [0, 128], sizes = [8, 128], strides = [1, 1]} : vector<8x512xf32> to vector<8x128xf32>
    %cst_17 = arith.constant 5.000000e-01 : f32
    %28 = vector.broadcast %cst_17 : f32 to vector<8x128xf32>
    %29 = arith.mulf %28, %27 : vector<8x128xf32>
    %30 = math.tanh %29 : vector<8x128xf32>
    %cst_18 = arith.constant 5.000000e-01 : f32
    %31 = vector.broadcast %cst_18 : f32 to vector<8x128xf32>
    %32 = arith.mulf %31, %30 : vector<8x128xf32>
    %cst_19 = arith.constant 5.000000e-01 : f32
    %33 = vector.broadcast %cst_19 : f32 to vector<8x128xf32>
    %34 = arith.addf %32, %33 : vector<8x128xf32>
    %35 = vector.extract_strided_slice %18 {offsets = [0, 256], sizes = [8, 128], strides = [1, 1]} : vector<8x512xf32> to vector<8x128xf32>
    %36 = math.tanh %35 : vector<8x128xf32>
    %37 = vector.extract_strided_slice %18 {offsets = [0, 384], sizes = [8, 128], strides = [1, 1]} : vector<8x512xf32> to vector<8x128xf32>
    %cst_20 = arith.constant 5.000000e-01 : f32
    %38 = vector.broadcast %cst_20 : f32 to vector<8x128xf32>
    %39 = arith.mulf %38, %37 : vector<8x128xf32>
    %40 = math.tanh %39 : vector<8x128xf32>
    %cst_21 = arith.constant 5.000000e-01 : f32
    %41 = vector.broadcast %cst_21 : f32 to vector<8x128xf32>
    %42 = arith.mulf %41, %40 : vector<8x128xf32>
    %cst_22 = arith.constant 5.000000e-01 : f32
    %43 = vector.broadcast %cst_22 : f32 to vector<8x128xf32>
    %44 = arith.addf %42, %43 : vector<8x128xf32>
    %45 = arith.mulf %34, %13 : vector<8x128xf32>
    %46 = arith.mulf %26, %36 : vector<8x128xf32>
    %47 = arith.addf %45, %46 : vector<8x128xf32>
    %48 = math.tanh %47 : vector<8x128xf32>
    %49 = arith.mulf %44, %48 : vector<8x128xf32>
    %50 = vector.extract_strided_slice %11 {offsets = [1, 0, 0], sizes = [1, 8, 512], strides = [1, 1, 1]} : vector<16x8x512xf32> to vector<1x8x512xf32>
    %51 = vector.shape_cast %50 : vector<1x8x512xf32> to vector<8x512xf32>
    %52 = arith.truncf %49 : vector<8x128xf32> to vector<8x128xbf16>
    %cst_23 = arith.constant dense<0.000000e+00> : vector<8x512xf32>
    %53 = tpu.matmul %52, %3, %cst_23 {dimension_numbers = #tpu.dot_dimension_numbers<[1], [0], [0], [1], [0, 0, 1, 1], [], []>} : vector<8x128xbf16>, vector<128x512xbf16>, vector<8x512xf32> -> vector<8x512xf32>
    %54 = arith.addf %51, %53 : vector<8x512xf32>
    %55 = vector.extract_strided_slice %54 {offsets = [0, 0], sizes = [8, 128], strides = [1, 1]} : vector<8x512xf32> to vector<8x128xf32>
    %cst_24 = arith.constant 5.000000e-01 : f32
    %56 = vector.broadcast %cst_24 : f32 to vector<8x128xf32>
    %57 = arith.mulf %56, %55 : vector<8x128xf32>
    %58 = math.tanh %57 : vector<8x128xf32>
    %cst_25 = arith.constant 5.000000e-01 : f32
    %59 = vector.broadcast %cst_25 : f32 to vector<8x128xf32>
    %60 = arith.mulf %59, %58 : vector<8x128xf32>
    %cst_26 = arith.constant 5.000000e-01 : f32
    %61 = vector.broadcast %cst_26 : f32 to vector<8x128xf32>
    %62 = arith.addf %60, %61 : vector<8x128xf32>
    %63 = vector.extract_strided_slice %54 {offsets = [0, 128], sizes = [8, 128], strides = [1, 1]} : vector<8x512xf32> to vector<8x128xf32>
    %cst_27 = arith.constant 5.000000e-01 : f32
    %64 = vector.broadcast %cst_27 : f32 to vector<8x128xf32>
    %65 = arith.mulf %64, %63 : vector<8x128xf32>
    %66 = math.tanh %65 : vector<8x128xf32>
    %cst_28 = arith.constant 5.000000e-01 : f32
    %67 = vector.broadcast %cst_28 : f32 to vector<8x128xf32>
    %68 = arith.mulf %67, %66 : vector<8x128xf32>
    %cst_29 = arith.constant 5.000000e-01 : f32
    %69 = vector.broadcast %cst_29 : f32 to vector<8x128xf32>
    %70 = arith.addf %68, %69 : vector<8x128xf32>
    %71 = vector.extract_strided_slice %54 {offsets = [0, 256], sizes = [8, 128], strides = [1, 1]} : vector<8x512xf32> to vector<8x128xf32>
    %72 = math.tanh %71 : vector<8x128xf32>
    %73 = vector.extract_strided_slice %54 {offsets = [0, 384], sizes = [8, 128], strides = [1, 1]} : vector<8x512xf32> to vector<8x128xf32>
    %cst_30 = arith.constant 5.000000e-01 : f32
    %74 = vector.broadcast %cst_30 : f32 to vector<8x128xf32>
    %75 = arith.mulf %74, %73 : vector<8x128xf32>
    %76 = math.tanh %75 : vector<8x128xf32>
    %cst_31 = arith.constant 5.000000e-01 : f32
    %77 = vector.broadcast %cst_31 : f32 to vector<8x128xf32>
    %78 = arith.mulf %77, %76 : vector<8x128xf32>
    %cst_32 = arith.constant 5.000000e-01 : f32
    %79 = vector.broadcast %cst_32 : f32 to vector<8x128xf32>
    %80 = arith.addf %78, %79 : vector<8x128xf32>
    %81 = arith.mulf %70, %47 : vector<8x128xf32>
    %82 = arith.mulf %62, %72 : vector<8x128xf32>
    %83 = arith.addf %81, %82 : vector<8x128xf32>
    %84 = math.tanh %83 : vector<8x128xf32>
    %85 = arith.mulf %80, %84 : vector<8x128xf32>
    %86 = vector.extract_strided_slice %11 {offsets = [2, 0, 0], sizes = [1, 8, 512], strides = [1, 1, 1]} : vector<16x8x512xf32> to vector<1x8x512xf32>
    %87 = vector.shape_cast %86 : vector<1x8x512xf32> to vector<8x512xf32>
    %88 = arith.truncf %85 : vector<8x128xf32> to vector<8x128xbf16>
    %cst_33 = arith.constant dense<0.000000e+00> : vector<8x512xf32>
    %89 = tpu.matmul %88, %3, %cst_33 {dimension_numbers = #tpu.dot_dimension_numbers<[1], [0], [0], [1], [0, 0, 1, 1], [], []>} : vector<8x128xbf16>, vector<128x512xbf16>, vector<8x512xf32> -> vector<8x512xf32>
    %90 = arith.addf %87, %89 : vector<8x512xf32>
    %91 = vector.extract_strided_slice %90 {offsets = [0, 0], sizes = [8, 128], strides = [1, 1]} : vector<8x512xf32> to vector<8x128xf32>
    %cst_34 = arith.constant 5.000000e-01 : f32
    %92 = vector.broadcast %cst_34 : f32 to vector<8x128xf32>
    %93 = arith.mulf %92, %91 : vector<8x128xf32>
    %94 = math.tanh %93 : vector<8x128xf32>
    %cst_35 = arith.constant 5.000000e-01 : f32
    %95 = vector.broadcast %cst_35 : f32 to vector<8x128xf32>
    %96 = arith.mulf %95, %94 : vector<8x128xf32>
    %cst_36 = arith.constant 5.000000e-01 : f32
    %97 = vector.broadcast %cst_36 : f32 to vector<8x128xf32>
    %98 = arith.addf %96, %97 : vector<8x128xf32>
    %99 = vector.extract_strided_slice %90 {offsets = [0, 128], sizes = [8, 128], strides = [1, 1]} : vector<8x512xf32> to vector<8x128xf32>
    %cst_37 = arith.constant 5.000000e-01 : f32
    %100 = vector.broadcast %cst_37 : f32 to vector<8x128xf32>
    %101 = arith.mulf %100, %99 : vector<8x128xf32>
    %102 = math.tanh %101 : vector<8x128xf32>
    %cst_38 = arith.constant 5.000000e-01 : f32
    %103 = vector.broadcast %cst_38 : f32 to vector<8x128xf32>
    %104 = arith.mulf %103, %102 : vector<8x128xf32>
    %cst_39 = arith.constant 5.000000e-01 : f32
    %105 = vector.broadcast %cst_39 : f32 to vector<8x128xf32>
    %106 = arith.addf %104, %105 : vector<8x128xf32>
    %107 = vector.extract_strided_slice %90 {offsets = [0, 256], sizes = [8, 128], strides = [1, 1]} : vector<8x512xf32> to vector<8x128xf32>
    %108 = math.tanh %107 : vector<8x128xf32>
    %109 = vector.extract_strided_slice %90 {offsets = [0, 384], sizes = [8, 128], strides = [1, 1]} : vector<8x512xf32> to vector<8x128xf32>
    %cst_40 = arith.constant 5.000000e-01 : f32
    %110 = vector.broadcast %cst_40 : f32 to vector<8x128xf32>
    %111 = arith.mulf %110, %109 : vector<8x128xf32>
    %112 = math.tanh %111 : vector<8x128xf32>
    %cst_41 = arith.constant 5.000000e-01 : f32
    %113 = vector.broadcast %cst_41 : f32 to vector<8x128xf32>
    %114 = arith.mulf %113, %112 : vector<8x128xf32>
    %cst_42 = arith.constant 5.000000e-01 : f32
    %115 = vector.broadcast %cst_42 : f32 to vector<8x128xf32>
    %116 = arith.addf %114, %115 : vector<8x128xf32>
    %117 = arith.mulf %106, %83 : vector<8x128xf32>
    %118 = arith.mulf %98, %108 : vector<8x128xf32>
    %119 = arith.addf %117, %118 : vector<8x128xf32>
    %120 = math.tanh %119 : vector<8x128xf32>
    %121 = arith.mulf %116, %120 : vector<8x128xf32>
    %122 = vector.extract_strided_slice %11 {offsets = [3, 0, 0], sizes = [1, 8, 512], strides = [1, 1, 1]} : vector<16x8x512xf32> to vector<1x8x512xf32>
    %123 = vector.shape_cast %122 : vector<1x8x512xf32> to vector<8x512xf32>
    %124 = arith.truncf %121 : vector<8x128xf32> to vector<8x128xbf16>
    %cst_43 = arith.constant dense<0.000000e+00> : vector<8x512xf32>
    %125 = tpu.matmul %124, %3, %cst_43 {dimension_numbers = #tpu.dot_dimension_numbers<[1], [0], [0], [1], [0, 0, 1, 1], [], []>} : vector<8x128xbf16>, vector<128x512xbf16>, vector<8x512xf32> -> vector<8x512xf32>
    %126 = arith.addf %123, %125 : vector<8x512xf32>
    %127 = vector.extract_strided_slice %126 {offsets = [0, 0], sizes = [8, 128], strides = [1, 1]} : vector<8x512xf32> to vector<8x128xf32>
    %cst_44 = arith.constant 5.000000e-01 : f32
    %128 = vector.broadcast %cst_44 : f32 to vector<8x128xf32>
    %129 = arith.mulf %128, %127 : vector<8x128xf32>
    %130 = math.tanh %129 : vector<8x128xf32>
    %cst_45 = arith.constant 5.000000e-01 : f32
    %131 = vector.broadcast %cst_45 : f32 to vector<8x128xf32>
    %132 = arith.mulf %131, %130 : vector<8x128xf32>
    %cst_46 = arith.constant 5.000000e-01 : f32
    %133 = vector.broadcast %cst_46 : f32 to vector<8x128xf32>
    %134 = arith.addf %132, %133 : vector<8x128xf32>
    %135 = vector.extract_strided_slice %126 {offsets = [0, 128], sizes = [8, 128], strides = [1, 1]} : vector<8x512xf32> to vector<8x128xf32>
    %cst_47 = arith.constant 5.000000e-01 : f32
    %136 = vector.broadcast %cst_47 : f32 to vector<8x128xf32>
    %137 = arith.mulf %136, %135 : vector<8x128xf32>
    %138 = math.tanh %137 : vector<8x128xf32>
    %cst_48 = arith.constant 5.000000e-01 : f32
    %139 = vector.broadcast %cst_48 : f32 to vector<8x128xf32>
    %140 = arith.mulf %139, %138 : vector<8x128xf32>
    %cst_49 = arith.constant 5.000000e-01 : f32
    %141 = vector.broadcast %cst_49 : f32 to vector<8x128xf32>
    %142 = arith.addf %140, %141 : vector<8x128xf32>
    %143 = vector.extract_strided_slice %126 {offsets = [0, 256], sizes = [8, 128], strides = [1, 1]} : vector<8x512xf32> to vector<8x128xf32>
    %144 = math.tanh %143 : vector<8x128xf32>
    %145 = vector.extract_strided_slice %126 {offsets = [0, 384], sizes = [8, 128], strides = [1, 1]} : vector<8x512xf32> to vector<8x128xf32>
    %cst_50 = arith.constant 5.000000e-01 : f32
    %146 = vector.broadcast %cst_50 : f32 to vector<8x128xf32>
    %147 = arith.mulf %146, %145 : vector<8x128xf32>
    %148 = math.tanh %147 : vector<8x128xf32>
    %cst_51 = arith.constant 5.000000e-01 : f32
    %149 = vector.broadcast %cst_51 : f32 to vector<8x128xf32>
    %150 = arith.mulf %149, %148 : vector<8x128xf32>
    %cst_52 = arith.constant 5.000000e-01 : f32
    %151 = vector.broadcast %cst_52 : f32 to vector<8x128xf32>
    %152 = arith.addf %150, %151 : vector<8x128xf32>
    %153 = arith.mulf %142, %119 : vector<8x128xf32>
    %154 = arith.mulf %134, %144 : vector<8x128xf32>
    %155 = arith.addf %153, %154 : vector<8x128xf32>
    %156 = math.tanh %155 : vector<8x128xf32>
    %157 = arith.mulf %152, %156 : vector<8x128xf32>
    %158 = vector.extract_strided_slice %11 {offsets = [4, 0, 0], sizes = [1, 8, 512], strides = [1, 1, 1]} : vector<16x8x512xf32> to vector<1x8x512xf32>
    %159 = vector.shape_cast %158 : vector<1x8x512xf32> to vector<8x512xf32>
    %160 = arith.truncf %157 : vector<8x128xf32> to vector<8x128xbf16>
    %cst_53 = arith.constant dense<0.000000e+00> : vector<8x512xf32>
    %161 = tpu.matmul %160, %3, %cst_53 {dimension_numbers = #tpu.dot_dimension_numbers<[1], [0], [0], [1], [0, 0, 1, 1], [], []>} : vector<8x128xbf16>, vector<128x512xbf16>, vector<8x512xf32> -> vector<8x512xf32>
    %162 = arith.addf %159, %161 : vector<8x512xf32>
    %163 = vector.extract_strided_slice %162 {offsets = [0, 0], sizes = [8, 128], strides = [1, 1]} : vector<8x512xf32> to vector<8x128xf32>
    %cst_54 = arith.constant 5.000000e-01 : f32
    %164 = vector.broadcast %cst_54 : f32 to vector<8x128xf32>
    %165 = arith.mulf %164, %163 : vector<8x128xf32>
    %166 = math.tanh %165 : vector<8x128xf32>
    %cst_55 = arith.constant 5.000000e-01 : f32
    %167 = vector.broadcast %cst_55 : f32 to vector<8x128xf32>
    %168 = arith.mulf %167, %166 : vector<8x128xf32>
    %cst_56 = arith.constant 5.000000e-01 : f32
    %169 = vector.broadcast %cst_56 : f32 to vector<8x128xf32>
    %170 = arith.addf %168, %169 : vector<8x128xf32>
    %171 = vector.extract_strided_slice %162 {offsets = [0, 128], sizes = [8, 128], strides = [1, 1]} : vector<8x512xf32> to vector<8x128xf32>
    %cst_57 = arith.constant 5.000000e-01 : f32
    %172 = vector.broadcast %cst_57 : f32 to vector<8x128xf32>
    %173 = arith.mulf %172, %171 : vector<8x128xf32>
    %174 = math.tanh %173 : vector<8x128xf32>
    %cst_58 = arith.constant 5.000000e-01 : f32
    %175 = vector.broadcast %cst_58 : f32 to vector<8x128xf32>
    %176 = arith.mulf %175, %174 : vector<8x128xf32>
    %cst_59 = arith.constant 5.000000e-01 : f32
    %177 = vector.broadcast %cst_59 : f32 to vector<8x128xf32>
    %178 = arith.addf %176, %177 : vector<8x128xf32>
    %179 = vector.extract_strided_slice %162 {offsets = [0, 256], sizes = [8, 128], strides = [1, 1]} : vector<8x512xf32> to vector<8x128xf32>
    %180 = math.tanh %179 : vector<8x128xf32>
    %181 = vector.extract_strided_slice %162 {offsets = [0, 384], sizes = [8, 128], strides = [1, 1]} : vector<8x512xf32> to vector<8x128xf32>
    %cst_60 = arith.constant 5.000000e-01 : f32
    %182 = vector.broadcast %cst_60 : f32 to vector<8x128xf32>
    %183 = arith.mulf %182, %181 : vector<8x128xf32>
    %184 = math.tanh %183 : vector<8x128xf32>
    %cst_61 = arith.constant 5.000000e-01 : f32
    %185 = vector.broadcast %cst_61 : f32 to vector<8x128xf32>
    %186 = arith.mulf %185, %184 : vector<8x128xf32>
    %cst_62 = arith.constant 5.000000e-01 : f32
    %187 = vector.broadcast %cst_62 : f32 to vector<8x128xf32>
    %188 = arith.addf %186, %187 : vector<8x128xf32>
    %189 = arith.mulf %178, %155 : vector<8x128xf32>
    %190 = arith.mulf %170, %180 : vector<8x128xf32>
    %191 = arith.addf %189, %190 : vector<8x128xf32>
    %192 = math.tanh %191 : vector<8x128xf32>
    %193 = arith.mulf %188, %192 : vector<8x128xf32>
    %194 = vector.extract_strided_slice %11 {offsets = [5, 0, 0], sizes = [1, 8, 512], strides = [1, 1, 1]} : vector<16x8x512xf32> to vector<1x8x512xf32>
    %195 = vector.shape_cast %194 : vector<1x8x512xf32> to vector<8x512xf32>
    %196 = arith.truncf %193 : vector<8x128xf32> to vector<8x128xbf16>
    %cst_63 = arith.constant dense<0.000000e+00> : vector<8x512xf32>
    %197 = tpu.matmul %196, %3, %cst_63 {dimension_numbers = #tpu.dot_dimension_numbers<[1], [0], [0], [1], [0, 0, 1, 1], [], []>} : vector<8x128xbf16>, vector<128x512xbf16>, vector<8x512xf32> -> vector<8x512xf32>
    %198 = arith.addf %195, %197 : vector<8x512xf32>
    %199 = vector.extract_strided_slice %198 {offsets = [0, 0], sizes = [8, 128], strides = [1, 1]} : vector<8x512xf32> to vector<8x128xf32>
    %cst_64 = arith.constant 5.000000e-01 : f32
    %200 = vector.broadcast %cst_64 : f32 to vector<8x128xf32>
    %201 = arith.mulf %200, %199 : vector<8x128xf32>
    %202 = math.tanh %201 : vector<8x128xf32>
    %cst_65 = arith.constant 5.000000e-01 : f32
    %203 = vector.broadcast %cst_65 : f32 to vector<8x128xf32>
    %204 = arith.mulf %203, %202 : vector<8x128xf32>
    %cst_66 = arith.constant 5.000000e-01 : f32
    %205 = vector.broadcast %cst_66 : f32 to vector<8x128xf32>
    %206 = arith.addf %204, %205 : vector<8x128xf32>
    %207 = vector.extract_strided_slice %198 {offsets = [0, 128], sizes = [8, 128], strides = [1, 1]} : vector<8x512xf32> to vector<8x128xf32>
    %cst_67 = arith.constant 5.000000e-01 : f32
    %208 = vector.broadcast %cst_67 : f32 to vector<8x128xf32>
    %209 = arith.mulf %208, %207 : vector<8x128xf32>
    %210 = math.tanh %209 : vector<8x128xf32>
    %cst_68 = arith.constant 5.000000e-01 : f32
    %211 = vector.broadcast %cst_68 : f32 to vector<8x128xf32>
    %212 = arith.mulf %211, %210 : vector<8x128xf32>
    %cst_69 = arith.constant 5.000000e-01 : f32
    %213 = vector.broadcast %cst_69 : f32 to vector<8x128xf32>
    %214 = arith.addf %212, %213 : vector<8x128xf32>
    %215 = vector.extract_strided_slice %198 {offsets = [0, 256], sizes = [8, 128], strides = [1, 1]} : vector<8x512xf32> to vector<8x128xf32>
    %216 = math.tanh %215 : vector<8x128xf32>
    %217 = vector.extract_strided_slice %198 {offsets = [0, 384], sizes = [8, 128], strides = [1, 1]} : vector<8x512xf32> to vector<8x128xf32>
    %cst_70 = arith.constant 5.000000e-01 : f32
    %218 = vector.broadcast %cst_70 : f32 to vector<8x128xf32>
    %219 = arith.mulf %218, %217 : vector<8x128xf32>
    %220 = math.tanh %219 : vector<8x128xf32>
    %cst_71 = arith.constant 5.000000e-01 : f32
    %221 = vector.broadcast %cst_71 : f32 to vector<8x128xf32>
    %222 = arith.mulf %221, %220 : vector<8x128xf32>
    %cst_72 = arith.constant 5.000000e-01 : f32
    %223 = vector.broadcast %cst_72 : f32 to vector<8x128xf32>
    %224 = arith.addf %222, %223 : vector<8x128xf32>
    %225 = arith.mulf %214, %191 : vector<8x128xf32>
    %226 = arith.mulf %206, %216 : vector<8x128xf32>
    %227 = arith.addf %225, %226 : vector<8x128xf32>
    %228 = math.tanh %227 : vector<8x128xf32>
    %229 = arith.mulf %224, %228 : vector<8x128xf32>
    %230 = vector.extract_strided_slice %11 {offsets = [6, 0, 0], sizes = [1, 8, 512], strides = [1, 1, 1]} : vector<16x8x512xf32> to vector<1x8x512xf32>
    %231 = vector.shape_cast %230 : vector<1x8x512xf32> to vector<8x512xf32>
    %232 = arith.truncf %229 : vector<8x128xf32> to vector<8x128xbf16>
    %cst_73 = arith.constant dense<0.000000e+00> : vector<8x512xf32>
    %233 = tpu.matmul %232, %3, %cst_73 {dimension_numbers = #tpu.dot_dimension_numbers<[1], [0], [0], [1], [0, 0, 1, 1], [], []>} : vector<8x128xbf16>, vector<128x512xbf16>, vector<8x512xf32> -> vector<8x512xf32>
    %234 = arith.addf %231, %233 : vector<8x512xf32>
    %235 = vector.extract_strided_slice %234 {offsets = [0, 0], sizes = [8, 128], strides = [1, 1]} : vector<8x512xf32> to vector<8x128xf32>
    %cst_74 = arith.constant 5.000000e-01 : f32
    %236 = vector.broadcast %cst_74 : f32 to vector<8x128xf32>
    %237 = arith.mulf %236, %235 : vector<8x128xf32>
    %238 = math.tanh %237 : vector<8x128xf32>
    %cst_75 = arith.constant 5.000000e-01 : f32
    %239 = vector.broadcast %cst_75 : f32 to vector<8x128xf32>
    %240 = arith.mulf %239, %238 : vector<8x128xf32>
    %cst_76 = arith.constant 5.000000e-01 : f32
    %241 = vector.broadcast %cst_76 : f32 to vector<8x128xf32>
    %242 = arith.addf %240, %241 : vector<8x128xf32>
    %243 = vector.extract_strided_slice %234 {offsets = [0, 128], sizes = [8, 128], strides = [1, 1]} : vector<8x512xf32> to vector<8x128xf32>
    %cst_77 = arith.constant 5.000000e-01 : f32
    %244 = vector.broadcast %cst_77 : f32 to vector<8x128xf32>
    %245 = arith.mulf %244, %243 : vector<8x128xf32>
    %246 = math.tanh %245 : vector<8x128xf32>
    %cst_78 = arith.constant 5.000000e-01 : f32
    %247 = vector.broadcast %cst_78 : f32 to vector<8x128xf32>
    %248 = arith.mulf %247, %246 : vector<8x128xf32>
    %cst_79 = arith.constant 5.000000e-01 : f32
    %249 = vector.broadcast %cst_79 : f32 to vector<8x128xf32>
    %250 = arith.addf %248, %249 : vector<8x128xf32>
    %251 = vector.extract_strided_slice %234 {offsets = [0, 256], sizes = [8, 128], strides = [1, 1]} : vector<8x512xf32> to vector<8x128xf32>
    %252 = math.tanh %251 : vector<8x128xf32>
    %253 = vector.extract_strided_slice %234 {offsets = [0, 384], sizes = [8, 128], strides = [1, 1]} : vector<8x512xf32> to vector<8x128xf32>
    %cst_80 = arith.constant 5.000000e-01 : f32
    %254 = vector.broadcast %cst_80 : f32 to vector<8x128xf32>
    %255 = arith.mulf %254, %253 : vector<8x128xf32>
    %256 = math.tanh %255 : vector<8x128xf32>
    %cst_81 = arith.constant 5.000000e-01 : f32
    %257 = vector.broadcast %cst_81 : f32 to vector<8x128xf32>
    %258 = arith.mulf %257, %256 : vector<8x128xf32>
    %cst_82 = arith.constant 5.000000e-01 : f32
    %259 = vector.broadcast %cst_82 : f32 to vector<8x128xf32>
    %260 = arith.addf %258, %259 : vector<8x128xf32>
    %261 = arith.mulf %250, %227 : vector<8x128xf32>
    %262 = arith.mulf %242, %252 : vector<8x128xf32>
    %263 = arith.addf %261, %262 : vector<8x128xf32>
    %264 = math.tanh %263 : vector<8x128xf32>
    %265 = arith.mulf %260, %264 : vector<8x128xf32>
    %266 = vector.extract_strided_slice %11 {offsets = [7, 0, 0], sizes = [1, 8, 512], strides = [1, 1, 1]} : vector<16x8x512xf32> to vector<1x8x512xf32>
    %267 = vector.shape_cast %266 : vector<1x8x512xf32> to vector<8x512xf32>
    %268 = arith.truncf %265 : vector<8x128xf32> to vector<8x128xbf16>
    %cst_83 = arith.constant dense<0.000000e+00> : vector<8x512xf32>
    %269 = tpu.matmul %268, %3, %cst_83 {dimension_numbers = #tpu.dot_dimension_numbers<[1], [0], [0], [1], [0, 0, 1, 1], [], []>} : vector<8x128xbf16>, vector<128x512xbf16>, vector<8x512xf32> -> vector<8x512xf32>
    %270 = arith.addf %267, %269 : vector<8x512xf32>
    %271 = vector.extract_strided_slice %270 {offsets = [0, 0], sizes = [8, 128], strides = [1, 1]} : vector<8x512xf32> to vector<8x128xf32>
    %cst_84 = arith.constant 5.000000e-01 : f32
    %272 = vector.broadcast %cst_84 : f32 to vector<8x128xf32>
    %273 = arith.mulf %272, %271 : vector<8x128xf32>
    %274 = math.tanh %273 : vector<8x128xf32>
    %cst_85 = arith.constant 5.000000e-01 : f32
    %275 = vector.broadcast %cst_85 : f32 to vector<8x128xf32>
    %276 = arith.mulf %275, %274 : vector<8x128xf32>
    %cst_86 = arith.constant 5.000000e-01 : f32
    %277 = vector.broadcast %cst_86 : f32 to vector<8x128xf32>
    %278 = arith.addf %276, %277 : vector<8x128xf32>
    %279 = vector.extract_strided_slice %270 {offsets = [0, 128], sizes = [8, 128], strides = [1, 1]} : vector<8x512xf32> to vector<8x128xf32>
    %cst_87 = arith.constant 5.000000e-01 : f32
    %280 = vector.broadcast %cst_87 : f32 to vector<8x128xf32>
    %281 = arith.mulf %280, %279 : vector<8x128xf32>
    %282 = math.tanh %281 : vector<8x128xf32>
    %cst_88 = arith.constant 5.000000e-01 : f32
    %283 = vector.broadcast %cst_88 : f32 to vector<8x128xf32>
    %284 = arith.mulf %283, %282 : vector<8x128xf32>
    %cst_89 = arith.constant 5.000000e-01 : f32
    %285 = vector.broadcast %cst_89 : f32 to vector<8x128xf32>
    %286 = arith.addf %284, %285 : vector<8x128xf32>
    %287 = vector.extract_strided_slice %270 {offsets = [0, 256], sizes = [8, 128], strides = [1, 1]} : vector<8x512xf32> to vector<8x128xf32>
    %288 = math.tanh %287 : vector<8x128xf32>
    %289 = vector.extract_strided_slice %270 {offsets = [0, 384], sizes = [8, 128], strides = [1, 1]} : vector<8x512xf32> to vector<8x128xf32>
    %cst_90 = arith.constant 5.000000e-01 : f32
    %290 = vector.broadcast %cst_90 : f32 to vector<8x128xf32>
    %291 = arith.mulf %290, %289 : vector<8x128xf32>
    %292 = math.tanh %291 : vector<8x128xf32>
    %cst_91 = arith.constant 5.000000e-01 : f32
    %293 = vector.broadcast %cst_91 : f32 to vector<8x128xf32>
    %294 = arith.mulf %293, %292 : vector<8x128xf32>
    %cst_92 = arith.constant 5.000000e-01 : f32
    %295 = vector.broadcast %cst_92 : f32 to vector<8x128xf32>
    %296 = arith.addf %294, %295 : vector<8x128xf32>
    %297 = arith.mulf %286, %263 : vector<8x128xf32>
    %298 = arith.mulf %278, %288 : vector<8x128xf32>
    %299 = arith.addf %297, %298 : vector<8x128xf32>
    %300 = math.tanh %299 : vector<8x128xf32>
    %301 = arith.mulf %296, %300 : vector<8x128xf32>
    %302 = vector.extract_strided_slice %11 {offsets = [8, 0, 0], sizes = [1, 8, 512], strides = [1, 1, 1]} : vector<16x8x512xf32> to vector<1x8x512xf32>
    %303 = vector.shape_cast %302 : vector<1x8x512xf32> to vector<8x512xf32>
    %304 = arith.truncf %301 : vector<8x128xf32> to vector<8x128xbf16>
    %cst_93 = arith.constant dense<0.000000e+00> : vector<8x512xf32>
    %305 = tpu.matmul %304, %3, %cst_93 {dimension_numbers = #tpu.dot_dimension_numbers<[1], [0], [0], [1], [0, 0, 1, 1], [], []>} : vector<8x128xbf16>, vector<128x512xbf16>, vector<8x512xf32> -> vector<8x512xf32>
    %306 = arith.addf %303, %305 : vector<8x512xf32>
    %307 = vector.extract_strided_slice %306 {offsets = [0, 0], sizes = [8, 128], strides = [1, 1]} : vector<8x512xf32> to vector<8x128xf32>
    %cst_94 = arith.constant 5.000000e-01 : f32
    %308 = vector.broadcast %cst_94 : f32 to vector<8x128xf32>
    %309 = arith.mulf %308, %307 : vector<8x128xf32>
    %310 = math.tanh %309 : vector<8x128xf32>
    %cst_95 = arith.constant 5.000000e-01 : f32
    %311 = vector.broadcast %cst_95 : f32 to vector<8x128xf32>
    %312 = arith.mulf %311, %310 : vector<8x128xf32>
    %cst_96 = arith.constant 5.000000e-01 : f32
    %313 = vector.broadcast %cst_96 : f32 to vector<8x128xf32>
    %314 = arith.addf %312, %313 : vector<8x128xf32>
    %315 = vector.extract_strided_slice %306 {offsets = [0, 128], sizes = [8, 128], strides = [1, 1]} : vector<8x512xf32> to vector<8x128xf32>
    %cst_97 = arith.constant 5.000000e-01 : f32
    %316 = vector.broadcast %cst_97 : f32 to vector<8x128xf32>
    %317 = arith.mulf %316, %315 : vector<8x128xf32>
    %318 = math.tanh %317 : vector<8x128xf32>
    %cst_98 = arith.constant 5.000000e-01 : f32
    %319 = vector.broadcast %cst_98 : f32 to vector<8x128xf32>
    %320 = arith.mulf %319, %318 : vector<8x128xf32>
    %cst_99 = arith.constant 5.000000e-01 : f32
    %321 = vector.broadcast %cst_99 : f32 to vector<8x128xf32>
    %322 = arith.addf %320, %321 : vector<8x128xf32>
    %323 = vector.extract_strided_slice %306 {offsets = [0, 256], sizes = [8, 128], strides = [1, 1]} : vector<8x512xf32> to vector<8x128xf32>
    %324 = math.tanh %323 : vector<8x128xf32>
    %325 = vector.extract_strided_slice %306 {offsets = [0, 384], sizes = [8, 128], strides = [1, 1]} : vector<8x512xf32> to vector<8x128xf32>
    %cst_100 = arith.constant 5.000000e-01 : f32
    %326 = vector.broadcast %cst_100 : f32 to vector<8x128xf32>
    %327 = arith.mulf %326, %325 : vector<8x128xf32>
    %328 = math.tanh %327 : vector<8x128xf32>
    %cst_101 = arith.constant 5.000000e-01 : f32
    %329 = vector.broadcast %cst_101 : f32 to vector<8x128xf32>
    %330 = arith.mulf %329, %328 : vector<8x128xf32>
    %cst_102 = arith.constant 5.000000e-01 : f32
    %331 = vector.broadcast %cst_102 : f32 to vector<8x128xf32>
    %332 = arith.addf %330, %331 : vector<8x128xf32>
    %333 = arith.mulf %322, %299 : vector<8x128xf32>
    %334 = arith.mulf %314, %324 : vector<8x128xf32>
    %335 = arith.addf %333, %334 : vector<8x128xf32>
    %336 = math.tanh %335 : vector<8x128xf32>
    %337 = arith.mulf %332, %336 : vector<8x128xf32>
    %338 = vector.extract_strided_slice %11 {offsets = [9, 0, 0], sizes = [1, 8, 512], strides = [1, 1, 1]} : vector<16x8x512xf32> to vector<1x8x512xf32>
    %339 = vector.shape_cast %338 : vector<1x8x512xf32> to vector<8x512xf32>
    %340 = arith.truncf %337 : vector<8x128xf32> to vector<8x128xbf16>
    %cst_103 = arith.constant dense<0.000000e+00> : vector<8x512xf32>
    %341 = tpu.matmul %340, %3, %cst_103 {dimension_numbers = #tpu.dot_dimension_numbers<[1], [0], [0], [1], [0, 0, 1, 1], [], []>} : vector<8x128xbf16>, vector<128x512xbf16>, vector<8x512xf32> -> vector<8x512xf32>
    %342 = arith.addf %339, %341 : vector<8x512xf32>
    %343 = vector.extract_strided_slice %342 {offsets = [0, 0], sizes = [8, 128], strides = [1, 1]} : vector<8x512xf32> to vector<8x128xf32>
    %cst_104 = arith.constant 5.000000e-01 : f32
    %344 = vector.broadcast %cst_104 : f32 to vector<8x128xf32>
    %345 = arith.mulf %344, %343 : vector<8x128xf32>
    %346 = math.tanh %345 : vector<8x128xf32>
    %cst_105 = arith.constant 5.000000e-01 : f32
    %347 = vector.broadcast %cst_105 : f32 to vector<8x128xf32>
    %348 = arith.mulf %347, %346 : vector<8x128xf32>
    %cst_106 = arith.constant 5.000000e-01 : f32
    %349 = vector.broadcast %cst_106 : f32 to vector<8x128xf32>
    %350 = arith.addf %348, %349 : vector<8x128xf32>
    %351 = vector.extract_strided_slice %342 {offsets = [0, 128], sizes = [8, 128], strides = [1, 1]} : vector<8x512xf32> to vector<8x128xf32>
    %cst_107 = arith.constant 5.000000e-01 : f32
    %352 = vector.broadcast %cst_107 : f32 to vector<8x128xf32>
    %353 = arith.mulf %352, %351 : vector<8x128xf32>
    %354 = math.tanh %353 : vector<8x128xf32>
    %cst_108 = arith.constant 5.000000e-01 : f32
    %355 = vector.broadcast %cst_108 : f32 to vector<8x128xf32>
    %356 = arith.mulf %355, %354 : vector<8x128xf32>
    %cst_109 = arith.constant 5.000000e-01 : f32
    %357 = vector.broadcast %cst_109 : f32 to vector<8x128xf32>
    %358 = arith.addf %356, %357 : vector<8x128xf32>
    %359 = vector.extract_strided_slice %342 {offsets = [0, 256], sizes = [8, 128], strides = [1, 1]} : vector<8x512xf32> to vector<8x128xf32>
    %360 = math.tanh %359 : vector<8x128xf32>
    %361 = vector.extract_strided_slice %342 {offsets = [0, 384], sizes = [8, 128], strides = [1, 1]} : vector<8x512xf32> to vector<8x128xf32>
    %cst_110 = arith.constant 5.000000e-01 : f32
    %362 = vector.broadcast %cst_110 : f32 to vector<8x128xf32>
    %363 = arith.mulf %362, %361 : vector<8x128xf32>
    %364 = math.tanh %363 : vector<8x128xf32>
    %cst_111 = arith.constant 5.000000e-01 : f32
    %365 = vector.broadcast %cst_111 : f32 to vector<8x128xf32>
    %366 = arith.mulf %365, %364 : vector<8x128xf32>
    %cst_112 = arith.constant 5.000000e-01 : f32
    %367 = vector.broadcast %cst_112 : f32 to vector<8x128xf32>
    %368 = arith.addf %366, %367 : vector<8x128xf32>
    %369 = arith.mulf %358, %335 : vector<8x128xf32>
    %370 = arith.mulf %350, %360 : vector<8x128xf32>
    %371 = arith.addf %369, %370 : vector<8x128xf32>
    %372 = math.tanh %371 : vector<8x128xf32>
    %373 = arith.mulf %368, %372 : vector<8x128xf32>
    %374 = vector.extract_strided_slice %11 {offsets = [10, 0, 0], sizes = [1, 8, 512], strides = [1, 1, 1]} : vector<16x8x512xf32> to vector<1x8x512xf32>
    %375 = vector.shape_cast %374 : vector<1x8x512xf32> to vector<8x512xf32>
    %376 = arith.truncf %373 : vector<8x128xf32> to vector<8x128xbf16>
    %cst_113 = arith.constant dense<0.000000e+00> : vector<8x512xf32>
    %377 = tpu.matmul %376, %3, %cst_113 {dimension_numbers = #tpu.dot_dimension_numbers<[1], [0], [0], [1], [0, 0, 1, 1], [], []>} : vector<8x128xbf16>, vector<128x512xbf16>, vector<8x512xf32> -> vector<8x512xf32>
    %378 = arith.addf %375, %377 : vector<8x512xf32>
    %379 = vector.extract_strided_slice %378 {offsets = [0, 0], sizes = [8, 128], strides = [1, 1]} : vector<8x512xf32> to vector<8x128xf32>
    %cst_114 = arith.constant 5.000000e-01 : f32
    %380 = vector.broadcast %cst_114 : f32 to vector<8x128xf32>
    %381 = arith.mulf %380, %379 : vector<8x128xf32>
    %382 = math.tanh %381 : vector<8x128xf32>
    %cst_115 = arith.constant 5.000000e-01 : f32
    %383 = vector.broadcast %cst_115 : f32 to vector<8x128xf32>
    %384 = arith.mulf %383, %382 : vector<8x128xf32>
    %cst_116 = arith.constant 5.000000e-01 : f32
    %385 = vector.broadcast %cst_116 : f32 to vector<8x128xf32>
    %386 = arith.addf %384, %385 : vector<8x128xf32>
    %387 = vector.extract_strided_slice %378 {offsets = [0, 128], sizes = [8, 128], strides = [1, 1]} : vector<8x512xf32> to vector<8x128xf32>
    %cst_117 = arith.constant 5.000000e-01 : f32
    %388 = vector.broadcast %cst_117 : f32 to vector<8x128xf32>
    %389 = arith.mulf %388, %387 : vector<8x128xf32>
    %390 = math.tanh %389 : vector<8x128xf32>
    %cst_118 = arith.constant 5.000000e-01 : f32
    %391 = vector.broadcast %cst_118 : f32 to vector<8x128xf32>
    %392 = arith.mulf %391, %390 : vector<8x128xf32>
    %cst_119 = arith.constant 5.000000e-01 : f32
    %393 = vector.broadcast %cst_119 : f32 to vector<8x128xf32>
    %394 = arith.addf %392, %393 : vector<8x128xf32>
    %395 = vector.extract_strided_slice %378 {offsets = [0, 256], sizes = [8, 128], strides = [1, 1]} : vector<8x512xf32> to vector<8x128xf32>
    %396 = math.tanh %395 : vector<8x128xf32>
    %397 = vector.extract_strided_slice %378 {offsets = [0, 384], sizes = [8, 128], strides = [1, 1]} : vector<8x512xf32> to vector<8x128xf32>
    %cst_120 = arith.constant 5.000000e-01 : f32
    %398 = vector.broadcast %cst_120 : f32 to vector<8x128xf32>
    %399 = arith.mulf %398, %397 : vector<8x128xf32>
    %400 = math.tanh %399 : vector<8x128xf32>
    %cst_121 = arith.constant 5.000000e-01 : f32
    %401 = vector.broadcast %cst_121 : f32 to vector<8x128xf32>
    %402 = arith.mulf %401, %400 : vector<8x128xf32>
    %cst_122 = arith.constant 5.000000e-01 : f32
    %403 = vector.broadcast %cst_122 : f32 to vector<8x128xf32>
    %404 = arith.addf %402, %403 : vector<8x128xf32>
    %405 = arith.mulf %394, %371 : vector<8x128xf32>
    %406 = arith.mulf %386, %396 : vector<8x128xf32>
    %407 = arith.addf %405, %406 : vector<8x128xf32>
    %408 = math.tanh %407 : vector<8x128xf32>
    %409 = arith.mulf %404, %408 : vector<8x128xf32>
    %410 = vector.extract_strided_slice %11 {offsets = [11, 0, 0], sizes = [1, 8, 512], strides = [1, 1, 1]} : vector<16x8x512xf32> to vector<1x8x512xf32>
    %411 = vector.shape_cast %410 : vector<1x8x512xf32> to vector<8x512xf32>
    %412 = arith.truncf %409 : vector<8x128xf32> to vector<8x128xbf16>
    %cst_123 = arith.constant dense<0.000000e+00> : vector<8x512xf32>
    %413 = tpu.matmul %412, %3, %cst_123 {dimension_numbers = #tpu.dot_dimension_numbers<[1], [0], [0], [1], [0, 0, 1, 1], [], []>} : vector<8x128xbf16>, vector<128x512xbf16>, vector<8x512xf32> -> vector<8x512xf32>
    %414 = arith.addf %411, %413 : vector<8x512xf32>
    %415 = vector.extract_strided_slice %414 {offsets = [0, 0], sizes = [8, 128], strides = [1, 1]} : vector<8x512xf32> to vector<8x128xf32>
    %cst_124 = arith.constant 5.000000e-01 : f32
    %416 = vector.broadcast %cst_124 : f32 to vector<8x128xf32>
    %417 = arith.mulf %416, %415 : vector<8x128xf32>
    %418 = math.tanh %417 : vector<8x128xf32>
    %cst_125 = arith.constant 5.000000e-01 : f32
    %419 = vector.broadcast %cst_125 : f32 to vector<8x128xf32>
    %420 = arith.mulf %419, %418 : vector<8x128xf32>
    %cst_126 = arith.constant 5.000000e-01 : f32
    %421 = vector.broadcast %cst_126 : f32 to vector<8x128xf32>
    %422 = arith.addf %420, %421 : vector<8x128xf32>
    %423 = vector.extract_strided_slice %414 {offsets = [0, 128], sizes = [8, 128], strides = [1, 1]} : vector<8x512xf32> to vector<8x128xf32>
    %cst_127 = arith.constant 5.000000e-01 : f32
    %424 = vector.broadcast %cst_127 : f32 to vector<8x128xf32>
    %425 = arith.mulf %424, %423 : vector<8x128xf32>
    %426 = math.tanh %425 : vector<8x128xf32>
    %cst_128 = arith.constant 5.000000e-01 : f32
    %427 = vector.broadcast %cst_128 : f32 to vector<8x128xf32>
    %428 = arith.mulf %427, %426 : vector<8x128xf32>
    %cst_129 = arith.constant 5.000000e-01 : f32
    %429 = vector.broadcast %cst_129 : f32 to vector<8x128xf32>
    %430 = arith.addf %428, %429 : vector<8x128xf32>
    %431 = vector.extract_strided_slice %414 {offsets = [0, 256], sizes = [8, 128], strides = [1, 1]} : vector<8x512xf32> to vector<8x128xf32>
    %432 = math.tanh %431 : vector<8x128xf32>
    %433 = vector.extract_strided_slice %414 {offsets = [0, 384], sizes = [8, 128], strides = [1, 1]} : vector<8x512xf32> to vector<8x128xf32>
    %cst_130 = arith.constant 5.000000e-01 : f32
    %434 = vector.broadcast %cst_130 : f32 to vector<8x128xf32>
    %435 = arith.mulf %434, %433 : vector<8x128xf32>
    %436 = math.tanh %435 : vector<8x128xf32>
    %cst_131 = arith.constant 5.000000e-01 : f32
    %437 = vector.broadcast %cst_131 : f32 to vector<8x128xf32>
    %438 = arith.mulf %437, %436 : vector<8x128xf32>
    %cst_132 = arith.constant 5.000000e-01 : f32
    %439 = vector.broadcast %cst_132 : f32 to vector<8x128xf32>
    %440 = arith.addf %438, %439 : vector<8x128xf32>
    %441 = arith.mulf %430, %407 : vector<8x128xf32>
    %442 = arith.mulf %422, %432 : vector<8x128xf32>
    %443 = arith.addf %441, %442 : vector<8x128xf32>
    %444 = math.tanh %443 : vector<8x128xf32>
    %445 = arith.mulf %440, %444 : vector<8x128xf32>
    %446 = vector.extract_strided_slice %11 {offsets = [12, 0, 0], sizes = [1, 8, 512], strides = [1, 1, 1]} : vector<16x8x512xf32> to vector<1x8x512xf32>
    %447 = vector.shape_cast %446 : vector<1x8x512xf32> to vector<8x512xf32>
    %448 = arith.truncf %445 : vector<8x128xf32> to vector<8x128xbf16>
    %cst_133 = arith.constant dense<0.000000e+00> : vector<8x512xf32>
    %449 = tpu.matmul %448, %3, %cst_133 {dimension_numbers = #tpu.dot_dimension_numbers<[1], [0], [0], [1], [0, 0, 1, 1], [], []>} : vector<8x128xbf16>, vector<128x512xbf16>, vector<8x512xf32> -> vector<8x512xf32>
    %450 = arith.addf %447, %449 : vector<8x512xf32>
    %451 = vector.extract_strided_slice %450 {offsets = [0, 0], sizes = [8, 128], strides = [1, 1]} : vector<8x512xf32> to vector<8x128xf32>
    %cst_134 = arith.constant 5.000000e-01 : f32
    %452 = vector.broadcast %cst_134 : f32 to vector<8x128xf32>
    %453 = arith.mulf %452, %451 : vector<8x128xf32>
    %454 = math.tanh %453 : vector<8x128xf32>
    %cst_135 = arith.constant 5.000000e-01 : f32
    %455 = vector.broadcast %cst_135 : f32 to vector<8x128xf32>
    %456 = arith.mulf %455, %454 : vector<8x128xf32>
    %cst_136 = arith.constant 5.000000e-01 : f32
    %457 = vector.broadcast %cst_136 : f32 to vector<8x128xf32>
    %458 = arith.addf %456, %457 : vector<8x128xf32>
    %459 = vector.extract_strided_slice %450 {offsets = [0, 128], sizes = [8, 128], strides = [1, 1]} : vector<8x512xf32> to vector<8x128xf32>
    %cst_137 = arith.constant 5.000000e-01 : f32
    %460 = vector.broadcast %cst_137 : f32 to vector<8x128xf32>
    %461 = arith.mulf %460, %459 : vector<8x128xf32>
    %462 = math.tanh %461 : vector<8x128xf32>
    %cst_138 = arith.constant 5.000000e-01 : f32
    %463 = vector.broadcast %cst_138 : f32 to vector<8x128xf32>
    %464 = arith.mulf %463, %462 : vector<8x128xf32>
    %cst_139 = arith.constant 5.000000e-01 : f32
    %465 = vector.broadcast %cst_139 : f32 to vector<8x128xf32>
    %466 = arith.addf %464, %465 : vector<8x128xf32>
    %467 = vector.extract_strided_slice %450 {offsets = [0, 256], sizes = [8, 128], strides = [1, 1]} : vector<8x512xf32> to vector<8x128xf32>
    %468 = math.tanh %467 : vector<8x128xf32>
    %469 = vector.extract_strided_slice %450 {offsets = [0, 384], sizes = [8, 128], strides = [1, 1]} : vector<8x512xf32> to vector<8x128xf32>
    %cst_140 = arith.constant 5.000000e-01 : f32
    %470 = vector.broadcast %cst_140 : f32 to vector<8x128xf32>
    %471 = arith.mulf %470, %469 : vector<8x128xf32>
    %472 = math.tanh %471 : vector<8x128xf32>
    %cst_141 = arith.constant 5.000000e-01 : f32
    %473 = vector.broadcast %cst_141 : f32 to vector<8x128xf32>
    %474 = arith.mulf %473, %472 : vector<8x128xf32>
    %cst_142 = arith.constant 5.000000e-01 : f32
    %475 = vector.broadcast %cst_142 : f32 to vector<8x128xf32>
    %476 = arith.addf %474, %475 : vector<8x128xf32>
    %477 = arith.mulf %466, %443 : vector<8x128xf32>
    %478 = arith.mulf %458, %468 : vector<8x128xf32>
    %479 = arith.addf %477, %478 : vector<8x128xf32>
    %480 = math.tanh %479 : vector<8x128xf32>
    %481 = arith.mulf %476, %480 : vector<8x128xf32>
    %482 = vector.extract_strided_slice %11 {offsets = [13, 0, 0], sizes = [1, 8, 512], strides = [1, 1, 1]} : vector<16x8x512xf32> to vector<1x8x512xf32>
    %483 = vector.shape_cast %482 : vector<1x8x512xf32> to vector<8x512xf32>
    %484 = arith.truncf %481 : vector<8x128xf32> to vector<8x128xbf16>
    %cst_143 = arith.constant dense<0.000000e+00> : vector<8x512xf32>
    %485 = tpu.matmul %484, %3, %cst_143 {dimension_numbers = #tpu.dot_dimension_numbers<[1], [0], [0], [1], [0, 0, 1, 1], [], []>} : vector<8x128xbf16>, vector<128x512xbf16>, vector<8x512xf32> -> vector<8x512xf32>
    %486 = arith.addf %483, %485 : vector<8x512xf32>
    %487 = vector.extract_strided_slice %486 {offsets = [0, 0], sizes = [8, 128], strides = [1, 1]} : vector<8x512xf32> to vector<8x128xf32>
    %cst_144 = arith.constant 5.000000e-01 : f32
    %488 = vector.broadcast %cst_144 : f32 to vector<8x128xf32>
    %489 = arith.mulf %488, %487 : vector<8x128xf32>
    %490 = math.tanh %489 : vector<8x128xf32>
    %cst_145 = arith.constant 5.000000e-01 : f32
    %491 = vector.broadcast %cst_145 : f32 to vector<8x128xf32>
    %492 = arith.mulf %491, %490 : vector<8x128xf32>
    %cst_146 = arith.constant 5.000000e-01 : f32
    %493 = vector.broadcast %cst_146 : f32 to vector<8x128xf32>
    %494 = arith.addf %492, %493 : vector<8x128xf32>
    %495 = vector.extract_strided_slice %486 {offsets = [0, 128], sizes = [8, 128], strides = [1, 1]} : vector<8x512xf32> to vector<8x128xf32>
    %cst_147 = arith.constant 5.000000e-01 : f32
    %496 = vector.broadcast %cst_147 : f32 to vector<8x128xf32>
    %497 = arith.mulf %496, %495 : vector<8x128xf32>
    %498 = math.tanh %497 : vector<8x128xf32>
    %cst_148 = arith.constant 5.000000e-01 : f32
    %499 = vector.broadcast %cst_148 : f32 to vector<8x128xf32>
    %500 = arith.mulf %499, %498 : vector<8x128xf32>
    %cst_149 = arith.constant 5.000000e-01 : f32
    %501 = vector.broadcast %cst_149 : f32 to vector<8x128xf32>
    %502 = arith.addf %500, %501 : vector<8x128xf32>
    %503 = vector.extract_strided_slice %486 {offsets = [0, 256], sizes = [8, 128], strides = [1, 1]} : vector<8x512xf32> to vector<8x128xf32>
    %504 = math.tanh %503 : vector<8x128xf32>
    %505 = vector.extract_strided_slice %486 {offsets = [0, 384], sizes = [8, 128], strides = [1, 1]} : vector<8x512xf32> to vector<8x128xf32>
    %cst_150 = arith.constant 5.000000e-01 : f32
    %506 = vector.broadcast %cst_150 : f32 to vector<8x128xf32>
    %507 = arith.mulf %506, %505 : vector<8x128xf32>
    %508 = math.tanh %507 : vector<8x128xf32>
    %cst_151 = arith.constant 5.000000e-01 : f32
    %509 = vector.broadcast %cst_151 : f32 to vector<8x128xf32>
    %510 = arith.mulf %509, %508 : vector<8x128xf32>
    %cst_152 = arith.constant 5.000000e-01 : f32
    %511 = vector.broadcast %cst_152 : f32 to vector<8x128xf32>
    %512 = arith.addf %510, %511 : vector<8x128xf32>
    %513 = arith.mulf %502, %479 : vector<8x128xf32>
    %514 = arith.mulf %494, %504 : vector<8x128xf32>
    %515 = arith.addf %513, %514 : vector<8x128xf32>
    %516 = math.tanh %515 : vector<8x128xf32>
    %517 = arith.mulf %512, %516 : vector<8x128xf32>
    %518 = vector.extract_strided_slice %11 {offsets = [14, 0, 0], sizes = [1, 8, 512], strides = [1, 1, 1]} : vector<16x8x512xf32> to vector<1x8x512xf32>
    %519 = vector.shape_cast %518 : vector<1x8x512xf32> to vector<8x512xf32>
    %520 = arith.truncf %517 : vector<8x128xf32> to vector<8x128xbf16>
    %cst_153 = arith.constant dense<0.000000e+00> : vector<8x512xf32>
    %521 = tpu.matmul %520, %3, %cst_153 {dimension_numbers = #tpu.dot_dimension_numbers<[1], [0], [0], [1], [0, 0, 1, 1], [], []>} : vector<8x128xbf16>, vector<128x512xbf16>, vector<8x512xf32> -> vector<8x512xf32>
    %522 = arith.addf %519, %521 : vector<8x512xf32>
    %523 = vector.extract_strided_slice %522 {offsets = [0, 0], sizes = [8, 128], strides = [1, 1]} : vector<8x512xf32> to vector<8x128xf32>
    %cst_154 = arith.constant 5.000000e-01 : f32
    %524 = vector.broadcast %cst_154 : f32 to vector<8x128xf32>
    %525 = arith.mulf %524, %523 : vector<8x128xf32>
    %526 = math.tanh %525 : vector<8x128xf32>
    %cst_155 = arith.constant 5.000000e-01 : f32
    %527 = vector.broadcast %cst_155 : f32 to vector<8x128xf32>
    %528 = arith.mulf %527, %526 : vector<8x128xf32>
    %cst_156 = arith.constant 5.000000e-01 : f32
    %529 = vector.broadcast %cst_156 : f32 to vector<8x128xf32>
    %530 = arith.addf %528, %529 : vector<8x128xf32>
    %531 = vector.extract_strided_slice %522 {offsets = [0, 128], sizes = [8, 128], strides = [1, 1]} : vector<8x512xf32> to vector<8x128xf32>
    %cst_157 = arith.constant 5.000000e-01 : f32
    %532 = vector.broadcast %cst_157 : f32 to vector<8x128xf32>
    %533 = arith.mulf %532, %531 : vector<8x128xf32>
    %534 = math.tanh %533 : vector<8x128xf32>
    %cst_158 = arith.constant 5.000000e-01 : f32
    %535 = vector.broadcast %cst_158 : f32 to vector<8x128xf32>
    %536 = arith.mulf %535, %534 : vector<8x128xf32>
    %cst_159 = arith.constant 5.000000e-01 : f32
    %537 = vector.broadcast %cst_159 : f32 to vector<8x128xf32>
    %538 = arith.addf %536, %537 : vector<8x128xf32>
    %539 = vector.extract_strided_slice %522 {offsets = [0, 256], sizes = [8, 128], strides = [1, 1]} : vector<8x512xf32> to vector<8x128xf32>
    %540 = math.tanh %539 : vector<8x128xf32>
    %541 = vector.extract_strided_slice %522 {offsets = [0, 384], sizes = [8, 128], strides = [1, 1]} : vector<8x512xf32> to vector<8x128xf32>
    %cst_160 = arith.constant 5.000000e-01 : f32
    %542 = vector.broadcast %cst_160 : f32 to vector<8x128xf32>
    %543 = arith.mulf %542, %541 : vector<8x128xf32>
    %544 = math.tanh %543 : vector<8x128xf32>
    %cst_161 = arith.constant 5.000000e-01 : f32
    %545 = vector.broadcast %cst_161 : f32 to vector<8x128xf32>
    %546 = arith.mulf %545, %544 : vector<8x128xf32>
    %cst_162 = arith.constant 5.000000e-01 : f32
    %547 = vector.broadcast %cst_162 : f32 to vector<8x128xf32>
    %548 = arith.addf %546, %547 : vector<8x128xf32>
    %549 = arith.mulf %538, %515 : vector<8x128xf32>
    %550 = arith.mulf %530, %540 : vector<8x128xf32>
    %551 = arith.addf %549, %550 : vector<8x128xf32>
    %552 = math.tanh %551 : vector<8x128xf32>
    %553 = arith.mulf %548, %552 : vector<8x128xf32>
    %554 = vector.extract_strided_slice %11 {offsets = [15, 0, 0], sizes = [1, 8, 512], strides = [1, 1, 1]} : vector<16x8x512xf32> to vector<1x8x512xf32>
    %555 = vector.shape_cast %554 : vector<1x8x512xf32> to vector<8x512xf32>
    %556 = arith.truncf %553 : vector<8x128xf32> to vector<8x128xbf16>
    %cst_163 = arith.constant dense<0.000000e+00> : vector<8x512xf32>
    %557 = tpu.matmul %556, %3, %cst_163 {dimension_numbers = #tpu.dot_dimension_numbers<[1], [0], [0], [1], [0, 0, 1, 1], [], []>} : vector<8x128xbf16>, vector<128x512xbf16>, vector<8x512xf32> -> vector<8x512xf32>
    %558 = arith.addf %555, %557 : vector<8x512xf32>
    %559 = vector.extract_strided_slice %558 {offsets = [0, 0], sizes = [8, 128], strides = [1, 1]} : vector<8x512xf32> to vector<8x128xf32>
    %cst_164 = arith.constant 5.000000e-01 : f32
    %560 = vector.broadcast %cst_164 : f32 to vector<8x128xf32>
    %561 = arith.mulf %560, %559 : vector<8x128xf32>
    %562 = math.tanh %561 : vector<8x128xf32>
    %cst_165 = arith.constant 5.000000e-01 : f32
    %563 = vector.broadcast %cst_165 : f32 to vector<8x128xf32>
    %564 = arith.mulf %563, %562 : vector<8x128xf32>
    %cst_166 = arith.constant 5.000000e-01 : f32
    %565 = vector.broadcast %cst_166 : f32 to vector<8x128xf32>
    %566 = arith.addf %564, %565 : vector<8x128xf32>
    %567 = vector.extract_strided_slice %558 {offsets = [0, 128], sizes = [8, 128], strides = [1, 1]} : vector<8x512xf32> to vector<8x128xf32>
    %cst_167 = arith.constant 5.000000e-01 : f32
    %568 = vector.broadcast %cst_167 : f32 to vector<8x128xf32>
    %569 = arith.mulf %568, %567 : vector<8x128xf32>
    %570 = math.tanh %569 : vector<8x128xf32>
    %cst_168 = arith.constant 5.000000e-01 : f32
    %571 = vector.broadcast %cst_168 : f32 to vector<8x128xf32>
    %572 = arith.mulf %571, %570 : vector<8x128xf32>
    %cst_169 = arith.constant 5.000000e-01 : f32
    %573 = vector.broadcast %cst_169 : f32 to vector<8x128xf32>
    %574 = arith.addf %572, %573 : vector<8x128xf32>
    %575 = vector.extract_strided_slice %558 {offsets = [0, 256], sizes = [8, 128], strides = [1, 1]} : vector<8x512xf32> to vector<8x128xf32>
    %576 = math.tanh %575 : vector<8x128xf32>
    %577 = vector.extract_strided_slice %558 {offsets = [0, 384], sizes = [8, 128], strides = [1, 1]} : vector<8x512xf32> to vector<8x128xf32>
    %cst_170 = arith.constant 5.000000e-01 : f32
    %578 = vector.broadcast %cst_170 : f32 to vector<8x128xf32>
    %579 = arith.mulf %578, %577 : vector<8x128xf32>
    %580 = math.tanh %579 : vector<8x128xf32>
    %cst_171 = arith.constant 5.000000e-01 : f32
    %581 = vector.broadcast %cst_171 : f32 to vector<8x128xf32>
    %582 = arith.mulf %581, %580 : vector<8x128xf32>
    %cst_172 = arith.constant 5.000000e-01 : f32
    %583 = vector.broadcast %cst_172 : f32 to vector<8x128xf32>
    %584 = arith.addf %582, %583 : vector<8x128xf32>
    %585 = arith.mulf %574, %551 : vector<8x128xf32>
    %586 = arith.mulf %566, %576 : vector<8x128xf32>
    %587 = arith.addf %585, %586 : vector<8x128xf32>
    %588 = math.tanh %587 : vector<8x128xf32>
    %589 = arith.mulf %584, %588 : vector<8x128xf32>
    %c0_173 = arith.constant 0 : index
    %c0_174 = arith.constant 0 : index
    %590 = vector.load %arg14[%c0_173, %c0_174] : memref<8x128xf32, #tpu.memory_space<vmem>>, vector<8x128xf32>
    tpu.vector_store %arg14[%c0_173, %c0_174], %589 {strides = array<i32>} : memref<8x128xf32, #tpu.memory_space<vmem>>, vector<8x128xf32>,
    %c0_175 = arith.constant 0 : index
    %c0_176 = arith.constant 0 : index
    %591 = vector.load %arg15[%c0_175, %c0_176] : memref<8x128xf32, #tpu.memory_space<vmem>>, vector<8x128xf32>
    tpu.vector_store %arg15[%c0_175, %c0_176], %587 {strides = array<i32>} : memref<8x128xf32, #tpu.memory_space<vmem>>, vector<8x128xf32>,
    %c0_i32_177 = arith.constant 0 : i32
    %592 = arith.cmpi eq, %arg1, %c0_i32_177 : i32
    %593 = arith.extui %592 : i1 to i32
    %c0_i32_178 = arith.constant 0 : i32
    %594 = arith.cmpi ne, %593, %c0_i32_178 : i32
    scf.if %594 {
      %595 = arith.truncf %589 : vector<8x128xf32> to vector<8x128xbf16>
      %c0_179 = arith.constant 0 : index
      %c0_180 = arith.constant 0 : index
      %596 = vector.load %arg6[%c0_179, %c0_180] : memref<128x128xbf16, #tpu.memory_space<vmem>>, vector<128x128xbf16>
      %cst_181 = arith.constant dense<0.000000e+00> : vector<8x128xf32>
      %597 = tpu.matmul %595, %596, %cst_181 {dimension_numbers = #tpu.dot_dimension_numbers<[1], [0], [0], [1], [0, 0, 1, 1], [], []>} : vector<8x128xbf16>, vector<128x128xbf16>, vector<8x128xf32> -> vector<8x128xf32>
      %c0_182 = arith.constant 0 : index
      %c0_183 = arith.constant 0 : index
      %598 = vector.load %arg7[%c0_182, %c0_183] : memref<1x128xf32, #tpu.memory_space<vmem>>, vector<1x128xf32>
      %599 = vector.broadcast %598 : vector<1x128xf32> to vector<8x128xf32>
      %600 = arith.addf %597, %599 : vector<8x128xf32>
      %c0_184 = arith.constant 0 : index
      %c0_185 = arith.constant 0 : index
      %601 = vector.load %arg8[%c0_184, %c0_185] : memref<128x128xbf16, #tpu.memory_space<vmem>>, vector<128x128xbf16>
      %cst_186 = arith.constant dense<0.000000e+00> : vector<8x128xf32>
      %602 = tpu.matmul %595, %601, %cst_186 {dimension_numbers = #tpu.dot_dimension_numbers<[1], [0], [0], [1], [0, 0, 1, 1], [], []>} : vector<8x128xbf16>, vector<128x128xbf16>, vector<8x128xf32> -> vector<8x128xf32>
      %c0_187 = arith.constant 0 : index
      %c0_188 = arith.constant 0 : index
      %603 = vector.load %arg9[%c0_187, %c0_188] : memref<1x128xf32, #tpu.memory_space<vmem>>, vector<1x128xf32>
      %604 = vector.broadcast %603 : vector<1x128xf32> to vector<8x128xf32>
      %605 = arith.addf %602, %604 : vector<8x128xf32>
      %c0_189 = arith.constant 0 : index
      %c0_190 = arith.constant 0 : index
      %606 = vector.load %arg11[%c0_189, %c0_190] : memref<8x128xf32, #tpu.memory_space<vmem>>, vector<8x128xf32>
      tpu.vector_store %arg11[%c0_189, %c0_190], %600 {strides = array<i32>} : memref<8x128xf32, #tpu.memory_space<vmem>>, vector<8x128xf32>,
      %c0_191 = arith.constant 0 : index
      %c0_192 = arith.constant 0 : index
      %607 = vector.load %arg12[%c0_191, %c0_192] : memref<8x128xf32, #tpu.memory_space<vmem>>, vector<8x128xf32>
      tpu.vector_store %arg12[%c0_191, %c0_192], %605 {strides = array<i32>} : memref<8x128xf32, #tpu.memory_space<vmem>>, vector<8x128xf32>,
      %c0_193 = arith.constant 0 : index
      %c0_194 = arith.constant 0 : index
      %608 = vector.load %arg10[%c0_193, %c0_194] : memref<8x128xf32, #tpu.memory_space<vmem>>, vector<8x128xf32>
      %cst_195 = arith.constant 5.000000e-01 : f32
      %609 = vector.broadcast %cst_195 : f32 to vector<8x128xf32>
      %610 = arith.mulf %609, %605 : vector<8x128xf32>
      %611 = math.exp %610 : vector<8x128xf32>
      %612 = arith.mulf %608, %611 : vector<8x128xf32>
      %613 = arith.addf %600, %612 : vector<8x128xf32>
      %c0_196 = arith.constant 0 : index
      %c0_197 = arith.constant 0 : index
      %614 = vector.load %arg13[%c0_196, %c0_197] : memref<8x128xf32, #tpu.memory_space<vmem>>, vector<8x128xf32>
      tpu.vector_store %arg13[%c0_196, %c0_197], %613 {strides = array<i32>} : memref<8x128xf32, #tpu.memory_space<vmem>>, vector<8x128xf32>,
    } else {
    }
    return
  }
  func.func @transform_0(%arg0: i32, %arg1: i32) -> (i32, i32, i32) {
    %c0_i32 = arith.constant 0 : i32
    %c0_i32_0 = arith.constant 0 : i32
    return %arg1, %arg0, %c0_i32 : i32, i32, i32
  }
  func.func @transform_1(%arg0: i32, %arg1: i32) -> (i32, i32) {
    %c0_i32 = arith.constant 0 : i32
    %c0_i32_0 = arith.constant 0 : i32
    %c0_i32_1 = arith.constant 0 : i32
    return %c0_i32, %c0_i32_0 : i32, i32
  }
  func.func @transform_2(%arg0: i32, %arg1: i32) -> (i32, i32) {
    %c0_i32 = arith.constant 0 : i32
    %c0_i32_0 = arith.constant 0 : i32
    %c0_i32_1 = arith.constant 0 : i32
    return %c0_i32, %c0_i32_0 : i32, i32
  }
  func.func @transform_3(%arg0: i32, %arg1: i32) -> (i32, i32) {
    %c0_i32 = arith.constant 0 : i32
    %c0_i32_0 = arith.constant 0 : i32
    %c0_i32_1 = arith.constant 0 : i32
    return %c0_i32, %c0_i32_0 : i32, i32
  }
  func.func @transform_4(%arg0: i32, %arg1: i32) -> (i32, i32) {
    %c0_i32 = arith.constant 0 : i32
    %c0_i32_0 = arith.constant 0 : i32
    %c0_i32_1 = arith.constant 0 : i32
    return %c0_i32, %c0_i32_0 : i32, i32
  }
  func.func @transform_5(%arg0: i32, %arg1: i32) -> (i32, i32) {
    %c0_i32 = arith.constant 0 : i32
    %c0_i32_0 = arith.constant 0 : i32
    %c0_i32_1 = arith.constant 0 : i32
    return %c0_i32, %c0_i32_0 : i32, i32
  }
  func.func @transform_6(%arg0: i32, %arg1: i32) -> (i32, i32) {
    %c0_i32 = arith.constant 0 : i32
    %c0_i32_0 = arith.constant 0 : i32
    %c0_i32_1 = arith.constant 0 : i32
    return %c0_i32, %c0_i32_0 : i32, i32
  }
  func.func @transform_7(%arg0: i32, %arg1: i32) -> (i32, i32) {
    %c0_i32 = arith.constant 0 : i32
    %c0_i32_0 = arith.constant 0 : i32
    %c0_i32_1 = arith.constant 0 : i32
    return %c0_i32, %c0_i32_0 : i32, i32
  }
  func.func @transform_8(%arg0: i32, %arg1: i32) -> (i32, i32) {
    %c0_i32 = arith.constant 0 : i32
    %c0_i32_0 = arith.constant 0 : i32
    return %arg0, %c0_i32 : i32, i32
  }
  func.func @transform_9(%arg0: i32, %arg1: i32) -> (i32, i32) {
    %c0_i32 = arith.constant 0 : i32
    %c0_i32_0 = arith.constant 0 : i32
    return %arg0, %c0_i32 : i32, i32
  }
  func.func @transform_10(%arg0: i32, %arg1: i32) -> (i32, i32) {
    %c0_i32 = arith.constant 0 : i32
    %c0_i32_0 = arith.constant 0 : i32
    return %arg0, %c0_i32 : i32, i32
  }
  func.func @transform_11(%arg0: i32, %arg1: i32) -> (i32, i32) {
    %c0_i32 = arith.constant 0 : i32
    %c0_i32_0 = arith.constant 0 : i32
    return %arg0, %c0_i32 : i32, i32
  }
}

</mosaic_0001>

<bundles_post_ra>
// kernel: tpu_custom_call.1
= control target key start
LH: loop header
LB: loop body
LE: loop exit
PB: predicated region body
PF: predicated region fallthrough
CT: control target
= control target key end

     0   :  { %17 = vsyncpa [#allocation5], 0  ;;  %s4662_s0 = inlined_call_operand.hbm [shape: bf16[16,8,64], index: 0, kind: input, shape index: {}]   ;;  %s4663_s1 = inlined_call_operand.hbm [shape: bf16[64,512], index: 1, kind: input, shape index: {}]   ;;  %s4664_s2 = inlined_call_operand.hbm [shape: bf16[128,512], index: 2, kind: input, shape index: {}]   ;;  %s4665_s3 = inlined_call_operand.vmem [shape: f32[1,512], index: 3, kind: input, shape index: {}]   ;;  %s4666_s4 = inlined_call_operand.hbm [shape: bf16[128,128], index: 4, kind: input, shape index: {}]   ;;  %s4667_s5 = inlined_call_operand.vmem [shape: f32[1,128], index: 5, kind: input, shape index: {}]   ;;  %s4668_s6 = inlined_call_operand.hbm [shape: bf16[128,128], index: 6, kind: input, shape index: {}]   ;;  %s4669_s7 = inlined_call_operand.vmem [shape: f32[1,128], index: 7, kind: input, shape index: {}]   ;;  %s4670_s8 = inlined_call_operand.vmem [shape: f32[8,128], index: 8, kind: input, shape index: {}]   ;;  %s4671_s9 = inlined_call_operand.hbm [shape: f32[8,128], index: 9, kind: output, shape index: {0}]   ;;  %s4672_s10 = inlined_call_operand.hbm [shape: f32[8,128], index: 10, kind: output, shape index: {1}]   ;;  %s4673_s11 = inlined_call_operand.hbm [shape: f32[8,128], index: 11, kind: output, shape index: {2}]  }
   0x1   :  { %18 = vsyncpa [#allocation8], 0 }
   0x2   :  { %19 = vsyncpa [#allocation11], 0 }
   0x3   :  { %20 = vsyncpa [#allocation6], 0 }
   0x4   :  { %21 = vsyncpa [#allocation15], 0  ;;  %s3364_s17 = smov [#allocation7]   ;;  %s3178_s21 = scalar_lea.hbm %s4663_s1, 2048 }
   0x5   :  { %s39_s18 = sshll.u32 %s3364_s17, 4  ;;  %p3179_p0 = scmp.ne.s32.totalorder %s4663_s1, %s3178_s21  ;;  %s40_s18 = int_to_ptr.vmem [resolvable:$true] %s39_s18 }
   0x6   :  { %p3182_p1 = scmp.lt.u32.totalorder %s3178_s21, %s4663_s1 }
   0x8   :  { %p3184_p2 = pnand %p3182_p1, %p3179_p0 }
   0xa   :  { %3187 = shalt.err (!%p3184_p2)
}
   0xb   :  { %s3188_s26 = scalar_lea.vmem %s40_s18, 2048  ;;  %p3193_p4 = scmp.lt.s32.totalorder %s40_s18, %s40_s18 }
   0xc   :  { %p3189_p3 = scmp.ne.s32.totalorder %s40_s18, %s3188_s26  ;;  %p3194_p5 = scmp.lt.s32.totalorder %s3188_s26, %s3188_s26 }
   0xe   :  { %p3195_p6 = por %p3194_p5, %p3193_p4 }
  0x10   :  { %p3196_p7 = pnand %p3195_p6, %p3189_p3 }
  0x12   :  { %3199 = shalt.err (!%p3196_p7)
}
  0x13   :  { %s3365_s27 = smov 256   ;;  %s3366_s28 = smov 16  }
  0x14   :  { %45 = dma.hbm_to_vmem [thread:$0]  %s4663_s1, 2048, %s40_s18, [#allocation8], %s3365_s27, %s3365_s27, %s3366_s28  }
  0x15   :  { %s3367_s12 = smov [#allocation10]   ;;  %s3368_s14 = smov [#allocation4]  }
  0x16   :  { %s65_s13 = sshll.u32 %s3367_s12, 4  ;;  %s27_s15 = sshll.u32 %s3368_s14, 4  ;;  %s66_s13 = int_to_ptr.vmem [resolvable:$true] %s65_s13  ;;  %s28_s15 = int_to_ptr.vmem [resolvable:$true] %s27_s15 }
  0x17   :  { %s3200_s19 = scalar_lea.hbm %s4666_s4, 1024 }
  0x18   :  { %p3201_p8 = scmp.ne.s32.totalorder %s4666_s4, %s3200_s19  ;;  %p3204_p9 = scmp.lt.u32.totalorder %s3200_s19, %s4666_s4 }
  0x1a   :  { %p3206_p10 = pnand %p3204_p9, %p3201_p8 }
  0x1c   :  { %3209 = shalt.err (!%p3206_p10)
}
  0x1d   :  { %s3210_s1 = scalar_lea.vmem %s66_s13, 1024  ;;  %p3215_p12 = scmp.lt.s32.totalorder %s66_s13, %s66_s13 }
  0x1e   :  { %p3211_p11 = scmp.ne.s32.totalorder %s66_s13, %s3210_s1  ;;  %p3216_p13 = scmp.lt.s32.totalorder %s3210_s1, %s3210_s1 }
  0x20   :  { %p3217_p0 = por %p3216_p13, %p3215_p12 }
  0x22   :  { %p3218_p1 = pnand %p3217_p0, %p3211_p11 }
  0x24   :  { %3221 = shalt.err (!%p3218_p1)
}
  0x25   :  { %s3369_s18 = smov 64   ;;  %s3370_s24 = smov 4  }
  0x26   :  { %71 = dma.hbm_to_vmem [thread:$0]  %s4666_s4, 1024, %s66_s13, [#allocation11], %s3369_s18, %s3369_s18, %s3370_s24  }
  0x27   :  { %s3222_s12 = scalar_lea.hbm %s4662_s0, 1024 }
  0x28   :  { %p3223_p2 = scmp.ne.s32.totalorder %s4662_s0, %s3222_s12  ;;  %p3226_p3 = scmp.lt.u32.totalorder %s3222_s12, %s4662_s0 }
  0x2a   :  { %p3228_p4 = pnand %p3226_p3, %p3223_p2 }
  0x2c   :  { %3231 = shalt.err (!%p3228_p4)
}
  0x2d   :  { %s3232_s20 = scalar_lea.vmem %s28_s15, 1024  ;;  %p3237_p6 = scmp.lt.s32.totalorder %s28_s15, %s28_s15 }
  0x2e   :  { %p3233_p5 = scmp.ne.s32.totalorder %s28_s15, %s3232_s20  ;;  %p3238_p7 = scmp.lt.s32.totalorder %s3232_s20, %s3232_s20 }
  0x30   :  { %p3239_p8 = por %p3238_p7, %p3237_p6 }
  0x32   :  { %p3240_p9 = pnand %p3239_p8, %p3233_p5 }
  0x34   :  { %3243 = shalt.err (!%p3240_p9)
}
  0x35   :  { %33 = dma.hbm_to_vmem [thread:$0]  %s4662_s0, 1024, %s28_s15, [#allocation5], %s3369_s18, %s3369_s18, %s3370_s24  }
  0x36   :  { %s3371_s21 = smov [#allocation9]   ;;  %s3372_s23 = smov [#allocation12]  }
  0x37   :  { %s51_s22 = sshll.u32 %s3371_s21, 4  ;;  %s79_s1 = sshll.u32 %s3372_s23, 4  ;;  %s52_s22 = int_to_ptr.vmem [resolvable:$true] %s51_s22  ;;  %s80_s1 = int_to_ptr.vmem [resolvable:$true] %s79_s1 }
  0x38   :  { %s3244_s29 = scalar_lea.hbm %s4664_s2, 4096 }
  0x39   :  { %p3245_p10 = scmp.ne.s32.totalorder %s4664_s2, %s3244_s29  ;;  %p3248_p11 = scmp.lt.u32.totalorder %s3244_s29, %s4664_s2 }
  0x3b   :  { %p3250_p12 = pnand %p3248_p11, %p3245_p10 }
  0x3d   :  { %3253 = shalt.err (!%p3250_p12)
}
  0x3e   :  { %s3254_s0 = scalar_lea.vmem %s52_s22, 4096  ;;  %p3259_p0 = scmp.lt.s32.totalorder %s52_s22, %s52_s22 }
  0x3f   :  { %p3255_p13 = scmp.ne.s32.totalorder %s52_s22, %s3254_s0  ;;  %p3260_p1 = scmp.lt.s32.totalorder %s3254_s0, %s3254_s0 }
  0x41   :  { %p3261_p2 = por %p3260_p1, %p3259_p0 }
  0x43   :  { %p3262_p3 = pnand %p3261_p2, %p3255_p13 }
  0x45   :  { %3265 = shalt.err (!%p3262_p3)
}
  0x46   :  { %57 = dma.hbm_to_vmem [thread:$0]  %s4664_s2, 4096, %s52_s22, [#allocation8], %s3365_s27, %s3365_s27, %s3366_s28  }
  0x47   :  { %s3266_s4 = scalar_lea.hbm %s4668_s6, 1024 }
  0x48   :  { %p3267_p4 = scmp.ne.s32.totalorder %s4668_s6, %s3266_s4  ;;  %p3270_p5 = scmp.lt.u32.totalorder %s3266_s4, %s4668_s6 }
  0x4a   :  { %p3272_p6 = pnand %p3270_p5, %p3267_p4 }
  0x4c   :  { %3275 = shalt.err (!%p3272_p6)
}
  0x4d   :  { %s3276_s26 = scalar_lea.vmem %s80_s1, 1024  ;;  %p3281_p8 = scmp.lt.s32.totalorder %s80_s1, %s80_s1 }
  0x4e   :  { %p3277_p7 = scmp.ne.s32.totalorder %s80_s1, %s3276_s26  ;;  %p3282_p9 = scmp.lt.s32.totalorder %s3276_s26, %s3276_s26 }
  0x50   :  { %p3283_p10 = por %p3282_p9, %p3281_p8 }
  0x52   :  { %p3284_p11 = pnand %p3283_p10, %p3277_p7 }
  0x54   :  { %3287 = shalt.err (!%p3284_p11)
}
  0x55   :  { %85 = dma.hbm_to_vmem [thread:$0]  %s4668_s6, 1024, %s80_s1, [#allocation11], %s3369_s18, %s3369_s18, %s3370_s24  }
  0x56   :  { %3354 = dma.done.wait [#allocation5], 1024  }
  0x57   :  { %3355 = vsyncadd [#allocation5], 4294966272 }
  0x58   :  { %3356 = dma.done.wait [#allocation8], 6144  }
  0x59   :  { %3357 = vsyncadd [#allocation8], 4294961152 }
  0x5a   :  { %3358 = dma.done.wait [#allocation11], 2048  }
  0x5b   :  { %3359 = vsyncadd [#allocation11], 4294965248  ;;  %v4674_v0 = vmov 0   ;;  %v2856_v1 = vld [vmem:[#allocation7 + $0x4] ss:$16 sps:$4 sm:$0xff]   ;;  %vm318_vm0 = vcmask 523264   ;;  %v178_v58 = vlaneseq }
  0x5c   :  { %375 = vmatprep.mubr.bf16.mxu0 %v4674_v0  ;;  %488 = vmatprep.mubr.bf16.mxu1 %v4674_v0  ;;  %v2858_v2 = vld [vmem:[#allocation7 + $0xc] ss:$16 sps:$4 sm:$0xff]   ;;  %v2860_v3 = vld [vmem:[#allocation7] ss:$16 sps:$4 sm:$0xff]   ;;  %v2861_v4 = vld [vmem:[#allocation7 + $0x8] ss:$16 sps:$4 sm:$0xff]  }
  0x5d   :  { %343 = vmatprep.subr.bf16.mxu0 %v2856_v1  ;;  %456 = vmatprep.subr.bf16.mxu1 %v2858_v2  ;;  %v2862_v5 = vld [vmem:[#allocation7 + $0x24] ss:$16 sps:$4 sm:$0xff]   ;;  %v2864_v6 = vld [vmem:[#allocation7 + $0x2c] ss:$16 sps:$4 sm:$0xff]   ;;  %v2866_v7 = vld [vmem:[#allocation7 + $0x20] ss:$16 sps:$4 sm:$0xff]  }
  0x5e   :  { %344 = vmatpush1.bf16.msra.mxu0 %v2860_v3  ;;  %457 = vmatpush1.bf16.msra.mxu1 %v2861_v4  ;;  %v2867_v8 = vld [vmem:[#allocation7 + $0x28] ss:$16 sps:$4 sm:$0xff]   ;;  %v2868_v9 = vld [vmem:[#allocation7 + $0x44] ss:$16 sps:$4 sm:$0xff]   ;;  %v2870_v10 = vld [vmem:[#allocation7 + $0x4c] ss:$16 sps:$4 sm:$0xff]  }
  0x5f   :  { %345 = vmatprep.subr.bf16.mxu0 %v2862_v5  ;;  %458 = vmatprep.subr.bf16.mxu1 %v2864_v6  ;;  %v2872_v11 = vld [vmem:[#allocation7 + $0x40] ss:$16 sps:$4 sm:$0xff]   ;;  %v2873_v12 = vld [vmem:[#allocation7 + $0x48] ss:$16 sps:$4 sm:$0xff]   ;;  %v2874_v13 = vld [vmem:[#allocation7 + $0x64] ss:$16 sps:$4 sm:$0xff]  }
  0x60   :  { %v2876_v14 = vld [vmem:[#allocation7 + $0x6c] ss:$16 sps:$4 sm:$0xff]   ;;  %v2878_v15 = vld [vmem:[#allocation7 + $0x60] ss:$16 sps:$4 sm:$0xff]   ;;  %v2879_v16 = vld [vmem:[#allocation7 + $0x68] ss:$16 sps:$4 sm:$0xff]  }
  0x61   :  { %v3517_v17 = vld [vmem:[#allocation9 + $0x4] ss:$16 sps:$4 sm:$0xff]   ;;  %v3519_v18 = vld [vmem:[#allocation9 + $0xc] ss:$16 sps:$4 sm:$0xff]   ;;  %v3521_v20 = vld [vmem:[#allocation9] ss:$16 sps:$4 sm:$0xff]  }
  0x62   :  { %346 = vmatpush1.bf16.msra.mxu0 %v2866_v7  ;;  %459 = vmatpush1.bf16.msra.mxu1 %v2867_v8  ;;  %v2880_v19 = vld [vmem:[#allocation4] sm:$0xff]   ;;  %v3527_v22 = vld [vmem:[#allocation9 + $0x8] ss:$16 sps:$4 sm:$0xff]   ;;  %v3531_v23 = vld [vmem:[#allocation9 + $0x2c] ss:$16 sps:$4 sm:$0xff]   ;;  %v3374_v57 = vmov 0.0|0.0  }
  0x63   :  { %347 = vmatprep.subr.bf16.mxu0 %v2868_v9  ;;  %460 = vmatprep.subr.bf16.mxu1 %v2870_v10  ;;  %v3525_v21 = vld [vmem:[#allocation9 + $0x24] ss:$16 sps:$4 sm:$0xff]   ;;  %v3535_v24 = vld [vmem:[#allocation9 + $0x20] ss:$16 sps:$4 sm:$0xff]   ;;  %v3542_v26 = vld [vmem:[#allocation9 + $0x28] ss:$16 sps:$4 sm:$0xff]  }
  0x64   :  { %v3539_v25 = vld [vmem:[#allocation9 + $0x44] ss:$16 sps:$4 sm:$0xff]   ;;  %v2886_v27 = vld [vmem:[#allocation4 + $0x8] sm:$0xff]   ;;  %v3545_v28 = vld [vmem:[#allocation9 + $0x40] ss:$16 sps:$4 sm:$0xff]   ;;  %v179_v59 = vshrl.u32 %v178_v58, 7 }
  0x65   :  { %v3548_v29 = vld [vmem:[#allocation9 + $0x4c] ss:$16 sps:$4 sm:$0xff]   ;;  %v3551_v30 = vld [vmem:[#allocation9 + $0x64] ss:$16 sps:$4 sm:$0xff]   ;;  %v3554_v31 = vld [vmem:[#allocation9 + $0x48] ss:$16 sps:$4 sm:$0xff]  }
  0x66   :  { %348 = vmatpush1.bf16.msra.mxu0 %v2872_v11  ;;  %461 = vmatpush1.bf16.msra.mxu1 %v2873_v12  ;;  %v3558_v32 = vld [vmem:[#allocation9 + $0x6c] ss:$16 sps:$4 sm:$0xff]   ;;  %v3564_v33 = vld [vmem:[#allocation9 + $0x60] ss:$16 sps:$4 sm:$0xff]   ;;  %v3568_v34 = vld [vmem:[#allocation9 + $0x84] ss:$16 sps:$4 sm:$0xff]  }
  0x67   :  { %349 = vmatprep.subr.bf16.mxu0 %v2874_v13  ;;  %462 = vmatprep.subr.bf16.mxu1 %v2876_v14  ;;  %v3570_v35 = vld [vmem:[#allocation9 + $0x68] ss:$16 sps:$4 sm:$0xff]   ;;  %v2893_v36 = vld [vmem:[#allocation4 + $0x10] sm:$0xff]   ;;  %v3576_v38 = vld [vmem:[#allocation9 + $0x8c] ss:$16 sps:$4 sm:$0xff]   ;;  %v188_v60 = vsub.s32 2, %v179_v59 }
  0x68   :  { %v3573_v37 = vld [vmem:[#allocation9 + $0x80] ss:$16 sps:$4 sm:$0xff]   ;;  %v3580_v39 = vld [vmem:[#allocation9 + $0xa4] ss:$16 sps:$4 sm:$0xff]   ;;  %v3582_v40 = vld [vmem:[#allocation9 + $0x88] ss:$16 sps:$4 sm:$0xff]  }
  0x69   :  { %v3586_v41 = vld [vmem:[#allocation9 + $0xac] ss:$16 sps:$4 sm:$0xff]   ;;  %v3592_v43 = vld [vmem:[#allocation9 + $0xa0] ss:$16 sps:$4 sm:$0xff]   ;;  %v3596_v44 = vld [vmem:[#allocation9 + $0xc4] ss:$16 sps:$4 sm:$0xff]  }
  0x6a   :  { %350 = vmatpush1.bf16.msra.mxu0 %v2878_v15  ;;  %463 = vmatpush1.bf16.msra.mxu1 %v2879_v16  ;;  %v2900_v42 = vld [vmem:[#allocation4 + $0x18] sm:$0xff]   ;;  %v3601_v46 = vld [vmem:[#allocation9 + $0xc0] ss:$16 sps:$4 sm:$0xff]   ;;  %v3605_v48 = vld [vmem:[#allocation9 + $0xe4] ss:$16 sps:$4 sm:$0xff]   ;;  %v192_v61 = vsub.s32 3, %v179_v59 }
  0x6b   :  { %732 = vmatprep.subr.bf16.mxu0 %v3517_v17  ;;  %773 = vmatprep.subr.bf16.mxu1 %v3519_v18  ;;  %v3598_v45 = vld [vmem:[#allocation9 + $0xa8] ss:$16 sps:$4 sm:$0xff]   ;;  %v3603_v47 = vld [vmem:[#allocation9 + $0xcc] ss:$16 sps:$4 sm:$0xff]   ;;  %v3616_v51 = vld [vmem:[#allocation9 + $0xe0] ss:$16 sps:$4 sm:$0xff]  }
  0x6c   :  { %v3607_v49 = vld [vmem:[#allocation9 + $0xc8] ss:$16 sps:$4 sm:$0xff]   ;;  %v3610_v50 = vld [vmem:[#allocation9 + $0xec] ss:$16 sps:$4 sm:$0xff]   ;;  %v2907_v53 = vld [vmem:[#allocation4 + $0x20] sm:$0xff]   ;;  %v180_v62 = vsub.s32 0, %v179_v59 }
  0x6d   :  { %2716 = vmatmul.mubr.msk.bf16.vlgmr.msra.gmra.mrb[0].mxu0 %vm318_vm0, %v2880_v19  ;;  %2724 = vmatmul.mubr.msk.bf16.vlgmr.msra.gmra.mrb[0].mxu1 %vm318_vm0, %v2880_v19  ;;  %v3620_v52 = vld [vmem:[#allocation9 + $0xe8] ss:$16 sps:$4 sm:$0xff]   ;;  %v2921_v55 = vld [vmem:[#allocation4 + $0x30] sm:$0xff]   ;;  %v144_v63 = vld [vmem:[%s4665_s3] sm:$0xf]  ;;  %v184_v1 = vsub.s32 1, %v179_v59 }
  0x6e   :  { %733 = vmatpush1.bf16.msra.mxu0 %v3521_v20  ;;  %385 = vmatprep.mubr.bf16.mxu0 %v4674_v0  ;;  %v2914_v54 = vld [vmem:[#allocation4 + $0x28] sm:$0xff]   ;;  %v2928_v56 = vld [vmem:[#allocation4 + $0x38] sm:$0xff]   ;;  %v3684_v2 = vrot.slane %v144_v63, %v188_v60  ;;  %v3690_v5 = vrot.slane %v144_v63, %v192_v61  ;;  %v3692_v6 = vrot.slane %v144_v63, %v180_v62  ;;  %vm3376_vm1 = vmmov 0   ;;  %s3377_s1 = smov [#allocation14]   ;;  %s3378_s30 = smov [#allocation13]  }
  0x6f   :  { %498 = vmatprep.mubr.bf16.mxu1 %v4674_v0  ;;  %734 = vmatprep.subr.bf16.mxu0 %v3525_v21  ;;  %v3698_v9 = vrot.slane %v144_v63, %v184_v1  ;;  %s2664_s29 = sshll.u32 %s3377_s1, 4  ;;  %s2654_s12 = sshll.u32 %s3378_s30, 4  ;;  %s2665_s29 = int_to_ptr.vmem [resolvable:$true] %s2664_s29  ;;  %s4616_s12 = int_to_ptr.vmem [resolvable:$true] %s2654_s12 }
  0x70   :  { %774 = vmatpush1.bf16.msra.mxu1 %v3527_v22  ;;  %p3293_p13 = scmp.lt.s32.totalorder %s2665_s29, %s2665_s29 }
  0x71   :  { %775 = vmatprep.subr.bf16.mxu1 %v3531_v23 }
  0x72   :  { %735 = vmatpush1.bf16.msra.mxu0 %v3535_v24 }
  0x73   :  { %736 = vmatprep.subr.bf16.mxu0 %v3539_v25 }
  0x74   :  { %776 = vmatpush1.bf16.msra.mxu1 %v3542_v26 }
  0x75   :  { %2717 = vmatmul.mubr.msk.bf16.gmra.mrb[4].mxu0 %vm318_vm0, %v2886_v27  ;;  %2725 = vmatmul.mubr.msk.bf16.gmra.mrb[4].mxu1 %vm318_vm0, %v2886_v27 }
  0x76   :  { %395 = vmatprep.mubr.bf16.mxu0 %v4674_v0  ;;  %508 = vmatprep.mubr.bf16.mxu1 %v4674_v0 }
  0x77   :  { %737 = vmatpush1.bf16.msra.mxu0 %v3545_v28  ;;  %777 = vmatprep.subr.bf16.mxu1 %v3548_v29 }
  0x78   :  { %738 = vmatprep.subr.bf16.mxu0 %v3551_v30  ;;  %778 = vmatpush1.bf16.msra.mxu1 %v3554_v31 }
  0x79   :  { %779 = vmatprep.subr.bf16.mxu1 %v3558_v32 }
  0x7b   :  { %739 = vmatpush1.bf16.msra.mxu0 %v3564_v33 }
  0x7c   :  { %740 = vmatprep.subr.bf16.mxu0 %v3568_v34  ;;  %780 = vmatpush1.bf16.msra.mxu1 %v3570_v35 }
  0x7d   :  { %2718 = vmatmul.mubr.msk.bf16.gmra.mrb[8].mxu0 %vm318_vm0, %v2893_v36  ;;  %2726 = vmatmul.mubr.msk.bf16.gmra.mrb[8].mxu1 %vm318_vm0, %v2893_v36 }
  0x7e   :  { %405 = vmatprep.mubr.bf16.mxu0 %v4674_v0  ;;  %518 = vmatprep.mubr.bf16.mxu1 %v4674_v0 }
  0x7f   :  { %741 = vmatpush1.bf16.msra.mxu0 %v3573_v37  ;;  %781 = vmatprep.subr.bf16.mxu1 %v3576_v38 }
  0x80   :  { %742 = vmatprep.subr.bf16.mxu0 %v3580_v39  ;;  %782 = vmatpush1.bf16.msra.mxu1 %v3582_v40 }
  0x81   :  { %783 = vmatprep.subr.bf16.mxu1 %v3586_v41 }
  0x83   :  { %743 = vmatpush1.bf16.msra.mxu0 %v3592_v43 }
  0x84   :  { %744 = vmatprep.subr.bf16.mxu0 %v3596_v44  ;;  %784 = vmatpush1.bf16.msra.mxu1 %v3598_v45 }
  0x85   :  { %2719 = vmatmul.mubr.msk.bf16.gmra.mrb[12].mxu0 %vm318_vm0, %v2900_v42  ;;  %2727 = vmatmul.mubr.msk.bf16.gmra.mrb[12].mxu1 %vm318_vm0, %v2900_v42 }
  0x86   :  { %415 = vmatprep.mubr.bf16.mxu0 %v4674_v0  ;;  %528 = vmatprep.mubr.bf16.mxu1 %v4674_v0 }
  0x87   :  { %745 = vmatpush1.bf16.msra.mxu0 %v3601_v46  ;;  %785 = vmatprep.subr.bf16.mxu1 %v3603_v47 }
  0x88   :  { %746 = vmatprep.subr.bf16.mxu0 %v3605_v48  ;;  %786 = vmatpush1.bf16.msra.mxu1 %v3607_v49 }
  0x89   :  { %787 = vmatprep.subr.bf16.mxu1 %v3610_v50 }
  0x8b   :  { %747 = vmatpush1.bf16.msra.mxu0 %v3616_v51 }
  0x8c   :  { %788 = vmatpush1.bf16.msra.mxu1 %v3620_v52  ;;  %837 = vmatprep.subr.bf16.mxu0 %v3517_v17 }
  0x8d   :  { %2720 = vmatmul.mubr.msk.bf16.gmra.mrb[16].mxu0 %vm318_vm0, %v2907_v53  ;;  %2728 = vmatmul.mubr.msk.bf16.gmra.mrb[16].mxu1 %vm318_vm0, %v2907_v53 }
  0x8e   :  { %425 = vmatprep.mubr.bf16.mxu0 %v4674_v0  ;;  %538 = vmatprep.mubr.bf16.mxu1 %v4674_v0 }
  0x8f   :  { %878 = vmatprep.subr.bf16.mxu1 %v3519_v18 }
  0x95   :  { %2721 = vmatmul.mubr.msk.bf16.gmra.mrb[20].mxu0 %vm318_vm0, %v2914_v54  ;;  %2729 = vmatmul.mubr.msk.bf16.gmra.mrb[20].mxu1 %vm318_vm0, %v2914_v54 }
  0x96   :  { %435 = vmatprep.mubr.bf16.mxu0 %v4674_v0  ;;  %548 = vmatprep.mubr.bf16.mxu1 %v4674_v0 }
  0x9d   :  { %2722 = vmatmul.mubr.msk.bf16.gmra.mrb[24].mxu0 %vm318_vm0, %v2921_v55  ;;  %2730 = vmatmul.mubr.msk.bf16.gmra.mrb[24].mxu1 %vm318_vm0, %v2921_v55 }
  0x9e   :  { %445 = vmatprep.mubr.bf16.mxu0 %v4674_v0  ;;  %558 = vmatprep.mubr.bf16.mxu1 %v4674_v0 }
  0xa5   :  { %2723 = vmatmul.mubr.msk.bf16.gmra.mrb[28].mxu0 %vm318_vm0, %v2928_v56  ;;  %2731 = vmatmul.mubr.msk.bf16.gmra.mrb[28].mxu1 %vm318_vm0, %v2928_v56 }
  0xa6   :  { %764 = vmatprep.mubr.bf16.mxu0 %v4674_v0  ;;  %805 = vmatprep.mubr.bf16.mxu1 %v4674_v0 }
  0xad   :  { %765 = vmatmul.mubr.bf16.vlgmr.msra.gmra.mrb[32].mxu0 %v3374_v57  ;;  %806 = vmatmul.mubr.bf16.vlgmr.msra.gmra.mrb[32].mxu1 %v3374_v57 }
  0xae   :  { %838 = vmatpush1.bf16.msra.mxu0 %v3521_v20  ;;  %879 = vmatpush1.bf16.msra.mxu1 %v3527_v22 }
  0xaf   :  { %839 = vmatprep.subr.bf16.mxu0 %v3525_v21  ;;  %880 = vmatprep.subr.bf16.mxu1 %v3531_v23 }
  0xb0   :  { %869 = vmatprep.mubr.bf16.mxu0 %v4674_v0  ;;  %910 = vmatprep.mubr.bf16.mxu1 %v4674_v0 }
  0xb2   :  { %840 = vmatpush1.bf16.msra.mxu0 %v3535_v24  ;;  %881 = vmatpush1.bf16.msra.mxu1 %v3542_v26 }
  0xb3   :  { %841 = vmatprep.subr.bf16.mxu0 %v3539_v25  ;;  %882 = vmatprep.subr.bf16.mxu1 %v3548_v29 }
  0xb6   :  { %842 = vmatpush1.bf16.msra.mxu0 %v3545_v28  ;;  %883 = vmatpush1.bf16.msra.mxu1 %v3554_v31 }
  0xb7   :  { %843 = vmatprep.subr.bf16.mxu0 %v3551_v30  ;;  %884 = vmatprep.subr.bf16.mxu1 %v3558_v32 }
  0xba   :  { %844 = vmatpush1.bf16.msra.mxu0 %v3564_v33  ;;  %885 = vmatpush1.bf16.msra.mxu1 %v3570_v35 }
  0xbb   :  { %845 = vmatprep.subr.bf16.mxu0 %v3568_v34  ;;  %886 = vmatprep.subr.bf16.mxu1 %v3576_v38 }
  0xbe   :  { %846 = vmatpush1.bf16.msra.mxu0 %v3573_v37  ;;  %887 = vmatpush1.bf16.msra.mxu1 %v3582_v40 }
  0xbf   :  { %847 = vmatprep.subr.bf16.mxu0 %v3580_v39  ;;  %888 = vmatprep.subr.bf16.mxu1 %v3586_v41 }
  0xc2   :  { %848 = vmatpush1.bf16.msra.mxu0 %v3592_v43  ;;  %889 = vmatpush1.bf16.msra.mxu1 %v3598_v45 }
  0xc3   :  { %849 = vmatprep.subr.bf16.mxu0 %v3596_v44  ;;  %890 = vmatprep.subr.bf16.mxu1 %v3603_v47 }
  0xc6   :  { %850 = vmatpush1.bf16.msra.mxu0 %v3601_v46  ;;  %891 = vmatpush1.bf16.msra.mxu1 %v3607_v49 }
  0xc7   :  { %851 = vmatprep.subr.bf16.mxu0 %v3605_v48  ;;  %892 = vmatprep.subr.bf16.mxu1 %v3610_v50 }
  0xca   :  { %852 = vmatpush1.bf16.msra.mxu0 %v3616_v51  ;;  %893 = vmatpush1.bf16.msra.mxu1 %v3620_v52 }
  0xcb   :  { %942 = vmatprep.subr.bf16.mxu0 %v3517_v17  ;;  %983 = vmatprep.subr.bf16.mxu1 %v3519_v18 }
 0x140   :  { %v3686_v3 = vpop.f32.mrb[0].mxu0  ;;  %v3688_v4 = vpop.f32.mrb[0].mxu1 }
 0x141   :  { %v3694_v7 = vpop.f32.mrb[1].mxu0  ;;  %v3696_v8 = vpop.f32.mrb[1].mxu1 }
 0x142   :  { %v381_v10 = vpop.f32.mrb[2].mxu0  ;;  %v494_v11 = vpop.f32.mrb[2].mxu1 }
 0x143   :  { %v3701_v12 = vadd.f32 %v381_v10, %v3692_v6  ;;  %v383_v13 = vpop.f32.mrb[3].mxu0  ;;  %v3704_v14 = vadd.f32 %v494_v11, %v3684_v2  ;;  %v496_v15 = vpop.f32.mrb[3].mxu1 }
 0x144   :  { %v3707_v16 = vadd.f32 %v383_v13, %v3698_v9  ;;  %v3710_v19 = vadd.f32 %v496_v15, %v3690_v5 }
 0x148   :  { %v387_v27 = vpop.f32.mrb[4].mxu0  ;;  %v500_v36 = vpop.f32.mrb[4].mxu1 }
 0x149   :  { %v3713_v42 = vadd.f32 %v387_v27, %v3692_v6  ;;  %v389_v53 = vpop.f32.mrb[5].mxu0  ;;  %v3716_v54 = vadd.f32 %v500_v36, %v3684_v2  ;;  %v502_v55 = vpop.f32.mrb[5].mxu1 }
 0x14a   :  { %v3719_v56 = vadd.f32 %v389_v53, %v3698_v9  ;;  %v391_v57 = vpop.f32.mrb[6].mxu0  ;;  %v3722_v58 = vadd.f32 %v502_v55, %v3690_v5  ;;  %v504_v59 = vpop.f32.mrb[6].mxu1 }
 0x14b   :  { %v3725_v60 = vadd.f32 %v391_v57, %v3692_v6  ;;  %v393_v61 = vpop.f32.mrb[7].mxu0  ;;  %v3728_v62 = vadd.f32 %v504_v59, %v3684_v2  ;;  %v506_v63 = vpop.f32.mrb[7].mxu1 }
 0x14c   :  { %v3731_v1 = vadd.f32 %v393_v61, %v3698_v9  ;;  %v3734_v10 = vadd.f32 %v506_v63, %v3690_v5 }
 0x14d   :  { %4676 = vst [vmem:[#allocation22_spill] sm:$0xff] %v3728_v62 }
 0x14e   :  { %4677 = vst [vmem:[#allocation23_spill] sm:$0xff] %v3731_v1  ;;  %4678 = vst [vmem:[#allocation24_spill] sm:$0xff] %v3734_v10 }
 0x150   :  { %v397_v11 = vpop.f32.mrb[8].mxu0  ;;  %v510_v13 = vpop.f32.mrb[8].mxu1 }
 0x151   :  { %v3737_v15 = vadd.f32 %v397_v11, %v3692_v6  ;;  %v399_v27 = vpop.f32.mrb[9].mxu0  ;;  %v3740_v36 = vadd.f32 %v510_v13, %v3684_v2  ;;  %v512_v53 = vpop.f32.mrb[9].mxu1 }
 0x152   :  { %v3743_v55 = vadd.f32 %v399_v27, %v3698_v9  ;;  %v401_v57 = vpop.f32.mrb[10].mxu0  ;;  %v3746_v59 = vadd.f32 %v512_v53, %v3690_v5  ;;  %v514_v61 = vpop.f32.mrb[10].mxu1 }
 0x153   :  { %4679 = vst [vmem:[#allocation25_spill] sm:$0xff] %v3737_v15  ;;  %4680 = vst [vmem:[#allocation26_spill] sm:$0xff] %v3740_v36  ;;  %v3749_v63 = vadd.f32 %v401_v57, %v3692_v6  ;;  %v403_v0 = vpop.f32.mrb[11].mxu0  ;;  %v3752_v11 = vadd.f32 %v514_v61, %v3684_v2  ;;  %v516_v15 = vpop.f32.mrb[11].mxu1 }
 0x154   :  { %4681 = vst [vmem:[#allocation27_spill] sm:$0xff] %v3743_v55  ;;  %4682 = vst [vmem:[#allocation28_spill] sm:$0xff] %v3746_v59  ;;  %v3755_v13 = vadd.f32 %v403_v0, %v3698_v9  ;;  %v3758_v36 = vadd.f32 %v516_v15, %v3690_v5 }
 0x155   :  { %4683 = vst [vmem:[#allocation29_spill] sm:$0xff] %v3749_v63  ;;  %4684 = vst [vmem:[#allocation30_spill] sm:$0xff] %v3752_v11 }
 0x156   :  { %4685 = vst [vmem:[#allocation31_spill] sm:$0xff] %v3755_v13  ;;  %4686 = vst [vmem:[#allocation32_spill] sm:$0xff] %v3758_v36 }
 0x158   :  { %v407_v27 = vpop.f32.mrb[12].mxu0  ;;  %v520_v55 = vpop.f32.mrb[12].mxu1 }
 0x159   :  { %v3761_v53 = vadd.f32 %v407_v27, %v3692_v6  ;;  %v409_v59 = vpop.f32.mrb[13].mxu0  ;;  %v3764_v57 = vadd.f32 %v520_v55, %v3684_v2  ;;  %v522_v63 = vpop.f32.mrb[13].mxu1 }
 0x15a   :  { %v3767_v61 = vadd.f32 %v409_v59, %v3698_v9  ;;  %v411_v11 = vpop.f32.mrb[14].mxu0  ;;  %v3770_v0 = vadd.f32 %v522_v63, %v3690_v5  ;;  %v524_v13 = vpop.f32.mrb[14].mxu1 }
 0x15b   :  { %4687 = vst [vmem:[#allocation33_spill] sm:$0xff] %v3761_v53  ;;  %4688 = vst [vmem:[#allocation34_spill] sm:$0xff] %v3764_v57  ;;  %v3773_v15 = vadd.f32 %v411_v11, %v3692_v6  ;;  %v413_v36 = vpop.f32.mrb[15].mxu0  ;;  %v3776_v27 = vadd.f32 %v524_v13, %v3684_v2  ;;  %v526_v53 = vpop.f32.mrb[15].mxu1 }
 0x15c   :  { %4689 = vst [vmem:[#allocation35_spill] sm:$0xff] %v3767_v61  ;;  %4690 = vst [vmem:[#allocation36_spill] sm:$0xff] %v3770_v0  ;;  %v3779_v55 = vadd.f32 %v413_v36, %v3698_v9  ;;  %v3782_v57 = vadd.f32 %v526_v53, %v3690_v5 }
 0x15d   :  { %4691 = vst [vmem:[#allocation37_spill] sm:$0xff] %v3773_v15  ;;  %4692 = vst [vmem:[#allocation38_spill] sm:$0xff] %v3776_v27 }
 0x15e   :  { %4693 = vst [vmem:[#allocation39_spill] sm:$0xff] %v3779_v55  ;;  %4694 = vst [vmem:[#allocation40_spill] sm:$0xff] %v3782_v57 }
 0x160   :  { %v417_v59 = vpop.f32.mrb[16].mxu0  ;;  %v530_v61 = vpop.f32.mrb[16].mxu1 }
 0x161   :  { %v3785_v63 = vadd.f32 %v417_v59, %v3692_v6  ;;  %v419_v0 = vpop.f32.mrb[17].mxu0  ;;  %v3788_v11 = vadd.f32 %v530_v61, %v3684_v2  ;;  %v532_v15 = vpop.f32.mrb[17].mxu1 }
 0x162   :  { %v3791_v13 = vadd.f32 %v419_v0, %v3698_v9  ;;  %v421_v27 = vpop.f32.mrb[18].mxu0  ;;  %v3794_v36 = vadd.f32 %v532_v15, %v3690_v5  ;;  %v534_v55 = vpop.f32.mrb[18].mxu1 }
 0x163   :  { %4695 = vst [vmem:[#allocation41_spill] sm:$0xff] %v3785_v63  ;;  %4696 = vst [vmem:[#allocation42_spill] sm:$0xff] %v3788_v11  ;;  %v3797_v53 = vadd.f32 %v421_v27, %v3692_v6  ;;  %v423_v57 = vpop.f32.mrb[19].mxu0  ;;  %v3800_v59 = vadd.f32 %v534_v55, %v3684_v2  ;;  %v536_v63 = vpop.f32.mrb[19].mxu1 }
 0x164   :  { %4697 = vst [vmem:[#allocation43_spill] sm:$0xff] %v3791_v13  ;;  %4698 = vst [vmem:[#allocation44_spill] sm:$0xff] %v3794_v36  ;;  %v3803_v61 = vadd.f32 %v423_v57, %v3698_v9  ;;  %v3806_v11 = vadd.f32 %v536_v63, %v3690_v5 }
 0x165   :  { %4699 = vst [vmem:[#allocation45_spill] sm:$0xff] %v3797_v53  ;;  %4700 = vst [vmem:[#allocation46_spill] sm:$0xff] %v3800_v59 }
 0x166   :  { %4701 = vst [vmem:[#allocation47_spill] sm:$0xff] %v3803_v61  ;;  %4702 = vst [vmem:[#allocation48_spill] sm:$0xff] %v3806_v11 }
 0x168   :  { %v427_v0 = vpop.f32.mrb[20].mxu0  ;;  %v540_v13 = vpop.f32.mrb[20].mxu1 }
 0x169   :  { %v3809_v15 = vadd.f32 %v427_v0, %v3692_v6  ;;  %v429_v36 = vpop.f32.mrb[21].mxu0  ;;  %v3812_v27 = vadd.f32 %v540_v13, %v3684_v2  ;;  %v542_v53 = vpop.f32.mrb[21].mxu1 }
 0x16a   :  { %v3815_v55 = vadd.f32 %v429_v36, %v3698_v9  ;;  %v431_v59 = vpop.f32.mrb[22].mxu0  ;;  %v3818_v57 = vadd.f32 %v542_v53, %v3690_v5  ;;  %v544_v61 = vpop.f32.mrb[22].mxu1 }
 0x16b   :  { %4703 = vst [vmem:[#allocation49_spill] sm:$0xff] %v3809_v15  ;;  %4704 = vst [vmem:[#allocation50_spill] sm:$0xff] %v3812_v27  ;;  %v3821_v63 = vadd.f32 %v431_v59, %v3692_v6  ;;  %v433_v11 = vpop.f32.mrb[23].mxu0  ;;  %v3824_v0 = vadd.f32 %v544_v61, %v3684_v2  ;;  %v546_v15 = vpop.f32.mrb[23].mxu1 }
 0x16c   :  { %4705 = vst [vmem:[#allocation51_spill] sm:$0xff] %v3815_v55  ;;  %4706 = vst [vmem:[#allocation52_spill] sm:$0xff] %v3818_v57  ;;  %v3827_v13 = vadd.f32 %v433_v11, %v3698_v9  ;;  %v3830_v27 = vadd.f32 %v546_v15, %v3690_v5 }
 0x16d   :  { %4707 = vst [vmem:[#allocation53_spill] sm:$0xff] %v3821_v63  ;;  %4708 = vst [vmem:[#allocation54_spill] sm:$0xff] %v3824_v0 }
 0x16e   :  { %4709 = vst [vmem:[#allocation55_spill] sm:$0xff] %v3827_v13  ;;  %4710 = vst [vmem:[#allocation56_spill] sm:$0xff] %v3830_v27 }
 0x170   :  { %v437_v36 = vpop.f32.mrb[24].mxu0  ;;  %v550_v55 = vpop.f32.mrb[24].mxu1 }
 0x171   :  { %v3833_v53 = vadd.f32 %v437_v36, %v3692_v6  ;;  %v439_v57 = vpop.f32.mrb[25].mxu0  ;;  %v3836_v59 = vadd.f32 %v550_v55, %v3684_v2  ;;  %v552_v63 = vpop.f32.mrb[25].mxu1 }
 0x172   :  { %v3839_v61 = vadd.f32 %v439_v57, %v3698_v9  ;;  %v441_v0 = vpop.f32.mrb[26].mxu0  ;;  %v3842_v11 = vadd.f32 %v552_v63, %v3690_v5  ;;  %v554_v13 = vpop.f32.mrb[26].mxu1 }
 0x173   :  { %4711 = vst [vmem:[#allocation57_spill] sm:$0xff] %v3833_v53  ;;  %4712 = vst [vmem:[#allocation58_spill] sm:$0xff] %v3836_v59  ;;  %v3845_v15 = vadd.f32 %v441_v0, %v3692_v6  ;;  %v443_v27 = vpop.f32.mrb[27].mxu0  ;;  %v3848_v36 = vadd.f32 %v554_v13, %v3684_v2  ;;  %v556_v53 = vpop.f32.mrb[27].mxu1 }
 0x174   :  { %4713 = vst [vmem:[#allocation59_spill] sm:$0xff] %v3839_v61  ;;  %4714 = vst [vmem:[#allocation60_spill] sm:$0xff] %v3842_v11  ;;  %v3851_v55 = vadd.f32 %v443_v27, %v3698_v9  ;;  %v3854_v59 = vadd.f32 %v556_v53, %v3690_v5 }
 0x175   :  { %4715 = vst [vmem:[#allocation61_spill] sm:$0xff] %v3845_v15  ;;  %4716 = vst [vmem:[#allocation62_spill] sm:$0xff] %v3848_v36 }
 0x176   :  { %4717 = vst [vmem:[#allocation63_spill] sm:$0xff] %v3851_v55  ;;  %4718 = vst [vmem:[#allocation64_spill] sm:$0xff] %v3854_v59 }
 0x178   :  { %v447_v57 = vpop.f32.mrb[28].mxu0  ;;  %v560_v61 = vpop.f32.mrb[28].mxu1 }
 0x179   :  { %v3857_v63 = vadd.f32 %v447_v57, %v3692_v6  ;;  %v449_v11 = vpop.f32.mrb[29].mxu0  ;;  %v3860_v0 = vadd.f32 %v560_v61, %v3684_v2  ;;  %v562_v15 = vpop.f32.mrb[29].mxu1 }
 0x17a   :  { %v3863_v13 = vadd.f32 %v449_v11, %v3698_v9  ;;  %v451_v36 = vpop.f32.mrb[30].mxu0  ;;  %v3866_v27 = vadd.f32 %v562_v15, %v3690_v5  ;;  %v564_v55 = vpop.f32.mrb[30].mxu1  ;;  %v378_v11 = vadd.f32 %v3686_v3, %v3692_v6  ;;  %v491_v15 = vadd.f32 %v3688_v4, %v3684_v2 }
 0x17b   :  { %4719 = vst [vmem:[#allocation65_spill] sm:$0xff] %v3857_v63  ;;  %4720 = vst [vmem:[#allocation66_spill] sm:$0xff] %v3860_v0  ;;  %v3869_v53 = vadd.f32 %v451_v36, %v3692_v6  ;;  %v453_v59 = vpop.f32.mrb[31].mxu0  ;;  %v3872_v57 = vadd.f32 %v564_v55, %v3684_v2  ;;  %v566_v63 = vpop.f32.mrb[31].mxu1  ;;  %v380_v36 = vadd.f32 %v3694_v7, %v3698_v9 }
 0x17c   :  { %4721 = vst [vmem:[#allocation67_spill] sm:$0xff] %v3863_v13  ;;  %4722 = vst [vmem:[#allocation68_spill] sm:$0xff] %v3866_v27  ;;  %v3875_v61 = vadd.f32 %v453_v59, %v3698_v9  ;;  %v3878_v0 = vadd.f32 %v566_v63, %v3690_v5  ;;  %v493_v55 = vadd.f32 %v3696_v8, %v3690_v5 }
 0x17d   :  { %4723 = vst [vmem:[#allocation69_spill] sm:$0xff] %v3869_v53  ;;  %4724 = vst [vmem:[#allocation70_spill] sm:$0xff] %v3872_v57 }
 0x17e   :  { %4725 = vst [vmem:[#allocation71_spill] sm:$0xff] %v3875_v61  ;;  %4726 = vst [vmem:[#allocation72_spill] sm:$0xff] %v3878_v0 }
 0x180   :  { %v766_v57 = vpop.f32.mrb[32].mxu0  ;;  %v807_v53 = vpop.f32.mrb[32].mxu1 }
 0x181   :  { %v814_v27 = vadd.f32 %v766_v57, %v378_v11  ;;  %v816_v59 = vadd.f32 %v807_v53, %v491_v15  ;;  %v768_v61 = vpop.f32.mrb[33].mxu0  ;;  %v809_v13 = vpop.f32.mrb[33].mxu1 }
 0x182   :  { %v815_v63 = vadd.f32 %v768_v61, %v380_v36  ;;  %v817_v0 = vadd.f32 %v809_v13, %v493_v55  ;;  %v770_v10 = vpop.f32.mrb[34].mxu0  ;;  %v811_v1 = vpop.f32.mrb[34].mxu1  ;;  %v4727_v55 = vmov 0  }
 0x183   :  { %v818_v3 = vmul.f32 0.5, %v814_v27  ;;  %v771_v6 = vpop.f32.mrb[35].mxu0  ;;  %v812_v62 = vpop.f32.mrb[35].mxu1 }
 0x184   :  { %v822_v2 = vmul.f32 0.5, %v815_v63  ;;  %v827_v4 = vmul.f32 0.5, %v817_v0 }
 0x185   :  { %2952 = vtanh.f32 %v818_v3 }
 0x186   :  { %2954 = vtanh.f32 %v822_v2 }
 0x187   :  { %2956 = vtanh.f32 %v816_v59 }
 0x188   :  { %2958 = vtanh.f32 %v827_v4 }
 0x18f   :  { %v2953_v7 = vpop.eup %2952 }
 0x190   :  { %v2955_v5 = vpop.eup %2954  ;;  %v820_v8 = vmul.f32 0.5, %v2953_v7 }
 0x191   :  { %v824_v9 = vmul.f32 0.5, %v2955_v5  ;;  %v2957_v57 = vpop.eup %2956 }
 0x192   :  { %v821_v53 = vadd.f32 0.5, %v820_v8  ;;  %v2959_v62 = vpop.eup %2958 }
 0x193   :  { %v825_v11 = vadd.f32 0.5, %v824_v9  ;;  %v829_v1 = vmul.f32 0.5, %v2959_v62 }
 0x194   :  { %v832_v61 = vmul.f32 %v2957_v57, %v821_v53 }
 0x195   :  { %v831_v13 = vmul.f32 0.0, %v825_v11  ;;  %v830_v27 = vadd.f32 0.5, %v829_v1 }
 0x197   :  { %v3888_v10 = vadd.f32 %v832_v61, %v831_v13 }
 0x199   :  { %2960 = vtanh.f32 %v3888_v10 }
 0x1a3   :  { %v2961_v15 = vpop.eup %2960 }
 0x1a4   :  { %v835_v36 = vmul.f32 %v2961_v15, %v830_v27 }
 0x1a6   :  { %v836_v0 = vpack.c.bf16 %v835_v36, %v835_v36 }
 0x1a8   :  { %870 = vmatmul.mubr.bf16.vlgmr.msra.gmra.mrb[36].mxu0 %v836_v0  ;;  %911 = vmatmul.mubr.bf16.vlgmr.msra.gmra.mrb[36].mxu1 %v836_v0 }
 0x1a9   :  { %943 = vmatpush1.bf16.msra.mxu0 %v3521_v20  ;;  %984 = vmatpush1.bf16.msra.mxu1 %v3527_v22 }
 0x1aa   :  { %944 = vmatprep.subr.bf16.mxu0 %v3525_v21  ;;  %985 = vmatprep.subr.bf16.mxu1 %v3531_v23 }
 0x1ab   :  { %974 = vmatprep.mubr.bf16.mxu0 %v4727_v55  ;;  %1015 = vmatprep.mubr.bf16.mxu1 %v4727_v55 }
 0x1ad   :  { %945 = vmatpush1.bf16.msra.mxu0 %v3535_v24  ;;  %986 = vmatpush1.bf16.msra.mxu1 %v3542_v26 }
 0x1ae   :  { %946 = vmatprep.subr.bf16.mxu0 %v3539_v25  ;;  %987 = vmatprep.subr.bf16.mxu1 %v3548_v29 }
 0x1b1   :  { %947 = vmatpush1.bf16.msra.mxu0 %v3545_v28  ;;  %988 = vmatpush1.bf16.msra.mxu1 %v3554_v31 }
 0x1b2   :  { %948 = vmatprep.subr.bf16.mxu0 %v3551_v30  ;;  %989 = vmatprep.subr.bf16.mxu1 %v3558_v32 }
 0x1b5   :  { %949 = vmatpush1.bf16.msra.mxu0 %v3564_v33  ;;  %990 = vmatpush1.bf16.msra.mxu1 %v3570_v35 }
 0x1b6   :  { %950 = vmatprep.subr.bf16.mxu0 %v3568_v34  ;;  %991 = vmatprep.subr.bf16.mxu1 %v3576_v38 }
 0x1b9   :  { %951 = vmatpush1.bf16.msra.mxu0 %v3573_v37  ;;  %992 = vmatpush1.bf16.msra.mxu1 %v3582_v40 }
 0x1ba   :  { %952 = vmatprep.subr.bf16.mxu0 %v3580_v39  ;;  %993 = vmatprep.subr.bf16.mxu1 %v3586_v41 }
 0x1bd   :  { %953 = vmatpush1.bf16.msra.mxu0 %v3592_v43  ;;  %994 = vmatpush1.bf16.msra.mxu1 %v3598_v45 }
 0x1be   :  { %954 = vmatprep.subr.bf16.mxu0 %v3596_v44  ;;  %995 = vmatprep.subr.bf16.mxu1 %v3603_v47 }
 0x1c1   :  { %955 = vmatpush1.bf16.msra.mxu0 %v3601_v46  ;;  %996 = vmatpush1.bf16.msra.mxu1 %v3607_v49 }
 0x1c2   :  { %956 = vmatprep.subr.bf16.mxu0 %v3605_v48  ;;  %997 = vmatprep.subr.bf16.mxu1 %v3610_v50 }
 0x1c5   :  { %957 = vmatpush1.bf16.msra.mxu0 %v3616_v51  ;;  %998 = vmatpush1.bf16.msra.mxu1 %v3620_v52 }
 0x1c6   :  { %1047 = vmatprep.subr.bf16.mxu0 %v3517_v17  ;;  %1088 = vmatprep.subr.bf16.mxu1 %v3519_v18 }
 0x27b   :  { %v871_v59 = vpop.f32.mrb[36].mxu0  ;;  %v912_v63 = vpop.f32.mrb[36].mxu1 }
 0x27c   :  { %v919_v3 = vadd.f32 %v871_v59, %v3701_v12  ;;  %v921_v6 = vadd.f32 %v912_v63, %v3704_v14  ;;  %v873_v2 = vpop.f32.mrb[37].mxu0  ;;  %v914_v4 = vpop.f32.mrb[37].mxu1 }
 0x27d   :  { %v920_v7 = vadd.f32 %v873_v2, %v3707_v16  ;;  %v922_v5 = vadd.f32 %v914_v4, %v3710_v19  ;;  %v875_v8 = vpop.f32.mrb[38].mxu0  ;;  %v916_v9 = vpop.f32.mrb[38].mxu1 }
 0x27e   :  { %v923_v53 = vmul.f32 0.5, %v919_v3  ;;  %v876_v57 = vpop.f32.mrb[39].mxu0  ;;  %v917_v11 = vpop.f32.mrb[39].mxu1 }
 0x27f   :  { %v927_v61 = vmul.f32 0.5, %v920_v7  ;;  %v932_v13 = vmul.f32 0.5, %v922_v5 }
 0x280   :  { %2962 = vtanh.f32 %v923_v53 }
 0x281   :  { %2964 = vtanh.f32 %v927_v61 }
 0x282   :  { %2966 = vtanh.f32 %v921_v6 }
 0x283   :  { %2968 = vtanh.f32 %v932_v13 }
 0x28a   :  { %v2963_v62 = vpop.eup %2962 }
 0x28b   :  { %v2965_v12 = vpop.eup %2964  ;;  %v925_v1 = vmul.f32 0.5, %v2963_v62 }
 0x28c   :  { %v929_v14 = vmul.f32 0.5, %v2965_v12  ;;  %v2967_v15 = vpop.eup %2966 }
 0x28d   :  { %v926_v27 = vadd.f32 0.5, %v925_v1  ;;  %v2969_v59 = vpop.eup %2968 }
 0x28e   :  { %v930_v16 = vadd.f32 0.5, %v929_v14  ;;  %v934_v63 = vmul.f32 0.5, %v2969_v59  ;;  %v3978_v59 = vld [vmem:[#allocation9 + $0x8] ss:$16 sps:$4 sm:$0xff]  }
 0x28f   :  { %v937_v36 = vmul.f32 %v2967_v15, %v926_v27 }
 0x290   :  { %v936_v19 = vmul.f32 %v930_v16, %v3888_v10  ;;  %v935_v3 = vadd.f32 0.5, %v934_v63  ;;  %v3984_v63 = vld [vmem:[#allocation9 + $0x2c] ss:$16 sps:$4 sm:$0xff]  }
 0x292   :  { %v3930_v0 = vadd.f32 %v937_v36, %v936_v19  ;;  %v3975_v19 = vld [vmem:[#allocation9] ss:$16 sps:$4 sm:$0xff]  }
 0x294   :  { %2970 = vtanh.f32 %v3930_v0 }
 0x29e   :  { %v2971_v6 = vpop.eup %2970 }
 0x29f   :  { %v940_v2 = vmul.f32 %v2971_v6, %v935_v3  ;;  %v3989_v3 = vld [vmem:[#allocation9 + $0x20] ss:$16 sps:$4 sm:$0xff]   ;;  %v3992_v6 = vld [vmem:[#allocation9 + $0x28] ss:$16 sps:$4 sm:$0xff]  }
 0x2a1   :  { %v941_v4 = vpack.c.bf16 %v940_v2, %v940_v2  ;;  %v3995_v2 = vld [vmem:[#allocation9 + $0x44] ss:$16 sps:$4 sm:$0xff]  }
 0x2a3   :  { %975 = vmatmul.mubr.bf16.vlgmr.msra.gmra.mrb[40].mxu0 %v941_v4  ;;  %1016 = vmatmul.mubr.bf16.vlgmr.msra.gmra.mrb[40].mxu1 %v941_v4 }
 0x2a4   :  { %1048 = vmatpush1.bf16.msra.mxu0 %v3521_v20  ;;  %1089 = vmatpush1.bf16.msra.mxu1 %v3527_v22 }
 0x2a5   :  { %1049 = vmatprep.subr.bf16.mxu0 %v3525_v21  ;;  %1090 = vmatprep.subr.bf16.mxu1 %v3531_v23 }
 0x2a6   :  { %1079 = vmatprep.mubr.bf16.mxu0 %v4727_v55  ;;  %1120 = vmatprep.mubr.bf16.mxu1 %v4727_v55 }
 0x2a8   :  { %1050 = vmatpush1.bf16.msra.mxu0 %v3535_v24  ;;  %1091 = vmatpush1.bf16.msra.mxu1 %v3542_v26 }
 0x2a9   :  { %1051 = vmatprep.subr.bf16.mxu0 %v3539_v25  ;;  %1092 = vmatprep.subr.bf16.mxu1 %v3548_v29 }
 0x2ac   :  { %1052 = vmatpush1.bf16.msra.mxu0 %v3545_v28  ;;  %1093 = vmatpush1.bf16.msra.mxu1 %v3554_v31 }
 0x2ad   :  { %1053 = vmatprep.subr.bf16.mxu0 %v3551_v30  ;;  %1094 = vmatprep.subr.bf16.mxu1 %v3558_v32 }
 0x2b0   :  { %1054 = vmatpush1.bf16.msra.mxu0 %v3564_v33  ;;  %1095 = vmatpush1.bf16.msra.mxu1 %v3570_v35 }
 0x2b1   :  { %1055 = vmatprep.subr.bf16.mxu0 %v3568_v34  ;;  %1096 = vmatprep.subr.bf16.mxu1 %v3576_v38 }
 0x2b4   :  { %1056 = vmatpush1.bf16.msra.mxu0 %v3573_v37  ;;  %1097 = vmatpush1.bf16.msra.mxu1 %v3582_v40 }
 0x2b5   :  { %1057 = vmatprep.subr.bf16.mxu0 %v3580_v39  ;;  %1098 = vmatprep.subr.bf16.mxu1 %v3586_v41 }
 0x2b8   :  { %1058 = vmatpush1.bf16.msra.mxu0 %v3592_v43  ;;  %1099 = vmatpush1.bf16.msra.mxu1 %v3598_v45 }
 0x2b9   :  { %1059 = vmatprep.subr.bf16.mxu0 %v3596_v44  ;;  %1100 = vmatprep.subr.bf16.mxu1 %v3603_v47 }
 0x2bc   :  { %1060 = vmatpush1.bf16.msra.mxu0 %v3601_v46  ;;  %1101 = vmatpush1.bf16.msra.mxu1 %v3607_v49 }
 0x2bd   :  { %1061 = vmatprep.subr.bf16.mxu0 %v3605_v48  ;;  %1102 = vmatprep.subr.bf16.mxu1 %v3610_v50 }
 0x2c0   :  { %1062 = vmatpush1.bf16.msra.mxu0 %v3616_v51  ;;  %1103 = vmatpush1.bf16.msra.mxu1 %v3620_v52 }
 0x2c1   :  { %1152 = vmatprep.subr.bf16.mxu0 %v3517_v17  ;;  %1193 = vmatprep.subr.bf16.mxu1 %v3519_v18 }
 0x376   :  { %v976_v20 = vpop.f32.mrb[40].mxu0  ;;  %v1017_v21 = vpop.f32.mrb[40].mxu1 }
 0x377   :  { %v1024_v22 = vadd.f32 %v976_v20, %v3713_v42  ;;  %v1026_v23 = vadd.f32 %v1017_v21, %v3716_v54  ;;  %v978_v24 = vpop.f32.mrb[41].mxu0  ;;  %v1019_v25 = vpop.f32.mrb[41].mxu1 }
 0x378   :  { %v1025_v26 = vadd.f32 %v978_v24, %v3719_v56  ;;  %v1027_v10 = vadd.f32 %v1019_v25, %v3722_v58  ;;  %v980_v7 = vpop.f32.mrb[42].mxu0  ;;  %v1021_v5 = vpop.f32.mrb[42].mxu1 }
 0x379   :  { %v1028_v8 = vmul.f32 0.5, %v1024_v22  ;;  %v981_v9 = vpop.f32.mrb[43].mxu0  ;;  %v1022_v53 = vpop.f32.mrb[43].mxu1 }
 0x37a   :  { %v1032_v17 = vmul.f32 0.5, %v1025_v26  ;;  %v1037_v18 = vmul.f32 0.5, %v1027_v10  ;;  %v4044_v9 = vld [vmem:[#allocation9 + $0x4c] ss:$16 sps:$4 sm:$0xff]   ;;  %v4047_v53 = vld [vmem:[#allocation9 + $0x40] ss:$16 sps:$4 sm:$0xff]  }
 0x37b   :  { %2972 = vtanh.f32 %v1028_v8 }
 0x37c   :  { %2974 = vtanh.f32 %v1032_v17  ;;  %v4050_v17 = vld [vmem:[#allocation9 + $0x48] ss:$16 sps:$4 sm:$0xff]  }
 0x37d   :  { %2976 = vtanh.f32 %v1026_v23 }
 0x37e   :  { %2978 = vtanh.f32 %v1037_v18  ;;  %v4053_v18 = vld [vmem:[#allocation9 + $0x64] ss:$16 sps:$4 sm:$0xff]  }
 0x385   :  { %v2973_v57 = vpop.eup %2972 }
 0x386   :  { %v2975_v42 = vpop.eup %2974  ;;  %v1030_v11 = vmul.f32 0.5, %v2973_v57  ;;  %v4056_v57 = vld [vmem:[#allocation9 + $0x6c] ss:$16 sps:$4 sm:$0xff]  }
 0x387   :  { %v1034_v54 = vmul.f32 0.5, %v2975_v42  ;;  %v2977_v13 = vpop.eup %2976  ;;  %v4059_v42 = vld [vmem:[#allocation9 + $0x60] ss:$16 sps:$4 sm:$0xff]  }
 0x388   :  { %v1031_v61 = vadd.f32 0.5, %v1030_v11  ;;  %v2979_v1 = vpop.eup %2978  ;;  %v4062_v11 = vld [vmem:[#allocation9 + $0x68] ss:$16 sps:$4 sm:$0xff]  }
 0x389   :  { %v1035_v56 = vadd.f32 0.5, %v1034_v54  ;;  %v1039_v14 = vmul.f32 0.5, %v2979_v1  ;;  %v4065_v54 = vld [vmem:[#allocation9 + $0x84] ss:$16 sps:$4 sm:$0xff]   ;;  %v4086_v1 = vld [vmem:[#allocation9 + $0xa8] ss:$16 sps:$4 sm:$0xff]  }
 0x38a   :  { %v1042_v62 = vmul.f32 %v2977_v13, %v1031_v61  ;;  %v4068_v61 = vld [vmem:[#allocation9 + $0x8c] ss:$16 sps:$4 sm:$0xff]   ;;  %v4071_v13 = vld [vmem:[#allocation9 + $0x80] ss:$16 sps:$4 sm:$0xff]  }
 0x38b   :  { %v1041_v58 = vmul.f32 %v1035_v56, %v3930_v0  ;;  %v1040_v27 = vadd.f32 0.5, %v1039_v14  ;;  %v3981_v0 = vld [vmem:[#allocation9 + $0x24] ss:$16 sps:$4 sm:$0xff]   ;;  %v4074_v56 = vld [vmem:[#allocation9 + $0x88] ss:$16 sps:$4 sm:$0xff]  }
 0x38c   :  { %v4089_v14 = vld [vmem:[#allocation9 + $0xc4] ss:$16 sps:$4 sm:$0xff]  }
 0x38d   :  { %v3972_v12 = vadd.f32 %v1042_v62, %v1041_v58  ;;  %v4077_v62 = vld [vmem:[#allocation9 + $0xa4] ss:$16 sps:$4 sm:$0xff]   ;;  %v4080_v58 = vld [vmem:[#allocation9 + $0xac] ss:$16 sps:$4 sm:$0xff]  }
 0x38f   :  { %2980 = vtanh.f32 %v3972_v12 }
 0x399   :  { %v2981_v15 = vpop.eup %2980 }
 0x39a   :  { %v1045_v16 = vmul.f32 %v2981_v15, %v1040_v27  ;;  %v4092_v27 = vld [vmem:[#allocation9 + $0xcc] ss:$16 sps:$4 sm:$0xff]   ;;  %v4095_v15 = vld [vmem:[#allocation9 + $0xc0] ss:$16 sps:$4 sm:$0xff]  }
 0x39c   :  { %v1046_v36 = vpack.c.bf16 %v1045_v16, %v1045_v16  ;;  %v4098_v16 = vld [vmem:[#allocation9 + $0xc8] ss:$16 sps:$4 sm:$0xff]  }
 0x39e   :  { %1080 = vmatmul.mubr.bf16.vlgmr.msra.gmra.mrb[44].mxu0 %v1046_v36  ;;  %1121 = vmatmul.mubr.bf16.vlgmr.msra.gmra.mrb[44].mxu1 %v1046_v36  ;;  %v4101_v36 = vld [vmem:[#allocation9 + $0xe4] ss:$16 sps:$4 sm:$0xff]  }
 0x39f   :  { %1153 = vmatpush1.bf16.msra.mxu0 %v3975_v19  ;;  %1194 = vmatpush1.bf16.msra.mxu1 %v3978_v59 }
 0x3a0   :  { %1154 = vmatprep.subr.bf16.mxu0 %v3981_v0  ;;  %1195 = vmatprep.subr.bf16.mxu1 %v3984_v63 }
 0x3a1   :  { %1184 = vmatprep.mubr.bf16.mxu0 %v4727_v55  ;;  %1225 = vmatprep.mubr.bf16.mxu1 %v4727_v55 }
 0x3a3   :  { %1155 = vmatpush1.bf16.msra.mxu0 %v3989_v3  ;;  %1196 = vmatpush1.bf16.msra.mxu1 %v3992_v6 }
 0x3a4   :  { %1156 = vmatprep.subr.bf16.mxu0 %v3995_v2  ;;  %1197 = vmatprep.subr.bf16.mxu1 %v3548_v29  ;;  %v4024_v29 = vld [vmem:[#allocation9 + $0xc] ss:$16 sps:$4 sm:$0xff]  }
 0x3a7   :  { %1157 = vmatpush1.bf16.msra.mxu0 %v3545_v28  ;;  %1198 = vmatpush1.bf16.msra.mxu1 %v3554_v31  ;;  %v4021_v28 = vld [vmem:[#allocation9 + $0x4] ss:$16 sps:$4 sm:$0xff]  }
 0x3a8   :  { %1158 = vmatprep.subr.bf16.mxu0 %v3551_v30  ;;  %1199 = vmatprep.subr.bf16.mxu1 %v3558_v32 }
 0x3ab   :  { %1159 = vmatpush1.bf16.msra.mxu0 %v3564_v33  ;;  %1200 = vmatpush1.bf16.msra.mxu1 %v3570_v35  ;;  %v4728_v33 = vld [vmem:[#allocation22_spill] sm:$0xff] }
 0x3ac   :  { %1160 = vmatprep.subr.bf16.mxu0 %v3568_v34  ;;  %1201 = vmatprep.subr.bf16.mxu1 %v3576_v38  ;;  %v4729_v38 = vld [vmem:[#allocation23_spill] sm:$0xff] }
 0x3af   :  { %1161 = vmatpush1.bf16.msra.mxu0 %v3573_v37  ;;  %1202 = vmatpush1.bf16.msra.mxu1 %v3582_v40  ;;  %v4730_v40 = vld [vmem:[#allocation24_spill] sm:$0xff] }
 0x3b0   :  { %1162 = vmatprep.subr.bf16.mxu0 %v3580_v39  ;;  %1203 = vmatprep.subr.bf16.mxu1 %v3586_v41 }
 0x3b3   :  { %1163 = vmatpush1.bf16.msra.mxu0 %v3592_v43  ;;  %1204 = vmatpush1.bf16.msra.mxu1 %v3598_v45 }
 0x3b4   :  { %1164 = vmatprep.subr.bf16.mxu0 %v3596_v44  ;;  %1205 = vmatprep.subr.bf16.mxu1 %v3603_v47 }
 0x3b7   :  { %1165 = vmatpush1.bf16.msra.mxu0 %v3601_v46  ;;  %1206 = vmatpush1.bf16.msra.mxu1 %v3607_v49 }
 0x3b8   :  { %1166 = vmatprep.subr.bf16.mxu0 %v3605_v48  ;;  %1207 = vmatprep.subr.bf16.mxu1 %v3610_v50 }
 0x3bb   :  { %1167 = vmatpush1.bf16.msra.mxu0 %v3616_v51  ;;  %1208 = vmatpush1.bf16.msra.mxu1 %v3620_v52 }
 0x3bc   :  { %1257 = vmatprep.subr.bf16.mxu0 %v4021_v28  ;;  %1298 = vmatprep.subr.bf16.mxu1 %v4024_v29 }
 0x471   :  { %v1081_v30 = vpop.f32.mrb[44].mxu0  ;;  %v1122_v31 = vpop.f32.mrb[44].mxu1 }
 0x472   :  { %v1129_v32 = vadd.f32 %v1081_v30, %v3725_v60  ;;  %v1131_v34 = vadd.f32 %v1122_v31, %v4728_v33  ;;  %v1083_v35 = vpop.f32.mrb[45].mxu0  ;;  %v1124_v37 = vpop.f32.mrb[45].mxu1  ;;  %v4104_v30 = vld [vmem:[#allocation9 + $0xec] ss:$16 sps:$4 sm:$0xff]   ;;  %v4107_v31 = vld [vmem:[#allocation9 + $0xe0] ss:$16 sps:$4 sm:$0xff]  }
 0x473   :  { %v1130_v39 = vadd.f32 %v1083_v35, %v4729_v38  ;;  %v1132_v41 = vadd.f32 %v1124_v37, %v4730_v40  ;;  %v1085_v43 = vpop.f32.mrb[46].mxu0  ;;  %v1126_v44 = vpop.f32.mrb[46].mxu1  ;;  %v4731_v35 = vld [vmem:[#allocation25_spill] sm:$0xff]  ;;  %v4732_v38 = vld [vmem:[#allocation26_spill] sm:$0xff] }
 0x474   :  { %v1133_v45 = vmul.f32 0.5, %v1129_v32  ;;  %v1086_v46 = vpop.f32.mrb[47].mxu0  ;;  %v1127_v47 = vpop.f32.mrb[47].mxu1  ;;  %v4110_v32 = vld [vmem:[#allocation9 + $0xe8] ss:$16 sps:$4 sm:$0xff]   ;;  %v4733_v43 = vld [vmem:[#allocation27_spill] sm:$0xff] }
 0x475   :  { %v1137_v48 = vmul.f32 0.5, %v1130_v39  ;;  %v1142_v49 = vmul.f32 0.5, %v1132_v41 }
 0x476   :  { %2982 = vtanh.f32 %v1133_v45  ;;  %v4734_v45 = vld [vmem:[#allocation28_spill] sm:$0xff] }
 0x477   :  { %2984 = vtanh.f32 %v1137_v48 }
 0x478   :  { %2986 = vtanh.f32 %v1131_v34 }
 0x479   :  { %2988 = vtanh.f32 %v1142_v49 }
 0x480   :  { %v2983_v50 = vpop.eup %2982 }
 0x481   :  { %v2985_v51 = vpop.eup %2984  ;;  %v1135_v52 = vmul.f32 0.5, %v2983_v50 }
 0x482   :  { %v1139_v60 = vmul.f32 0.5, %v2985_v51  ;;  %v2987_v20 = vpop.eup %2986 }
 0x483   :  { %v1136_v4 = vadd.f32 0.5, %v1135_v52  ;;  %v2989_v25 = vpop.eup %2988 }
 0x484   :  { %v1140_v21 = vadd.f32 0.5, %v1139_v60  ;;  %v1144_v26 = vmul.f32 0.5, %v2989_v25 }
 0x485   :  { %v1147_v22 = vmul.f32 %v2987_v20, %v1136_v4 }
 0x486   :  { %v1146_v23 = vmul.f32 %v1140_v21, %v3972_v12  ;;  %v1145_v10 = vadd.f32 0.5, %v1144_v26  ;;  %v4083_v12 = vld [vmem:[#allocation9 + $0xa0] ss:$16 sps:$4 sm:$0xff]  }
 0x488   :  { %v4032_v24 = vadd.f32 %v1147_v22, %v1146_v23 }
 0x48a   :  { %2990 = vtanh.f32 %v4032_v24 }
 0x494   :  { %v2991_v7 = vpop.eup %2990 }
 0x495   :  { %v1150_v5 = vmul.f32 %v2991_v7, %v1145_v10 }
 0x497   :  { %v1151_v8 = vpack.c.bf16 %v1150_v5, %v1150_v5 }
 0x499   :  { %1185 = vmatmul.mubr.bf16.vlgmr.msra.gmra.mrb[48].mxu0 %v1151_v8  ;;  %1226 = vmatmul.mubr.bf16.vlgmr.msra.gmra.mrb[48].mxu1 %v1151_v8 }
 0x49a   :  { %1258 = vmatpush1.bf16.msra.mxu0 %v3975_v19  ;;  %1299 = vmatpush1.bf16.msra.mxu1 %v3978_v59 }
 0x49b   :  { %1259 = vmatprep.subr.bf16.mxu0 %v3981_v0  ;;  %1300 = vmatprep.subr.bf16.mxu1 %v3984_v63 }
 0x49c   :  { %1289 = vmatprep.mubr.bf16.mxu0 %v4727_v55  ;;  %1330 = vmatprep.mubr.bf16.mxu1 %v4727_v55 }
 0x49e   :  { %1260 = vmatpush1.bf16.msra.mxu0 %v3989_v3  ;;  %1301 = vmatpush1.bf16.msra.mxu1 %v3992_v6 }
 0x49f   :  { %1261 = vmatprep.subr.bf16.mxu0 %v3995_v2  ;;  %1302 = vmatprep.subr.bf16.mxu1 %v4044_v9 }
 0x4a2   :  { %1262 = vmatpush1.bf16.msra.mxu0 %v4047_v53  ;;  %1303 = vmatpush1.bf16.msra.mxu1 %v4050_v17 }
 0x4a3   :  { %1263 = vmatprep.subr.bf16.mxu0 %v4053_v18  ;;  %1304 = vmatprep.subr.bf16.mxu1 %v4056_v57 }
 0x4a6   :  { %1264 = vmatpush1.bf16.msra.mxu0 %v4059_v42  ;;  %1305 = vmatpush1.bf16.msra.mxu1 %v4062_v11 }
 0x4a7   :  { %1265 = vmatprep.subr.bf16.mxu0 %v4065_v54  ;;  %1306 = vmatprep.subr.bf16.mxu1 %v4068_v61 }
 0x4aa   :  { %1266 = vmatpush1.bf16.msra.mxu0 %v4071_v13  ;;  %1307 = vmatpush1.bf16.msra.mxu1 %v4074_v56 }
 0x4ab   :  { %1267 = vmatprep.subr.bf16.mxu0 %v4077_v62  ;;  %1308 = vmatprep.subr.bf16.mxu1 %v4080_v58 }
 0x4ae   :  { %1268 = vmatpush1.bf16.msra.mxu0 %v4083_v12  ;;  %1309 = vmatpush1.bf16.msra.mxu1 %v4086_v1 }
 0x4af   :  { %1269 = vmatprep.subr.bf16.mxu0 %v4089_v14  ;;  %1310 = vmatprep.subr.bf16.mxu1 %v4092_v27 }
 0x4b2   :  { %1270 = vmatpush1.bf16.msra.mxu0 %v4095_v15  ;;  %1311 = vmatpush1.bf16.msra.mxu1 %v4098_v16 }
 0x4b3   :  { %1271 = vmatprep.subr.bf16.mxu0 %v4101_v36  ;;  %1312 = vmatprep.subr.bf16.mxu1 %v4104_v30 }
 0x4b6   :  { %1272 = vmatpush1.bf16.msra.mxu0 %v4107_v31  ;;  %1313 = vmatpush1.bf16.msra.mxu1 %v4110_v32 }
 0x4b7   :  { %1362 = vmatprep.subr.bf16.mxu0 %v4021_v28  ;;  %1403 = vmatprep.subr.bf16.mxu1 %v4024_v29 }
 0x56c   :  { %v1186_v33 = vpop.f32.mrb[48].mxu0  ;;  %v1227_v34 = vpop.f32.mrb[48].mxu1 }
 0x56d   :  { %v1234_v37 = vadd.f32 %v1186_v33, %v4731_v35  ;;  %v1236_v39 = vadd.f32 %v1227_v34, %v4732_v38  ;;  %v1188_v40 = vpop.f32.mrb[49].mxu0  ;;  %v1229_v41 = vpop.f32.mrb[49].mxu1 }
 0x56e   :  { %v1235_v44 = vadd.f32 %v1188_v40, %v4733_v43  ;;  %v1237_v46 = vadd.f32 %v1229_v41, %v4734_v45  ;;  %v1190_v47 = vpop.f32.mrb[50].mxu0  ;;  %v1231_v48 = vpop.f32.mrb[50].mxu1  ;;  %v4735_v40 = vld [vmem:[#allocation29_spill] sm:$0xff]  ;;  %v4736_v43 = vld [vmem:[#allocation30_spill] sm:$0xff] }
 0x56f   :  { %v1238_v49 = vmul.f32 0.5, %v1234_v37  ;;  %v1191_v50 = vpop.f32.mrb[51].mxu0  ;;  %v1232_v51 = vpop.f32.mrb[51].mxu1  ;;  %v4737_v47 = vld [vmem:[#allocation31_spill] sm:$0xff] }
 0x570   :  { %v1242_v52 = vmul.f32 0.5, %v1235_v44  ;;  %v1247_v60 = vmul.f32 0.5, %v1237_v46 }
 0x571   :  { %2992 = vtanh.f32 %v1238_v49  ;;  %v4738_v49 = vld [vmem:[#allocation32_spill] sm:$0xff] }
 0x572   :  { %2994 = vtanh.f32 %v1242_v52 }
 0x573   :  { %2996 = vtanh.f32 %v1236_v39 }
 0x574   :  { %2998 = vtanh.f32 %v1247_v60 }
 0x57b   :  { %v2993_v4 = vpop.eup %2992 }
 0x57c   :  { %v2995_v20 = vpop.eup %2994  ;;  %v1240_v21 = vmul.f32 0.5, %v2993_v4 }
 0x57d   :  { %v1244_v22 = vmul.f32 0.5, %v2995_v20  ;;  %v2997_v25 = vpop.eup %2996 }
 0x57e   :  { %v1241_v23 = vadd.f32 0.5, %v1240_v21  ;;  %v2999_v8 = vpop.eup %2998 }
 0x57f   :  { %v1245_v26 = vadd.f32 0.5, %v1244_v22  ;;  %v1249_v33 = vmul.f32 0.5, %v2999_v8 }
 0x580   :  { %v1252_v10 = vmul.f32 %v2997_v25, %v1241_v23 }
 0x581   :  { %v1251_v7 = vmul.f32 %v1245_v26, %v4032_v24  ;;  %v1250_v34 = vadd.f32 0.5, %v1249_v33 }
 0x583   :  { %v4120_v5 = vadd.f32 %v1252_v10, %v1251_v7 }
 0x585   :  { %3000 = vtanh.f32 %v4120_v5 }
 0x58f   :  { %v3001_v35 = vpop.eup %3000 }
 0x590   :  { %v1255_v37 = vmul.f32 %v3001_v35, %v1250_v34 }
 0x592   :  { %v1256_v38 = vpack.c.bf16 %v1255_v37, %v1255_v37 }
 0x594   :  { %1290 = vmatmul.mubr.bf16.vlgmr.msra.gmra.mrb[52].mxu0 %v1256_v38  ;;  %1331 = vmatmul.mubr.bf16.vlgmr.msra.gmra.mrb[52].mxu1 %v1256_v38 }
 0x595   :  { %1363 = vmatpush1.bf16.msra.mxu0 %v3975_v19  ;;  %1404 = vmatpush1.bf16.msra.mxu1 %v3978_v59 }
 0x596   :  { %1364 = vmatprep.subr.bf16.mxu0 %v3981_v0  ;;  %1405 = vmatprep.subr.bf16.mxu1 %v3984_v63 }
 0x597   :  { %1394 = vmatprep.mubr.bf16.mxu0 %v4727_v55  ;;  %1435 = vmatprep.mubr.bf16.mxu1 %v4727_v55 }
 0x599   :  { %1365 = vmatpush1.bf16.msra.mxu0 %v3989_v3  ;;  %1406 = vmatpush1.bf16.msra.mxu1 %v3992_v6 }
 0x59a   :  { %1366 = vmatprep.subr.bf16.mxu0 %v3995_v2  ;;  %1407 = vmatprep.subr.bf16.mxu1 %v4044_v9 }
 0x59d   :  { %1367 = vmatpush1.bf16.msra.mxu0 %v4047_v53  ;;  %1408 = vmatpush1.bf16.msra.mxu1 %v4050_v17 }
 0x59e   :  { %1368 = vmatprep.subr.bf16.mxu0 %v4053_v18  ;;  %1409 = vmatprep.subr.bf16.mxu1 %v4056_v57 }
 0x5a1   :  { %1369 = vmatpush1.bf16.msra.mxu0 %v4059_v42  ;;  %1410 = vmatpush1.bf16.msra.mxu1 %v4062_v11 }
 0x5a2   :  { %1370 = vmatprep.subr.bf16.mxu0 %v4065_v54  ;;  %1411 = vmatprep.subr.bf16.mxu1 %v4068_v61 }
 0x5a5   :  { %1371 = vmatpush1.bf16.msra.mxu0 %v4071_v13  ;;  %1412 = vmatpush1.bf16.msra.mxu1 %v4074_v56 }
 0x5a6   :  { %1372 = vmatprep.subr.bf16.mxu0 %v4077_v62  ;;  %1413 = vmatprep.subr.bf16.mxu1 %v4080_v58 }
 0x5a9   :  { %1373 = vmatpush1.bf16.msra.mxu0 %v4083_v12  ;;  %1414 = vmatpush1.bf16.msra.mxu1 %v4086_v1 }
 0x5aa   :  { %1374 = vmatprep.subr.bf16.mxu0 %v4089_v14  ;;  %1415 = vmatprep.subr.bf16.mxu1 %v4092_v27 }
 0x5ad   :  { %1375 = vmatpush1.bf16.msra.mxu0 %v4095_v15  ;;  %1416 = vmatpush1.bf16.msra.mxu1 %v4098_v16 }
 0x5ae   :  { %1376 = vmatprep.subr.bf16.mxu0 %v4101_v36  ;;  %1417 = vmatprep.subr.bf16.mxu1 %v4104_v30 }
 0x5b1   :  { %1377 = vmatpush1.bf16.msra.mxu0 %v4107_v31  ;;  %1418 = vmatpush1.bf16.msra.mxu1 %v4110_v32 }
 0x5b2   :  { %1467 = vmatprep.subr.bf16.mxu0 %v4021_v28  ;;  %1508 = vmatprep.subr.bf16.mxu1 %v4024_v29 }
 0x667   :  { %v1291_v24 = vpop.f32.mrb[52].mxu0  ;;  %v1332_v39 = vpop.f32.mrb[52].mxu1 }
 0x668   :  { %v1339_v41 = vadd.f32 %v1291_v24, %v4735_v40  ;;  %v1341_v44 = vadd.f32 %v1332_v39, %v4736_v43  ;;  %v1293_v45 = vpop.f32.mrb[53].mxu0  ;;  %v1334_v46 = vpop.f32.mrb[53].mxu1 }
 0x669   :  { %v1340_v48 = vadd.f32 %v1293_v45, %v4737_v47  ;;  %v1342_v50 = vadd.f32 %v1334_v46, %v4738_v49  ;;  %v1295_v51 = vpop.f32.mrb[54].mxu0  ;;  %v1336_v52 = vpop.f32.mrb[54].mxu1  ;;  %v4739_v45 = vld [vmem:[#allocation33_spill] sm:$0xff]  ;;  %v4740_v47 = vld [vmem:[#allocation34_spill] sm:$0xff] }
 0x66a   :  { %v1343_v60 = vmul.f32 0.5, %v1339_v41  ;;  %v1296_v4 = vpop.f32.mrb[55].mxu0  ;;  %v1337_v20 = vpop.f32.mrb[55].mxu1  ;;  %v4741_v51 = vld [vmem:[#allocation35_spill] sm:$0xff] }
 0x66b   :  { %v1347_v21 = vmul.f32 0.5, %v1340_v48  ;;  %v1352_v22 = vmul.f32 0.5, %v1342_v50 }
 0x66c   :  { %3002 = vtanh.f32 %v1343_v60  ;;  %v4742_v60 = vld [vmem:[#allocation36_spill] sm:$0xff] }
 0x66d   :  { %3004 = vtanh.f32 %v1347_v21 }
 0x66e   :  { %3006 = vtanh.f32 %v1341_v44 }
 0x66f   :  { %3008 = vtanh.f32 %v1352_v22 }
 0x676   :  { %v3003_v23 = vpop.eup %3002 }
 0x677   :  { %v3005_v25 = vpop.eup %3004  ;;  %v1345_v26 = vmul.f32 0.5, %v3003_v23 }
 0x678   :  { %v1349_v10 = vmul.f32 0.5, %v3005_v25  ;;  %v3007_v8 = vpop.eup %3006 }
 0x679   :  { %v1346_v7 = vadd.f32 0.5, %v1345_v26  ;;  %v3009_v38 = vpop.eup %3008 }
 0x67a   :  { %v1350_v33 = vadd.f32 0.5, %v1349_v10  ;;  %v1354_v24 = vmul.f32 0.5, %v3009_v38 }
 0x67b   :  { %v1357_v34 = vmul.f32 %v3007_v8, %v1346_v7 }
 0x67c   :  { %v1356_v35 = vmul.f32 %v1350_v33, %v4120_v5  ;;  %v1355_v39 = vadd.f32 0.5, %v1354_v24 }
 0x67e   :  { %v4162_v37 = vadd.f32 %v1357_v34, %v1356_v35 }
 0x680   :  { %3010 = vtanh.f32 %v4162_v37 }
 0x68a   :  { %v3011_v40 = vpop.eup %3010 }
 0x68b   :  { %v1360_v41 = vmul.f32 %v3011_v40, %v1355_v39 }
 0x68d   :  { %v1361_v43 = vpack.c.bf16 %v1360_v41, %v1360_v41 }
 0x68f   :  { %1395 = vmatmul.mubr.bf16.vlgmr.msra.gmra.mrb[56].mxu0 %v1361_v43  ;;  %1436 = vmatmul.mubr.bf16.vlgmr.msra.gmra.mrb[56].mxu1 %v1361_v43 }
 0x690   :  { %1468 = vmatpush1.bf16.msra.mxu0 %v3975_v19  ;;  %1509 = vmatpush1.bf16.msra.mxu1 %v3978_v59 }
 0x691   :  { %1469 = vmatprep.subr.bf16.mxu0 %v3981_v0  ;;  %1510 = vmatprep.subr.bf16.mxu1 %v3984_v63 }
 0x692   :  { %1499 = vmatprep.mubr.bf16.mxu0 %v4727_v55  ;;  %1540 = vmatprep.mubr.bf16.mxu1 %v4727_v55 }
 0x694   :  { %1470 = vmatpush1.bf16.msra.mxu0 %v3989_v3  ;;  %1511 = vmatpush1.bf16.msra.mxu1 %v3992_v6 }
 0x695   :  { %1471 = vmatprep.subr.bf16.mxu0 %v3995_v2  ;;  %1512 = vmatprep.subr.bf16.mxu1 %v4044_v9 }
 0x698   :  { %1472 = vmatpush1.bf16.msra.mxu0 %v4047_v53  ;;  %1513 = vmatpush1.bf16.msra.mxu1 %v4050_v17 }
 0x699   :  { %1473 = vmatprep.subr.bf16.mxu0 %v4053_v18  ;;  %1514 = vmatprep.subr.bf16.mxu1 %v4056_v57 }
 0x69c   :  { %1474 = vmatpush1.bf16.msra.mxu0 %v4059_v42  ;;  %1515 = vmatpush1.bf16.msra.mxu1 %v4062_v11 }
 0x69d   :  { %1475 = vmatprep.subr.bf16.mxu0 %v4065_v54  ;;  %1516 = vmatprep.subr.bf16.mxu1 %v4068_v61 }
 0x6a0   :  { %1476 = vmatpush1.bf16.msra.mxu0 %v4071_v13  ;;  %1517 = vmatpush1.bf16.msra.mxu1 %v4074_v56 }
 0x6a1   :  { %1477 = vmatprep.subr.bf16.mxu0 %v4077_v62  ;;  %1518 = vmatprep.subr.bf16.mxu1 %v4080_v58 }
 0x6a4   :  { %1478 = vmatpush1.bf16.msra.mxu0 %v4083_v12  ;;  %1519 = vmatpush1.bf16.msra.mxu1 %v4086_v1 }
 0x6a5   :  { %1479 = vmatprep.subr.bf16.mxu0 %v4089_v14  ;;  %1520 = vmatprep.subr.bf16.mxu1 %v4092_v27 }
 0x6a8   :  { %1480 = vmatpush1.bf16.msra.mxu0 %v4095_v15  ;;  %1521 = vmatpush1.bf16.msra.mxu1 %v4098_v16 }
 0x6a9   :  { %1481 = vmatprep.subr.bf16.mxu0 %v4101_v36  ;;  %1522 = vmatprep.subr.bf16.mxu1 %v4104_v30 }
 0x6ac   :  { %1482 = vmatpush1.bf16.msra.mxu0 %v4107_v31  ;;  %1523 = vmatpush1.bf16.msra.mxu1 %v4110_v32 }
 0x6ad   :  { %1572 = vmatprep.subr.bf16.mxu0 %v4021_v28  ;;  %1613 = vmatprep.subr.bf16.mxu1 %v4024_v29 }
 0x762   :  { %v1396_v5 = vpop.f32.mrb[56].mxu0  ;;  %v1437_v44 = vpop.f32.mrb[56].mxu1 }
 0x763   :  { %v1444_v46 = vadd.f32 %v1396_v5, %v4739_v45  ;;  %v1446_v48 = vadd.f32 %v1437_v44, %v4740_v47  ;;  %v1398_v49 = vpop.f32.mrb[57].mxu0  ;;  %v1439_v50 = vpop.f32.mrb[57].mxu1 }
 0x764   :  { %v1445_v52 = vadd.f32 %v1398_v49, %v4741_v51  ;;  %v1447_v4 = vadd.f32 %v1439_v50, %v4742_v60  ;;  %v1400_v20 = vpop.f32.mrb[58].mxu0  ;;  %v1441_v21 = vpop.f32.mrb[58].mxu1  ;;  %v4743_v49 = vld [vmem:[#allocation37_spill] sm:$0xff]  ;;  %v4744_v51 = vld [vmem:[#allocation38_spill] sm:$0xff] }
 0x765   :  { %v1448_v22 = vmul.f32 0.5, %v1444_v46  ;;  %v1401_v23 = vpop.f32.mrb[59].mxu0  ;;  %v1442_v25 = vpop.f32.mrb[59].mxu1  ;;  %v4745_v20 = vld [vmem:[#allocation39_spill] sm:$0xff] }
 0x766   :  { %v1452_v26 = vmul.f32 0.5, %v1445_v52  ;;  %v1457_v10 = vmul.f32 0.5, %v1447_v4 }
 0x767   :  { %3012 = vtanh.f32 %v1448_v22  ;;  %v4746_v22 = vld [vmem:[#allocation40_spill] sm:$0xff] }
 0x768   :  { %3014 = vtanh.f32 %v1452_v26 }
 0x769   :  { %3016 = vtanh.f32 %v1446_v48 }
 0x76a   :  { %3018 = vtanh.f32 %v1457_v10 }
 0x771   :  { %v3013_v7 = vpop.eup %3012 }
 0x772   :  { %v3015_v8 = vpop.eup %3014  ;;  %v1450_v33 = vmul.f32 0.5, %v3013_v7 }
 0x773   :  { %v1454_v34 = vmul.f32 0.5, %v3015_v8  ;;  %v3017_v38 = vpop.eup %3016 }
 0x774   :  { %v1451_v35 = vadd.f32 0.5, %v1450_v33  ;;  %v3019_v43 = vpop.eup %3018 }
 0x775   :  { %v1455_v24 = vadd.f32 0.5, %v1454_v34  ;;  %v1459_v5 = vmul.f32 0.5, %v3019_v43 }
 0x776   :  { %v1462_v39 = vmul.f32 %v3017_v38, %v1451_v35 }
 0x777   :  { %v1461_v40 = vmul.f32 %v1455_v24, %v4162_v37  ;;  %v1460_v44 = vadd.f32 0.5, %v1459_v5 }
 0x779   :  { %v4204_v41 = vadd.f32 %v1462_v39, %v1461_v40 }
 0x77b   :  { %3020 = vtanh.f32 %v4204_v41 }
 0x785   :  { %v3021_v45 = vpop.eup %3020 }
 0x786   :  { %v1465_v46 = vmul.f32 %v3021_v45, %v1460_v44 }
 0x788   :  { %v1466_v47 = vpack.c.bf16 %v1465_v46, %v1465_v46 }
 0x78a   :  { %1500 = vmatmul.mubr.bf16.vlgmr.msra.gmra.mrb[60].mxu0 %v1466_v47  ;;  %1541 = vmatmul.mubr.bf16.vlgmr.msra.gmra.mrb[60].mxu1 %v1466_v47 }
 0x78b   :  { %1573 = vmatpush1.bf16.msra.mxu0 %v3975_v19  ;;  %1614 = vmatpush1.bf16.msra.mxu1 %v3978_v59 }
 0x78c   :  { %1574 = vmatprep.subr.bf16.mxu0 %v3981_v0  ;;  %1615 = vmatprep.subr.bf16.mxu1 %v3984_v63 }
 0x78d   :  { %1604 = vmatprep.mubr.bf16.mxu0 %v4727_v55  ;;  %1645 = vmatprep.mubr.bf16.mxu1 %v4727_v55 }
 0x78f   :  { %1575 = vmatpush1.bf16.msra.mxu0 %v3989_v3  ;;  %1616 = vmatpush1.bf16.msra.mxu1 %v3992_v6 }
 0x790   :  { %1576 = vmatprep.subr.bf16.mxu0 %v3995_v2  ;;  %1617 = vmatprep.subr.bf16.mxu1 %v4044_v9 }
 0x793   :  { %1577 = vmatpush1.bf16.msra.mxu0 %v4047_v53  ;;  %1618 = vmatpush1.bf16.msra.mxu1 %v4050_v17 }
 0x794   :  { %1578 = vmatprep.subr.bf16.mxu0 %v4053_v18  ;;  %1619 = vmatprep.subr.bf16.mxu1 %v4056_v57 }
 0x797   :  { %1579 = vmatpush1.bf16.msra.mxu0 %v4059_v42  ;;  %1620 = vmatpush1.bf16.msra.mxu1 %v4062_v11 }
 0x798   :  { %1580 = vmatprep.subr.bf16.mxu0 %v4065_v54  ;;  %1621 = vmatprep.subr.bf16.mxu1 %v4068_v61 }
 0x79b   :  { %1581 = vmatpush1.bf16.msra.mxu0 %v4071_v13  ;;  %1622 = vmatpush1.bf16.msra.mxu1 %v4074_v56 }
 0x79c   :  { %1582 = vmatprep.subr.bf16.mxu0 %v4077_v62  ;;  %1623 = vmatprep.subr.bf16.mxu1 %v4080_v58 }
 0x79f   :  { %1583 = vmatpush1.bf16.msra.mxu0 %v4083_v12  ;;  %1624 = vmatpush1.bf16.msra.mxu1 %v4086_v1 }
 0x7a0   :  { %1584 = vmatprep.subr.bf16.mxu0 %v4089_v14  ;;  %1625 = vmatprep.subr.bf16.mxu1 %v4092_v27 }
 0x7a3   :  { %1585 = vmatpush1.bf16.msra.mxu0 %v4095_v15  ;;  %1626 = vmatpush1.bf16.msra.mxu1 %v4098_v16 }
 0x7a4   :  { %1586 = vmatprep.subr.bf16.mxu0 %v4101_v36  ;;  %1627 = vmatprep.subr.bf16.mxu1 %v4104_v30 }
 0x7a7   :  { %1587 = vmatpush1.bf16.msra.mxu0 %v4107_v31  ;;  %1628 = vmatpush1.bf16.msra.mxu1 %v4110_v32 }
 0x7a8   :  { %1677 = vmatprep.subr.bf16.mxu0 %v4021_v28  ;;  %1718 = vmatprep.subr.bf16.mxu1 %v4024_v29 }
 0x85d   :  { %v1501_v37 = vpop.f32.mrb[60].mxu0  ;;  %v1542_v48 = vpop.f32.mrb[60].mxu1 }
 0x85e   :  { %v1549_v50 = vadd.f32 %v1501_v37, %v4743_v49  ;;  %v1551_v52 = vadd.f32 %v1542_v48, %v4744_v51  ;;  %v1503_v60 = vpop.f32.mrb[61].mxu0  ;;  %v1544_v4 = vpop.f32.mrb[61].mxu1 }
 0x85f   :  { %v1550_v21 = vadd.f32 %v1503_v60, %v4745_v20  ;;  %v1552_v23 = vadd.f32 %v1544_v4, %v4746_v22  ;;  %v1505_v25 = vpop.f32.mrb[62].mxu0  ;;  %v1546_v26 = vpop.f32.mrb[62].mxu1  ;;  %v4747_v60 = vld [vmem:[#allocation41_spill] sm:$0xff]  ;;  %v4748_v20 = vld [vmem:[#allocation42_spill] sm:$0xff] }
 0x860   :  { %v1553_v10 = vmul.f32 0.5, %v1549_v50  ;;  %v1506_v7 = vpop.f32.mrb[63].mxu0  ;;  %v1547_v8 = vpop.f32.mrb[63].mxu1  ;;  %v4749_v25 = vld [vmem:[#allocation43_spill] sm:$0xff] }
 0x861   :  { %v1557_v33 = vmul.f32 0.5, %v1550_v21  ;;  %v1562_v34 = vmul.f32 0.5, %v1552_v23 }
 0x862   :  { %3022 = vtanh.f32 %v1553_v10  ;;  %v4750_v10 = vld [vmem:[#allocation44_spill] sm:$0xff] }
 0x863   :  { %3024 = vtanh.f32 %v1557_v33 }
 0x864   :  { %3026 = vtanh.f32 %v1551_v52 }
 0x865   :  { %3028 = vtanh.f32 %v1562_v34 }
 0x86c   :  { %v3023_v35 = vpop.eup %3022 }
 0x86d   :  { %v3025_v38 = vpop.eup %3024  ;;  %v1555_v24 = vmul.f32 0.5, %v3023_v35 }
 0x86e   :  { %v1559_v39 = vmul.f32 0.5, %v3025_v38  ;;  %v3027_v43 = vpop.eup %3026 }
 0x86f   :  { %v1556_v40 = vadd.f32 0.5, %v1555_v24  ;;  %v3029_v47 = vpop.eup %3028 }
 0x870   :  { %v1560_v5 = vadd.f32 0.5, %v1559_v39  ;;  %v1564_v37 = vmul.f32 0.5, %v3029_v47 }
 0x871   :  { %v1567_v44 = vmul.f32 %v3027_v43, %v1556_v40 }
 0x872   :  { %v1566_v45 = vmul.f32 %v1560_v5, %v4204_v41  ;;  %v1565_v48 = vadd.f32 0.5, %v1564_v37 }
 0x874   :  { %v4246_v46 = vadd.f32 %v1567_v44, %v1566_v45 }
 0x876   :  { %3030 = vtanh.f32 %v4246_v46 }
 0x880   :  { %v3031_v49 = vpop.eup %3030 }
 0x881   :  { %v1570_v50 = vmul.f32 %v3031_v49, %v1565_v48 }
 0x883   :  { %v1571_v51 = vpack.c.bf16 %v1570_v50, %v1570_v50 }
 0x885   :  { %1605 = vmatmul.mubr.bf16.vlgmr.msra.gmra.mrb[64].mxu0 %v1571_v51  ;;  %1646 = vmatmul.mubr.bf16.vlgmr.msra.gmra.mrb[64].mxu1 %v1571_v51 }
 0x886   :  { %1678 = vmatpush1.bf16.msra.mxu0 %v3975_v19  ;;  %1719 = vmatpush1.bf16.msra.mxu1 %v3978_v59 }
 0x887   :  { %1679 = vmatprep.subr.bf16.mxu0 %v3981_v0  ;;  %1720 = vmatprep.subr.bf16.mxu1 %v3984_v63 }
 0x888   :  { %1709 = vmatprep.mubr.bf16.mxu0 %v4727_v55  ;;  %1750 = vmatprep.mubr.bf16.mxu1 %v4727_v55 }
 0x88a   :  { %1680 = vmatpush1.bf16.msra.mxu0 %v3989_v3  ;;  %1721 = vmatpush1.bf16.msra.mxu1 %v3992_v6 }
 0x88b   :  { %1681 = vmatprep.subr.bf16.mxu0 %v3995_v2  ;;  %1722 = vmatprep.subr.bf16.mxu1 %v4044_v9 }
 0x88e   :  { %1682 = vmatpush1.bf16.msra.mxu0 %v4047_v53  ;;  %1723 = vmatpush1.bf16.msra.mxu1 %v4050_v17 }
 0x88f   :  { %1683 = vmatprep.subr.bf16.mxu0 %v4053_v18  ;;  %1724 = vmatprep.subr.bf16.mxu1 %v4056_v57 }
 0x892   :  { %1684 = vmatpush1.bf16.msra.mxu0 %v4059_v42  ;;  %1725 = vmatpush1.bf16.msra.mxu1 %v4062_v11 }
 0x893   :  { %1685 = vmatprep.subr.bf16.mxu0 %v4065_v54  ;;  %1726 = vmatprep.subr.bf16.mxu1 %v4068_v61 }
 0x896   :  { %1686 = vmatpush1.bf16.msra.mxu0 %v4071_v13  ;;  %1727 = vmatpush1.bf16.msra.mxu1 %v4074_v56 }
 0x897   :  { %1687 = vmatprep.subr.bf16.mxu0 %v4077_v62  ;;  %1728 = vmatprep.subr.bf16.mxu1 %v4080_v58 }
 0x89a   :  { %1688 = vmatpush1.bf16.msra.mxu0 %v4083_v12  ;;  %1729 = vmatpush1.bf16.msra.mxu1 %v4086_v1 }
 0x89b   :  { %1689 = vmatprep.subr.bf16.mxu0 %v4089_v14  ;;  %1730 = vmatprep.subr.bf16.mxu1 %v4092_v27 }
 0x89e   :  { %1690 = vmatpush1.bf16.msra.mxu0 %v4095_v15  ;;  %1731 = vmatpush1.bf16.msra.mxu1 %v4098_v16 }
 0x89f   :  { %1691 = vmatprep.subr.bf16.mxu0 %v4101_v36  ;;  %1732 = vmatprep.subr.bf16.mxu1 %v4104_v30 }
 0x8a2   :  { %1692 = vmatpush1.bf16.msra.mxu0 %v4107_v31  ;;  %1733 = vmatpush1.bf16.msra.mxu1 %v4110_v32 }
 0x8a3   :  { %1782 = vmatprep.subr.bf16.mxu0 %v4021_v28  ;;  %1823 = vmatprep.subr.bf16.mxu1 %v4024_v29 }
 0x958   :  { %v1606_v41 = vpop.f32.mrb[64].mxu0  ;;  %v1647_v52 = vpop.f32.mrb[64].mxu1 }
 0x959   :  { %v1654_v4 = vadd.f32 %v1606_v41, %v4747_v60  ;;  %v1656_v21 = vadd.f32 %v1647_v52, %v4748_v20  ;;  %v1608_v22 = vpop.f32.mrb[65].mxu0  ;;  %v1649_v23 = vpop.f32.mrb[65].mxu1 }
 0x95a   :  { %v1655_v26 = vadd.f32 %v1608_v22, %v4749_v25  ;;  %v1657_v7 = vadd.f32 %v1649_v23, %v4750_v10  ;;  %v1610_v8 = vpop.f32.mrb[66].mxu0  ;;  %v1651_v33 = vpop.f32.mrb[66].mxu1  ;;  %v4751_v22 = vld [vmem:[#allocation45_spill] sm:$0xff]  ;;  %v4752_v25 = vld [vmem:[#allocation46_spill] sm:$0xff] }
 0x95b   :  { %v1658_v34 = vmul.f32 0.5, %v1654_v4  ;;  %v1611_v35 = vpop.f32.mrb[67].mxu0  ;;  %v1652_v38 = vpop.f32.mrb[67].mxu1  ;;  %v4753_v8 = vld [vmem:[#allocation47_spill] sm:$0xff] }
 0x95c   :  { %v1662_v24 = vmul.f32 0.5, %v1655_v26  ;;  %v1667_v39 = vmul.f32 0.5, %v1657_v7 }
 0x95d   :  { %3032 = vtanh.f32 %v1658_v34  ;;  %v4754_v34 = vld [vmem:[#allocation48_spill] sm:$0xff] }
 0x95e   :  { %3034 = vtanh.f32 %v1662_v24 }
 0x95f   :  { %3036 = vtanh.f32 %v1656_v21 }
 0x960   :  { %3038 = vtanh.f32 %v1667_v39 }
 0x967   :  { %v3033_v40 = vpop.eup %3032 }
 0x968   :  { %v3035_v43 = vpop.eup %3034  ;;  %v1660_v5 = vmul.f32 0.5, %v3033_v40 }
 0x969   :  { %v1664_v44 = vmul.f32 0.5, %v3035_v43  ;;  %v3037_v47 = vpop.eup %3036 }
 0x96a   :  { %v1661_v45 = vadd.f32 0.5, %v1660_v5  ;;  %v3039_v51 = vpop.eup %3038 }
 0x96b   :  { %v1665_v37 = vadd.f32 0.5, %v1664_v44  ;;  %v1669_v41 = vmul.f32 0.5, %v3039_v51 }
 0x96c   :  { %v1672_v48 = vmul.f32 %v3037_v47, %v1661_v45 }
 0x96d   :  { %v1671_v49 = vmul.f32 %v1665_v37, %v4246_v46  ;;  %v1670_v52 = vadd.f32 0.5, %v1669_v41 }
 0x96f   :  { %v4288_v50 = vadd.f32 %v1672_v48, %v1671_v49 }
 0x971   :  { %3040 = vtanh.f32 %v4288_v50 }
 0x97b   :  { %v3041_v60 = vpop.eup %3040 }
 0x97c   :  { %v1675_v4 = vmul.f32 %v3041_v60, %v1670_v52 }
 0x97e   :  { %v1676_v20 = vpack.c.bf16 %v1675_v4, %v1675_v4 }
 0x980   :  { %1710 = vmatmul.mubr.bf16.vlgmr.msra.gmra.mrb[68].mxu0 %v1676_v20  ;;  %1751 = vmatmul.mubr.bf16.vlgmr.msra.gmra.mrb[68].mxu1 %v1676_v20 }
 0x981   :  { %1783 = vmatpush1.bf16.msra.mxu0 %v3975_v19  ;;  %1824 = vmatpush1.bf16.msra.mxu1 %v3978_v59 }
 0x982   :  { %1784 = vmatprep.subr.bf16.mxu0 %v3981_v0  ;;  %1825 = vmatprep.subr.bf16.mxu1 %v3984_v63 }
 0x983   :  { %1814 = vmatprep.mubr.bf16.mxu0 %v4727_v55  ;;  %1855 = vmatprep.mubr.bf16.mxu1 %v4727_v55 }
 0x985   :  { %1785 = vmatpush1.bf16.msra.mxu0 %v3989_v3  ;;  %1826 = vmatpush1.bf16.msra.mxu1 %v3992_v6 }
 0x986   :  { %1786 = vmatprep.subr.bf16.mxu0 %v3995_v2  ;;  %1827 = vmatprep.subr.bf16.mxu1 %v4044_v9 }
 0x989   :  { %1787 = vmatpush1.bf16.msra.mxu0 %v4047_v53  ;;  %1828 = vmatpush1.bf16.msra.mxu1 %v4050_v17 }
 0x98a   :  { %1788 = vmatprep.subr.bf16.mxu0 %v4053_v18  ;;  %1829 = vmatprep.subr.bf16.mxu1 %v4056_v57 }
 0x98d   :  { %1789 = vmatpush1.bf16.msra.mxu0 %v4059_v42  ;;  %1830 = vmatpush1.bf16.msra.mxu1 %v4062_v11 }
 0x98e   :  { %1790 = vmatprep.subr.bf16.mxu0 %v4065_v54  ;;  %1831 = vmatprep.subr.bf16.mxu1 %v4068_v61 }
 0x991   :  { %1791 = vmatpush1.bf16.msra.mxu0 %v4071_v13  ;;  %1832 = vmatpush1.bf16.msra.mxu1 %v4074_v56 }
 0x992   :  { %1792 = vmatprep.subr.bf16.mxu0 %v4077_v62  ;;  %1833 = vmatprep.subr.bf16.mxu1 %v4080_v58 }
 0x995   :  { %1793 = vmatpush1.bf16.msra.mxu0 %v4083_v12  ;;  %1834 = vmatpush1.bf16.msra.mxu1 %v4086_v1 }
 0x996   :  { %1794 = vmatprep.subr.bf16.mxu0 %v4089_v14  ;;  %1835 = vmatprep.subr.bf16.mxu1 %v4092_v27 }
 0x999   :  { %1795 = vmatpush1.bf16.msra.mxu0 %v4095_v15  ;;  %1836 = vmatpush1.bf16.msra.mxu1 %v4098_v16 }
 0x99a   :  { %1796 = vmatprep.subr.bf16.mxu0 %v4101_v36  ;;  %1837 = vmatprep.subr.bf16.mxu1 %v4104_v30 }
 0x99d   :  { %1797 = vmatpush1.bf16.msra.mxu0 %v4107_v31  ;;  %1838 = vmatpush1.bf16.msra.mxu1 %v4110_v32 }
 0x99e   :  { %1887 = vmatprep.subr.bf16.mxu0 %v4021_v28  ;;  %1928 = vmatprep.subr.bf16.mxu1 %v4024_v29 }
 0xa53   :  { %v1711_v46 = vpop.f32.mrb[68].mxu0  ;;  %v1752_v21 = vpop.f32.mrb[68].mxu1 }
 0xa54   :  { %v1759_v23 = vadd.f32 %v1711_v46, %v4751_v22  ;;  %v1761_v26 = vadd.f32 %v1752_v21, %v4752_v25  ;;  %v1713_v10 = vpop.f32.mrb[69].mxu0  ;;  %v1754_v7 = vpop.f32.mrb[69].mxu1 }
 0xa55   :  { %v1760_v33 = vadd.f32 %v1713_v10, %v4753_v8  ;;  %v1762_v35 = vadd.f32 %v1754_v7, %v4754_v34  ;;  %v1715_v38 = vpop.f32.mrb[70].mxu0  ;;  %v1756_v24 = vpop.f32.mrb[70].mxu1  ;;  %v4758_v7 = vld [vmem:[#allocation52_spill] sm:$0xff] }
 0xa56   :  { %v1763_v39 = vmul.f32 0.5, %v1759_v23  ;;  %v1716_v40 = vpop.f32.mrb[71].mxu0  ;;  %v1757_v43 = vpop.f32.mrb[71].mxu1 }
 0xa57   :  { %v1767_v5 = vmul.f32 0.5, %v1760_v33  ;;  %v1772_v44 = vmul.f32 0.5, %v1762_v35 }
 0xa58   :  { %3042 = vtanh.f32 %v1763_v39 }
 0xa59   :  { %3044 = vtanh.f32 %v1767_v5 }
 0xa5a   :  { %3046 = vtanh.f32 %v1761_v26  ;;  %v4757_v26 = vld [vmem:[#allocation51_spill] sm:$0xff] }
 0xa5b   :  { %3048 = vtanh.f32 %v1772_v44 }
 0xa62   :  { %v3043_v45 = vpop.eup %3042 }
 0xa63   :  { %v3045_v47 = vpop.eup %3044  ;;  %v1765_v37 = vmul.f32 0.5, %v3043_v45 }
 0xa64   :  { %v1769_v48 = vmul.f32 0.5, %v3045_v47  ;;  %v3047_v51 = vpop.eup %3046 }
 0xa65   :  { %v1766_v49 = vadd.f32 0.5, %v1765_v37  ;;  %v3049_v20 = vpop.eup %3048 }
 0xa66   :  { %v1770_v41 = vadd.f32 0.5, %v1769_v48  ;;  %v1774_v46 = vmul.f32 0.5, %v3049_v20 }
 0xa67   :  { %v1777_v52 = vmul.f32 %v3047_v51, %v1766_v49 }
 0xa68   :  { %v1776_v60 = vmul.f32 %v1770_v41, %v4288_v50  ;;  %v1775_v21 = vadd.f32 0.5, %v1774_v46 }
 0xa6a   :  { %v4330_v4 = vadd.f32 %v1777_v52, %v1776_v60 }
 0xa6c   :  { %3050 = vtanh.f32 %v4330_v4 }
 0xa76   :  { %v3051_v22 = vpop.eup %3050 }
 0xa77   :  { %v1780_v23 = vmul.f32 %v3051_v22, %v1775_v21  ;;  %v4375_v21 = vld [vmem:[#allocation9] ss:$16 sps:$4 sm:$0xff]   ;;  %v4378_v22 = vld [vmem:[#allocation9 + $0x8] ss:$16 sps:$4 sm:$0xff]  }
 0xa79   :  { %v1781_v25 = vpack.c.bf16 %v1780_v23, %v1780_v23  ;;  %v4384_v23 = vld [vmem:[#allocation9 + $0x2c] ss:$16 sps:$4 sm:$0xff]  }
 0xa7b   :  { %1815 = vmatmul.mubr.bf16.vlgmr.msra.gmra.mrb[72].mxu0 %v1781_v25  ;;  %1856 = vmatmul.mubr.bf16.vlgmr.msra.gmra.mrb[72].mxu1 %v1781_v25  ;;  %v4389_v25 = vld [vmem:[#allocation9 + $0x20] ss:$16 sps:$4 sm:$0xff]  }
 0xa7c   :  { %1888 = vmatpush1.bf16.msra.mxu0 %v3975_v19  ;;  %1929 = vmatpush1.bf16.msra.mxu1 %v3978_v59 }
 0xa7d   :  { %1889 = vmatprep.subr.bf16.mxu0 %v3981_v0  ;;  %1930 = vmatprep.subr.bf16.mxu1 %v3984_v63  ;;  %v4755_v0 = vld [vmem:[#allocation49_spill] sm:$0xff] }
 0xa7e   :  { %1919 = vmatprep.mubr.bf16.mxu0 %v4727_v55  ;;  %1960 = vmatprep.mubr.bf16.mxu1 %v4727_v55 }
 0xa80   :  { %1890 = vmatpush1.bf16.msra.mxu0 %v3989_v3  ;;  %1931 = vmatpush1.bf16.msra.mxu1 %v3992_v6  ;;  %v4756_v3 = vld [vmem:[#allocation50_spill] sm:$0xff] }
 0xa81   :  { %1891 = vmatprep.subr.bf16.mxu0 %v3995_v2  ;;  %1932 = vmatprep.subr.bf16.mxu1 %v4044_v9 }
 0xa84   :  { %1892 = vmatpush1.bf16.msra.mxu0 %v4047_v53  ;;  %1933 = vmatpush1.bf16.msra.mxu1 %v4050_v17 }
 0xa85   :  { %1893 = vmatprep.subr.bf16.mxu0 %v4053_v18  ;;  %1934 = vmatprep.subr.bf16.mxu1 %v4056_v57 }
 0xa88   :  { %1894 = vmatpush1.bf16.msra.mxu0 %v4059_v42  ;;  %1935 = vmatpush1.bf16.msra.mxu1 %v4062_v11 }
 0xa89   :  { %1895 = vmatprep.subr.bf16.mxu0 %v4065_v54  ;;  %1936 = vmatprep.subr.bf16.mxu1 %v4068_v61 }
 0xa8c   :  { %1896 = vmatpush1.bf16.msra.mxu0 %v4071_v13  ;;  %1937 = vmatpush1.bf16.msra.mxu1 %v4074_v56 }
 0xa8d   :  { %1897 = vmatprep.subr.bf16.mxu0 %v4077_v62  ;;  %1938 = vmatprep.subr.bf16.mxu1 %v4080_v58 }
 0xa90   :  { %1898 = vmatpush1.bf16.msra.mxu0 %v4083_v12  ;;  %1939 = vmatpush1.bf16.msra.mxu1 %v4086_v1 }
 0xa91   :  { %1899 = vmatprep.subr.bf16.mxu0 %v4089_v14  ;;  %1940 = vmatprep.subr.bf16.mxu1 %v4092_v27 }
 0xa94   :  { %1900 = vmatpush1.bf16.msra.mxu0 %v4095_v15  ;;  %1941 = vmatpush1.bf16.msra.mxu1 %v4098_v16 }
 0xa95   :  { %1901 = vmatprep.subr.bf16.mxu0 %v4101_v36  ;;  %1942 = vmatprep.subr.bf16.mxu1 %v4104_v30 }
 0xa98   :  { %1902 = vmatpush1.bf16.msra.mxu0 %v4107_v31  ;;  %1943 = vmatpush1.bf16.msra.mxu1 %v4110_v32 }
 0xa99   :  { %1992 = vmatprep.subr.bf16.mxu0 %v4021_v28  ;;  %2033 = vmatprep.subr.bf16.mxu1 %v4024_v29 }
 0xb4e   :  { %v1816_v19 = vpop.f32.mrb[72].mxu0  ;;  %v1857_v59 = vpop.f32.mrb[72].mxu1 }
 0xb4f   :  { %v1864_v63 = vadd.f32 %v1816_v19, %v4755_v0  ;;  %v1866_v6 = vadd.f32 %v1857_v59, %v4756_v3  ;;  %v1818_v2 = vpop.f32.mrb[73].mxu0  ;;  %v1859_v50 = vpop.f32.mrb[73].mxu1  ;;  %v4392_v19 = vld [vmem:[#allocation9 + $0x28] ss:$16 sps:$4 sm:$0xff]   ;;  %v4395_v59 = vld [vmem:[#allocation9 + $0x44] ss:$16 sps:$4 sm:$0xff]  }
 0xb50   :  { %v1865_v10 = vadd.f32 %v1818_v2, %v4757_v26  ;;  %v1867_v8 = vadd.f32 %v1859_v50, %v4758_v7  ;;  %v1820_v33 = vpop.f32.mrb[74].mxu0  ;;  %v1861_v34 = vpop.f32.mrb[74].mxu1 }
 0xb51   :  { %v1868_v35 = vmul.f32 0.5, %v1864_v63  ;;  %v1821_v38 = vpop.f32.mrb[75].mxu0  ;;  %v1862_v24 = vpop.f32.mrb[75].mxu1 }
 0xb52   :  { %v1872_v28 = vmul.f32 0.5, %v1865_v10  ;;  %v1877_v29 = vmul.f32 0.5, %v1867_v8  ;;  %v4444_v24 = vld [vmem:[#allocation9 + $0x4c] ss:$16 sps:$4 sm:$0xff]  }
 0xb53   :  { %3052 = vtanh.f32 %v1868_v35 }
 0xb54   :  { %3054 = vtanh.f32 %v1872_v28  ;;  %v4447_v28 = vld [vmem:[#allocation9 + $0x40] ss:$16 sps:$4 sm:$0xff]  }
 0xb55   :  { %3056 = vtanh.f32 %v1866_v6 }
 0xb56   :  { %3058 = vtanh.f32 %v1877_v29  ;;  %v4450_v29 = vld [vmem:[#allocation9 + $0x48] ss:$16 sps:$4 sm:$0xff]  }
 0xb5d   :  { %v3053_v39 = vpop.eup %3052 }
 0xb5e   :  { %v3055_v40 = vpop.eup %3054  ;;  %v1870_v43 = vmul.f32 0.5, %v3053_v39  ;;  %v4453_v39 = vld [vmem:[#allocation9 + $0x64] ss:$16 sps:$4 sm:$0xff]  }
 0xb5f   :  { %v1874_v5 = vmul.f32 0.5, %v3055_v40  ;;  %v3057_v45 = vpop.eup %3056  ;;  %v4456_v40 = vld [vmem:[#allocation9 + $0x6c] ss:$16 sps:$4 sm:$0xff]  }
 0xb60   :  { %v1871_v44 = vadd.f32 0.5, %v1870_v43  ;;  %v3059_v51 = vpop.eup %3058  ;;  %v4459_v43 = vld [vmem:[#allocation9 + $0x60] ss:$16 sps:$4 sm:$0xff]  }
 0xb61   :  { %v1875_v47 = vadd.f32 0.5, %v1874_v5  ;;  %v1879_v41 = vmul.f32 0.5, %v3059_v51  ;;  %v4462_v5 = vld [vmem:[#allocation9 + $0x68] ss:$16 sps:$4 sm:$0xff]   ;;  %v4483_v51 = vld [vmem:[#allocation9 + $0xa0] ss:$16 sps:$4 sm:$0xff]  }
 0xb62   :  { %v1882_v37 = vmul.f32 %v3057_v45, %v1871_v44  ;;  %v4465_v44 = vld [vmem:[#allocation9 + $0x84] ss:$16 sps:$4 sm:$0xff]   ;;  %v4468_v45 = vld [vmem:[#allocation9 + $0x8c] ss:$16 sps:$4 sm:$0xff]  }
 0xb63   :  { %v1881_v48 = vmul.f32 %v1875_v47, %v4330_v4  ;;  %v1880_v52 = vadd.f32 0.5, %v1879_v41  ;;  %v4381_v4 = vld [vmem:[#allocation9 + $0x24] ss:$16 sps:$4 sm:$0xff]   ;;  %v4471_v47 = vld [vmem:[#allocation9 + $0x80] ss:$16 sps:$4 sm:$0xff]  }
 0xb64   :  { %v4486_v41 = vld [vmem:[#allocation9 + $0xa8] ss:$16 sps:$4 sm:$0xff]  }
 0xb65   :  { %v4372_v49 = vadd.f32 %v1882_v37, %v1881_v48  ;;  %v4474_v37 = vld [vmem:[#allocation9 + $0x88] ss:$16 sps:$4 sm:$0xff]   ;;  %v4477_v48 = vld [vmem:[#allocation9 + $0xa4] ss:$16 sps:$4 sm:$0xff]  }
 0xb67   :  { %3060 = vtanh.f32 %v4372_v49 }
 0xb71   :  { %v3061_v60 = vpop.eup %3060 }
 0xb72   :  { %v1885_v20 = vmul.f32 %v3061_v60, %v1880_v52  ;;  %v4489_v52 = vld [vmem:[#allocation9 + $0xc4] ss:$16 sps:$4 sm:$0xff]   ;;  %v4492_v60 = vld [vmem:[#allocation9 + $0xcc] ss:$16 sps:$4 sm:$0xff]  }
 0xb74   :  { %v1886_v46 = vpack.c.bf16 %v1885_v20, %v1885_v20  ;;  %v4495_v20 = vld [vmem:[#allocation9 + $0xc0] ss:$16 sps:$4 sm:$0xff]  }
 0xb76   :  { %1920 = vmatmul.mubr.bf16.vlgmr.msra.gmra.mrb[76].mxu0 %v1886_v46  ;;  %1961 = vmatmul.mubr.bf16.vlgmr.msra.gmra.mrb[76].mxu1 %v1886_v46  ;;  %v4498_v46 = vld [vmem:[#allocation9 + $0xc8] ss:$16 sps:$4 sm:$0xff]  }
 0xb77   :  { %1993 = vmatpush1.bf16.msra.mxu0 %v4375_v21  ;;  %2034 = vmatpush1.bf16.msra.mxu1 %v4378_v22 }
 0xb78   :  { %1994 = vmatprep.subr.bf16.mxu0 %v4381_v4  ;;  %2035 = vmatprep.subr.bf16.mxu1 %v4384_v23 }
 0xb79   :  { %2024 = vmatprep.mubr.bf16.mxu0 %v4727_v55  ;;  %2065 = vmatprep.mubr.bf16.mxu1 %v4727_v55 }
 0xb7b   :  { %1995 = vmatpush1.bf16.msra.mxu0 %v4389_v25  ;;  %2036 = vmatpush1.bf16.msra.mxu1 %v4392_v19 }
 0xb7c   :  { %1996 = vmatprep.subr.bf16.mxu0 %v4395_v59  ;;  %2037 = vmatprep.subr.bf16.mxu1 %v4044_v9  ;;  %v4421_v9 = vld [vmem:[#allocation9 + $0x4] ss:$16 sps:$4 sm:$0xff]  }
 0xb7f   :  { %1997 = vmatpush1.bf16.msra.mxu0 %v4047_v53  ;;  %2038 = vmatpush1.bf16.msra.mxu1 %v4050_v17  ;;  %v4424_v53 = vld [vmem:[#allocation9 + $0xc] ss:$16 sps:$4 sm:$0xff]  }
 0xb80   :  { %1998 = vmatprep.subr.bf16.mxu0 %v4053_v18  ;;  %2039 = vmatprep.subr.bf16.mxu1 %v4056_v57  ;;  %v4759_v57 = vld [vmem:[#allocation53_spill] sm:$0xff] }
 0xb83   :  { %1999 = vmatpush1.bf16.msra.mxu0 %v4059_v42  ;;  %2040 = vmatpush1.bf16.msra.mxu1 %v4062_v11  ;;  %v4760_v11 = vld [vmem:[#allocation54_spill] sm:$0xff] }
 0xb84   :  { %2000 = vmatprep.subr.bf16.mxu0 %v4065_v54  ;;  %2041 = vmatprep.subr.bf16.mxu1 %v4068_v61 }
 0xb87   :  { %2001 = vmatpush1.bf16.msra.mxu0 %v4071_v13  ;;  %2042 = vmatpush1.bf16.msra.mxu1 %v4074_v56  ;;  %v4761_v56 = vld [vmem:[#allocation55_spill] sm:$0xff] }
 0xb88   :  { %2002 = vmatprep.subr.bf16.mxu0 %v4077_v62  ;;  %2043 = vmatprep.subr.bf16.mxu1 %v4080_v58  ;;  %v4762_v58 = vld [vmem:[#allocation56_spill] sm:$0xff] }
 0xb8b   :  { %2003 = vmatpush1.bf16.msra.mxu0 %v4083_v12  ;;  %2044 = vmatpush1.bf16.msra.mxu1 %v4086_v1 }
 0xb8c   :  { %2004 = vmatprep.subr.bf16.mxu0 %v4089_v14  ;;  %2045 = vmatprep.subr.bf16.mxu1 %v4092_v27 }
 0xb8f   :  { %2005 = vmatpush1.bf16.msra.mxu0 %v4095_v15  ;;  %2046 = vmatpush1.bf16.msra.mxu1 %v4098_v16 }
 0xb90   :  { %2006 = vmatprep.subr.bf16.mxu0 %v4101_v36  ;;  %2047 = vmatprep.subr.bf16.mxu1 %v4104_v30 }
 0xb93   :  { %2007 = vmatpush1.bf16.msra.mxu0 %v4107_v31  ;;  %2048 = vmatpush1.bf16.msra.mxu1 %v4110_v32 }
 0xb94   :  { %2097 = vmatprep.subr.bf16.mxu0 %v4421_v9  ;;  %2138 = vmatprep.subr.bf16.mxu1 %v4424_v53 }
 0xc49   :  { %v1921_v17 = vpop.f32.mrb[76].mxu0  ;;  %v1962_v18 = vpop.f32.mrb[76].mxu1 }
 0xc4a   :  { %v1969_v42 = vadd.f32 %v1921_v17, %v4759_v57  ;;  %v1971_v54 = vadd.f32 %v1962_v18, %v4760_v11  ;;  %v1923_v61 = vpop.f32.mrb[77].mxu0  ;;  %v1964_v13 = vpop.f32.mrb[77].mxu1  ;;  %v4501_v17 = vld [vmem:[#allocation9 + $0xe4] ss:$16 sps:$4 sm:$0xff]   ;;  %v4504_v18 = vld [vmem:[#allocation9 + $0xec] ss:$16 sps:$4 sm:$0xff]  }
 0xc4b   :  { %v1970_v62 = vadd.f32 %v1923_v61, %v4761_v56  ;;  %v1972_v12 = vadd.f32 %v1964_v13, %v4762_v58  ;;  %v1925_v1 = vpop.f32.mrb[78].mxu0  ;;  %v1966_v14 = vpop.f32.mrb[78].mxu1  ;;  %v4507_v57 = vld [vmem:[#allocation9 + $0xe0] ss:$16 sps:$4 sm:$0xff]   ;;  %v4764_v56 = vld [vmem:[#allocation58_spill] sm:$0xff] }
 0xc4c   :  { %v1973_v27 = vmul.f32 0.5, %v1969_v42  ;;  %v1926_v15 = vpop.f32.mrb[79].mxu0  ;;  %v1967_v16 = vpop.f32.mrb[79].mxu1  ;;  %v4510_v42 = vld [vmem:[#allocation9 + $0xe8] ss:$16 sps:$4 sm:$0xff]   ;;  %v4763_v61 = vld [vmem:[#allocation57_spill] sm:$0xff] }
 0xc4d   :  { %v1977_v36 = vmul.f32 0.5, %v1970_v62  ;;  %v1982_v30 = vmul.f32 0.5, %v1972_v12  ;;  %v4765_v1 = vld [vmem:[#allocation59_spill] sm:$0xff] }
 0xc4e   :  { %3062 = vtanh.f32 %v1973_v27  ;;  %v4766_v27 = vld [vmem:[#allocation60_spill] sm:$0xff] }
 0xc4f   :  { %3064 = vtanh.f32 %v1977_v36 }
 0xc50   :  { %3066 = vtanh.f32 %v1971_v54 }
 0xc51   :  { %3068 = vtanh.f32 %v1982_v30 }
 0xc58   :  { %v3063_v31 = vpop.eup %3062 }
 0xc59   :  { %v3065_v32 = vpop.eup %3064  ;;  %v1975_v0 = vmul.f32 0.5, %v3063_v31 }
 0xc5a   :  { %v1979_v63 = vmul.f32 0.5, %v3065_v32  ;;  %v3067_v6 = vpop.eup %3066 }
 0xc5b   :  { %v1976_v3 = vadd.f32 0.5, %v1975_v0  ;;  %v3069_v7 = vpop.eup %3068 }
 0xc5c   :  { %v1980_v2 = vadd.f32 0.5, %v1979_v63  ;;  %v1984_v8 = vmul.f32 0.5, %v3069_v7 }
 0xc5d   :  { %v1987_v50 = vmul.f32 %v3067_v6, %v1976_v3 }
 0xc5e   :  { %v1986_v26 = vmul.f32 %v1980_v2, %v4372_v49  ;;  %v1985_v33 = vadd.f32 0.5, %v1984_v8  ;;  %v4480_v49 = vld [vmem:[#allocation9 + $0xac] ss:$16 sps:$4 sm:$0xff]  }
 0xc60   :  { %v4432_v10 = vadd.f32 %v1987_v50, %v1986_v26 }
 0xc62   :  { %3070 = vtanh.f32 %v4432_v10 }
 0xc6c   :  { %v3071_v34 = vpop.eup %3070 }
 0xc6d   :  { %v1990_v35 = vmul.f32 %v3071_v34, %v1985_v33 }
 0xc6f   :  { %v1991_v38 = vpack.c.bf16 %v1990_v35, %v1990_v35 }
 0xc71   :  { %2025 = vmatmul.mubr.bf16.vlgmr.msra.gmra.mrb[80].mxu0 %v1991_v38  ;;  %2066 = vmatmul.mubr.bf16.vlgmr.msra.gmra.mrb[80].mxu1 %v1991_v38 }
 0xc72   :  { %2098 = vmatpush1.bf16.msra.mxu0 %v4375_v21  ;;  %2139 = vmatpush1.bf16.msra.mxu1 %v4378_v22 }
 0xc73   :  { %2099 = vmatprep.subr.bf16.mxu0 %v4381_v4  ;;  %2140 = vmatprep.subr.bf16.mxu1 %v4384_v23 }
 0xc74   :  { %2129 = vmatprep.mubr.bf16.mxu0 %v4727_v55  ;;  %2170 = vmatprep.mubr.bf16.mxu1 %v4727_v55 }
 0xc76   :  { %2100 = vmatpush1.bf16.msra.mxu0 %v4389_v25  ;;  %2141 = vmatpush1.bf16.msra.mxu1 %v4392_v19 }
 0xc77   :  { %2101 = vmatprep.subr.bf16.mxu0 %v4395_v59  ;;  %2142 = vmatprep.subr.bf16.mxu1 %v4444_v24 }
 0xc7a   :  { %2102 = vmatpush1.bf16.msra.mxu0 %v4447_v28  ;;  %2143 = vmatpush1.bf16.msra.mxu1 %v4450_v29 }
 0xc7b   :  { %2103 = vmatprep.subr.bf16.mxu0 %v4453_v39  ;;  %2144 = vmatprep.subr.bf16.mxu1 %v4456_v40 }
 0xc7e   :  { %2104 = vmatpush1.bf16.msra.mxu0 %v4459_v43  ;;  %2145 = vmatpush1.bf16.msra.mxu1 %v4462_v5 }
 0xc7f   :  { %2105 = vmatprep.subr.bf16.mxu0 %v4465_v44  ;;  %2146 = vmatprep.subr.bf16.mxu1 %v4468_v45 }
 0xc82   :  { %2106 = vmatpush1.bf16.msra.mxu0 %v4471_v47  ;;  %2147 = vmatpush1.bf16.msra.mxu1 %v4474_v37 }
 0xc83   :  { %2107 = vmatprep.subr.bf16.mxu0 %v4477_v48  ;;  %2148 = vmatprep.subr.bf16.mxu1 %v4480_v49 }
 0xc86   :  { %2108 = vmatpush1.bf16.msra.mxu0 %v4483_v51  ;;  %2149 = vmatpush1.bf16.msra.mxu1 %v4486_v41 }
 0xc87   :  { %2109 = vmatprep.subr.bf16.mxu0 %v4489_v52  ;;  %2150 = vmatprep.subr.bf16.mxu1 %v4492_v60 }
 0xc8a   :  { %2110 = vmatpush1.bf16.msra.mxu0 %v4495_v20  ;;  %2151 = vmatpush1.bf16.msra.mxu1 %v4498_v46 }
 0xc8b   :  { %2111 = vmatprep.subr.bf16.mxu0 %v4501_v17  ;;  %2152 = vmatprep.subr.bf16.mxu1 %v4504_v18 }
 0xc8e   :  { %2112 = vmatpush1.bf16.msra.mxu0 %v4507_v57  ;;  %2153 = vmatpush1.bf16.msra.mxu1 %v4510_v42 }
 0xc8f   :  { %2202 = vmatprep.subr.bf16.mxu0 %v4421_v9  ;;  %2243 = vmatprep.subr.bf16.mxu1 %v4424_v53 }
 0xd44   :  { %v2026_v11 = vpop.f32.mrb[80].mxu0  ;;  %v2067_v54 = vpop.f32.mrb[80].mxu1 }
 0xd45   :  { %v2074_v13 = vadd.f32 %v2026_v11, %v4763_v61  ;;  %v2076_v62 = vadd.f32 %v2067_v54, %v4764_v56  ;;  %v2028_v58 = vpop.f32.mrb[81].mxu0  ;;  %v2069_v12 = vpop.f32.mrb[81].mxu1 }
 0xd46   :  { %v2075_v14 = vadd.f32 %v2028_v58, %v4765_v1  ;;  %v2077_v15 = vadd.f32 %v2069_v12, %v4766_v27  ;;  %v2030_v16 = vpop.f32.mrb[82].mxu0  ;;  %v2071_v36 = vpop.f32.mrb[82].mxu1  ;;  %v4767_v58 = vld [vmem:[#allocation61_spill] sm:$0xff]  ;;  %v4768_v1 = vld [vmem:[#allocation62_spill] sm:$0xff] }
 0xd47   :  { %v2078_v30 = vmul.f32 0.5, %v2074_v13  ;;  %v2031_v31 = vpop.f32.mrb[83].mxu0  ;;  %v2072_v32 = vpop.f32.mrb[83].mxu1  ;;  %v4769_v16 = vld [vmem:[#allocation63_spill] sm:$0xff] }
 0xd48   :  { %v2082_v0 = vmul.f32 0.5, %v2075_v14  ;;  %v2087_v63 = vmul.f32 0.5, %v2077_v15 }
 0xd49   :  { %3072 = vtanh.f32 %v2078_v30  ;;  %v4770_v30 = vld [vmem:[#allocation64_spill] sm:$0xff] }
 0xd4a   :  { %3074 = vtanh.f32 %v2082_v0 }
 0xd4b   :  { %3076 = vtanh.f32 %v2076_v62 }
 0xd4c   :  { %3078 = vtanh.f32 %v2087_v63 }
 0xd53   :  { %v3073_v3 = vpop.eup %3072 }
 0xd54   :  { %v3075_v6 = vpop.eup %3074  ;;  %v2080_v2 = vmul.f32 0.5, %v3073_v3 }
 0xd55   :  { %v2084_v50 = vmul.f32 0.5, %v3075_v6  ;;  %v3077_v7 = vpop.eup %3076 }
 0xd56   :  { %v2081_v26 = vadd.f32 0.5, %v2080_v2  ;;  %v3079_v38 = vpop.eup %3078 }
 0xd57   :  { %v2085_v8 = vadd.f32 0.5, %v2084_v50  ;;  %v2089_v11 = vmul.f32 0.5, %v3079_v38 }
 0xd58   :  { %v2092_v33 = vmul.f32 %v3077_v7, %v2081_v26 }
 0xd59   :  { %v2091_v34 = vmul.f32 %v2085_v8, %v4432_v10  ;;  %v2090_v54 = vadd.f32 0.5, %v2089_v11 }
 0xd5b   :  { %v4520_v35 = vadd.f32 %v2092_v33, %v2091_v34 }
 0xd5d   :  { %3080 = vtanh.f32 %v4520_v35 }
 0xd67   :  { %v3081_v61 = vpop.eup %3080 }
 0xd68   :  { %v2095_v13 = vmul.f32 %v3081_v61, %v2090_v54 }
 0xd6a   :  { %v2096_v56 = vpack.c.bf16 %v2095_v13, %v2095_v13 }
 0xd6c   :  { %2130 = vmatmul.mubr.bf16.vlgmr.msra.gmra.mrb[84].mxu0 %v2096_v56  ;;  %2171 = vmatmul.mubr.bf16.vlgmr.msra.gmra.mrb[84].mxu1 %v2096_v56 }
 0xd6d   :  { %2203 = vmatpush1.bf16.msra.mxu0 %v4375_v21  ;;  %2244 = vmatpush1.bf16.msra.mxu1 %v4378_v22 }
 0xd6e   :  { %2204 = vmatprep.subr.bf16.mxu0 %v4381_v4  ;;  %2245 = vmatprep.subr.bf16.mxu1 %v4384_v23 }
 0xd6f   :  { %2234 = vmatprep.mubr.bf16.mxu0 %v4727_v55  ;;  %2275 = vmatprep.mubr.bf16.mxu1 %v4727_v55 }
 0xd71   :  { %2205 = vmatpush1.bf16.msra.mxu0 %v4389_v25  ;;  %2246 = vmatpush1.bf16.msra.mxu1 %v4392_v19 }
 0xd72   :  { %2206 = vmatprep.subr.bf16.mxu0 %v4395_v59  ;;  %2247 = vmatprep.subr.bf16.mxu1 %v4444_v24 }
 0xd75   :  { %2207 = vmatpush1.bf16.msra.mxu0 %v4447_v28  ;;  %2248 = vmatpush1.bf16.msra.mxu1 %v4450_v29 }
 0xd76   :  { %2208 = vmatprep.subr.bf16.mxu0 %v4453_v39  ;;  %2249 = vmatprep.subr.bf16.mxu1 %v4456_v40 }
 0xd79   :  { %2209 = vmatpush1.bf16.msra.mxu0 %v4459_v43  ;;  %2250 = vmatpush1.bf16.msra.mxu1 %v4462_v5 }
 0xd7a   :  { %2210 = vmatprep.subr.bf16.mxu0 %v4465_v44  ;;  %2251 = vmatprep.subr.bf16.mxu1 %v4468_v45 }
 0xd7d   :  { %2211 = vmatpush1.bf16.msra.mxu0 %v4471_v47  ;;  %2252 = vmatpush1.bf16.msra.mxu1 %v4474_v37 }
 0xd7e   :  { %2212 = vmatprep.subr.bf16.mxu0 %v4477_v48  ;;  %2253 = vmatprep.subr.bf16.mxu1 %v4480_v49 }
 0xd81   :  { %2213 = vmatpush1.bf16.msra.mxu0 %v4483_v51  ;;  %2254 = vmatpush1.bf16.msra.mxu1 %v4486_v41 }
 0xd82   :  { %2214 = vmatprep.subr.bf16.mxu0 %v4489_v52  ;;  %2255 = vmatprep.subr.bf16.mxu1 %v4492_v60 }
 0xd85   :  { %2215 = vmatpush1.bf16.msra.mxu0 %v4495_v20  ;;  %2256 = vmatpush1.bf16.msra.mxu1 %v4498_v46 }
 0xd86   :  { %2216 = vmatprep.subr.bf16.mxu0 %v4501_v17  ;;  %2257 = vmatprep.subr.bf16.mxu1 %v4504_v18 }
 0xd89   :  { %2217 = vmatpush1.bf16.msra.mxu0 %v4507_v57  ;;  %2258 = vmatpush1.bf16.msra.mxu1 %v4510_v42 }
 0xd8a   :  { %2307 = vmatprep.subr.bf16.mxu0 %v4421_v9  ;;  %2348 = vmatprep.subr.bf16.mxu1 %v4424_v53 }
 0xe3f   :  { %v2131_v10 = vpop.f32.mrb[84].mxu0  ;;  %v2172_v62 = vpop.f32.mrb[84].mxu1 }
 0xe40   :  { %v2179_v12 = vadd.f32 %v2131_v10, %v4767_v58  ;;  %v2181_v14 = vadd.f32 %v2172_v62, %v4768_v1  ;;  %v2133_v27 = vpop.f32.mrb[85].mxu0  ;;  %v2174_v15 = vpop.f32.mrb[85].mxu1 }
 0xe41   :  { %v2180_v36 = vadd.f32 %v2133_v27, %v4769_v16  ;;  %v2182_v31 = vadd.f32 %v2174_v15, %v4770_v30  ;;  %v2135_v32 = vpop.f32.mrb[86].mxu0  ;;  %v2176_v0 = vpop.f32.mrb[86].mxu1  ;;  %v2936_v27 = vld [vmem:[#allocation10] sm:$0xff]   ;;  %v3375_v16 = vmov 0.0   ;;  %v2939_v30 = vld [vmem:[#allocation12 + $0x8] sm:$0xff]  }
 0xe42   :  { %v2183_v63 = vmul.f32 0.5, %v2179_v12  ;;  %v2136_v3 = vpop.f32.mrb[87].mxu0  ;;  %v2177_v6 = vpop.f32.mrb[87].mxu1  ;;  %v2937_v15 = vld [vmem:[#allocation12] sm:$0xff]   ;;  %v2941_v32 = vld [vmem:[#allocation12 + $0x10] sm:$0xff]   ;;  %v2942_v0 = vld [vmem:[#allocation10 + $0x18] sm:$0xff]  }
 0xe43   :  { %v2187_v9 = vmul.f32 0.5, %v2180_v36  ;;  %v2192_v53 = vmul.f32 0.5, %v2182_v31  ;;  %v2938_v36 = vld [vmem:[#allocation10 + $0x8] sm:$0xff]   ;;  %v2940_v31 = vld [vmem:[#allocation10 + $0x10] sm:$0xff]   ;;  %v2944_v3 = vld [vmem:[#allocation10 + $0x20] sm:$0xff]  }
 0xe44   :  { %3082 = vtanh.f32 %v2183_v63  ;;  %v2943_v63 = vld [vmem:[#allocation12 + $0x18] sm:$0xff]   ;;  %v2945_v6 = vld [vmem:[#allocation12 + $0x20] sm:$0xff]  }
 0xe45   :  { %3084 = vtanh.f32 %v2187_v9  ;;  %v2946_v9 = vld [vmem:[#allocation10 + $0x28] sm:$0xff]  }
 0xe46   :  { %3086 = vtanh.f32 %v2181_v14 }
 0xe47   :  { %3088 = vtanh.f32 %v2192_v53  ;;  %v2947_v53 = vld [vmem:[#allocation12 + $0x28] sm:$0xff]  }
 0xe4e   :  { %v3083_v2 = vpop.eup %3082 }
 0xe4f   :  { %v3085_v50 = vpop.eup %3084  ;;  %v2185_v26 = vmul.f32 0.5, %v3083_v2  ;;  %v2948_v2 = vld [vmem:[#allocation10 + $0x30] sm:$0xff]  }
 0xe50   :  { %v2189_v7 = vmul.f32 0.5, %v3085_v50  ;;  %v3087_v33 = vpop.eup %3086  ;;  %v2949_v50 = vld [vmem:[#allocation12 + $0x30] sm:$0xff]  }
 0xe51   :  { %v2186_v8 = vadd.f32 0.5, %v2185_v26  ;;  %v3089_v61 = vpop.eup %3088  ;;  %v2950_v26 = vld [vmem:[#allocation10 + $0x38] sm:$0xff]  }
 0xe52   :  { %v2190_v34 = vadd.f32 0.5, %v2189_v7  ;;  %v2194_v13 = vmul.f32 0.5, %v3089_v61  ;;  %v2951_v7 = vld [vmem:[#allocation12 + $0x38] sm:$0xff]  }
 0xe53   :  { %v2197_v38 = vmul.f32 %v3087_v33, %v2186_v8 }
 0xe54   :  { %v2196_v11 = vmul.f32 %v2190_v34, %v4520_v35  ;;  %v2195_v56 = vadd.f32 0.5, %v2194_v13  ;;  %v4775_v34 = vld [vmem:[#allocation69_spill] sm:$0xff] }
 0xe56   :  { %v4562_v54 = vadd.f32 %v2197_v38, %v2196_v11  ;;  %v4776_v11 = vld [vmem:[#allocation70_spill] sm:$0xff] }
 0xe58   :  { %3090 = vtanh.f32 %v4562_v54 }
 0xe62   :  { %v3091_v10 = vpop.eup %3090 }
 0xe63   :  { %v2200_v62 = vmul.f32 %v3091_v10, %v2195_v56  ;;  %v4777_v56 = vld [vmem:[#allocation71_spill] sm:$0xff] }
 0xe65   :  { %v2201_v58 = vpack.c.bf16 %v2200_v62, %v2200_v62  ;;  %v4778_v62 = vld [vmem:[#allocation72_spill] sm:$0xff] }
 0xe67   :  { %2235 = vmatmul.mubr.bf16.vlgmr.msra.gmra.mrb[88].mxu0 %v2201_v58  ;;  %2276 = vmatmul.mubr.bf16.vlgmr.msra.gmra.mrb[88].mxu1 %v2201_v58 }
 0xe68   :  { %2308 = vmatpush1.bf16.msra.mxu0 %v4375_v21  ;;  %2349 = vmatpush1.bf16.msra.mxu1 %v4378_v22  ;;  %v4771_v22 = vld [vmem:[#allocation65_spill] sm:$0xff] }
 0xe69   :  { %2309 = vmatprep.subr.bf16.mxu0 %v4381_v4  ;;  %2350 = vmatprep.subr.bf16.mxu1 %v4384_v23  ;;  %v4772_v23 = vld [vmem:[#allocation66_spill] sm:$0xff] }
 0xe6a   :  { %2339 = vmatprep.mubr.bf16.mxu0 %v4727_v55  ;;  %2380 = vmatprep.mubr.bf16.mxu1 %v4727_v55 }
 0xe6c   :  { %2310 = vmatpush1.bf16.msra.mxu0 %v4389_v25  ;;  %2351 = vmatpush1.bf16.msra.mxu1 %v4392_v19 }
 0xe6d   :  { %2311 = vmatprep.subr.bf16.mxu0 %v4395_v59  ;;  %2352 = vmatprep.subr.bf16.mxu1 %v4444_v24  ;;  %v4773_v24 = vld [vmem:[#allocation67_spill] sm:$0xff] }
 0xe70   :  { %2312 = vmatpush1.bf16.msra.mxu0 %v4447_v28  ;;  %2353 = vmatpush1.bf16.msra.mxu1 %v4450_v29  ;;  %v4774_v29 = vld [vmem:[#allocation68_spill] sm:$0xff] }
 0xe71   :  { %2313 = vmatprep.subr.bf16.mxu0 %v4453_v39  ;;  %2354 = vmatprep.subr.bf16.mxu1 %v4456_v40 }
 0xe74   :  { %2314 = vmatpush1.bf16.msra.mxu0 %v4459_v43  ;;  %2355 = vmatpush1.bf16.msra.mxu1 %v4462_v5 }
 0xe75   :  { %2315 = vmatprep.subr.bf16.mxu0 %v4465_v44  ;;  %2356 = vmatprep.subr.bf16.mxu1 %v4468_v45 }
 0xe78   :  { %2316 = vmatpush1.bf16.msra.mxu0 %v4471_v47  ;;  %2357 = vmatpush1.bf16.msra.mxu1 %v4474_v37 }
 0xe79   :  { %2317 = vmatprep.subr.bf16.mxu0 %v4477_v48  ;;  %2358 = vmatprep.subr.bf16.mxu1 %v4480_v49 }
 0xe7c   :  { %2318 = vmatpush1.bf16.msra.mxu0 %v4483_v51  ;;  %2359 = vmatpush1.bf16.msra.mxu1 %v4486_v41 }
 0xe7d   :  { %2319 = vmatprep.subr.bf16.mxu0 %v4489_v52  ;;  %2360 = vmatprep.subr.bf16.mxu1 %v4492_v60 }
 0xe80   :  { %2320 = vmatpush1.bf16.msra.mxu0 %v4495_v20  ;;  %2361 = vmatpush1.bf16.msra.mxu1 %v4498_v46 }
 0xe81   :  { %2321 = vmatprep.subr.bf16.mxu0 %v4501_v17  ;;  %2362 = vmatprep.subr.bf16.mxu1 %v4504_v18 }
 0xe84   :  { %2322 = vmatpush1.bf16.msra.mxu0 %v4507_v57  ;;  %2363 = vmatpush1.bf16.msra.mxu1 %v4510_v42 }
 0xe85   :  { %2800 = vmatprep.subr.bf16.mxu0 %v3375_v16  ;;  %2820 = vmatprep.subr.bf16.mxu1 %v3375_v16 }
 0xf3a   :  { %v2236_v55 = vpop.f32.mrb[88].mxu0  ;;  %v2277_v21 = vpop.f32.mrb[88].mxu1 }
 0xf3b   :  { %v2284_v4 = vadd.f32 %v2236_v55, %v4771_v22  ;;  %v2286_v25 = vadd.f32 %v2277_v21, %v4772_v23  ;;  %v2238_v19 = vpop.f32.mrb[89].mxu0  ;;  %v2279_v59 = vpop.f32.mrb[89].mxu1 }
 0xf3c   :  { %v2285_v28 = vadd.f32 %v2238_v19, %v4773_v24  ;;  %v2287_v39 = vadd.f32 %v2279_v59, %v4774_v29  ;;  %v2240_v40 = vpop.f32.mrb[90].mxu0  ;;  %v2281_v43 = vpop.f32.mrb[90].mxu1 }
 0xf3d   :  { %v2288_v5 = vmul.f32 0.5, %v2284_v4  ;;  %v2241_v44 = vpop.f32.mrb[91].mxu0  ;;  %v2282_v45 = vpop.f32.mrb[91].mxu1 }
 0xf3e   :  { %v2292_v47 = vmul.f32 0.5, %v2285_v28  ;;  %v2297_v37 = vmul.f32 0.5, %v2287_v39 }
 0xf3f   :  { %3092 = vtanh.f32 %v2288_v5 }
 0xf40   :  { %3094 = vtanh.f32 %v2292_v47 }
 0xf41   :  { %3096 = vtanh.f32 %v2286_v25 }
 0xf42   :  { %3098 = vtanh.f32 %v2297_v37 }
 0xf49   :  { %v3093_v48 = vpop.eup %3092 }
 0xf4a   :  { %v3095_v49 = vpop.eup %3094  ;;  %v2290_v51 = vmul.f32 0.5, %v3093_v48 }
 0xf4b   :  { %v2294_v41 = vmul.f32 0.5, %v3095_v49  ;;  %v3097_v60 = vpop.eup %3096 }
 0xf4c   :  { %v2291_v52 = vadd.f32 0.5, %v2290_v51  ;;  %v3099_v57 = vpop.eup %3098 }
 0xf4d   :  { %v2295_v20 = vadd.f32 0.5, %v2294_v41  ;;  %v2299_v42 = vmul.f32 0.5, %v3099_v57 }
 0xf4e   :  { %v2302_v46 = vmul.f32 %v3097_v60, %v2291_v52  ;;  %v2764_v52 = vld [vmem:[%s4667_s5] ss:$0 sm:$0xff]  ;;  %s3288_s5 = scalar_lea.vmem %s2665_s29, 128 }
 0xf4f   :  { %v2301_v17 = vmul.f32 %v2295_v20, %v4562_v54  ;;  %v2300_v35 = vadd.f32 0.5, %v2299_v42  ;;  %v2773_v60 = vld [vmem:[%s4669_s7] ss:$0 sm:$0xff]  ;;  %p3289_p12 = scmp.ne.s32.totalorder %s2665_s29, %s3288_s5  ;;  %p3294_p0 = scmp.lt.s32.totalorder %s3288_s5, %s3288_s5 }
 0xf51   :  { %v4602_v18 = vadd.f32 %v2302_v46, %v2301_v17  ;;  %p3295_p1 = por %p3294_p0, %p3293_p13 }
 0xf53   :  { %3100 = vtanh.f32 %v4602_v18  ;;  %p3296_p2 = pnand %p3295_p1, %p3289_p12 }
 0xf5d   :  { %v3101_v12 = vpop.eup %3100 }
 0xf5e   :  { %v2305_v1 = vmul.f32 %v3101_v12, %v2300_v35 }
 0xf60   :  { %v2306_v14 = vpack.c.bf16 %v2305_v1, %v2305_v1 }
 0xf62   :  { %2340 = vmatmul.mubr.bf16.vlgmr.msra.gmra.mrb[92].mxu0 %v2306_v14  ;;  %2381 = vmatmul.mubr.bf16.vlgmr.msra.gmra.mrb[92].mxu1 %v2306_v14 }
 0xf63   :  { %2801 = vmatpush3.bf16.msra.mxu0 %v2936_v27  ;;  %2821 = vmatpush3.bf16.msra.mxu1 %v2937_v15 }
 0xf64   :  { %2802 = vmatprep.subr.bf16.mxu0 %v3375_v16  ;;  %2822 = vmatprep.subr.bf16.mxu1 %v3375_v16 }
 0xf65   :  { %2816 = vmatprep.mubr.msk.bf16.mxu0 %vm3376_vm1, %v3375_v16  ;;  %2836 = vmatprep.mubr.msk.bf16.mxu1 %vm3376_vm1, %v3375_v16 }
 0xf67   :  { %2803 = vmatpush3.bf16.msra.mxu0 %v2938_v36  ;;  %2823 = vmatpush3.bf16.msra.mxu1 %v2939_v30 }
 0xf68   :  { %2804 = vmatprep.subr.bf16.mxu0 %v3375_v16  ;;  %2824 = vmatprep.subr.bf16.mxu1 %v3375_v16 }
 0xf6b   :  { %2805 = vmatpush3.bf16.msra.mxu0 %v2940_v31  ;;  %2825 = vmatpush3.bf16.msra.mxu1 %v2941_v32 }
 0xf6c   :  { %2806 = vmatprep.subr.bf16.mxu0 %v3375_v16  ;;  %2826 = vmatprep.subr.bf16.mxu1 %v3375_v16 }
 0xf6f   :  { %2807 = vmatpush3.bf16.msra.mxu0 %v2942_v0  ;;  %2827 = vmatpush3.bf16.msra.mxu1 %v2943_v63 }
 0xf70   :  { %2808 = vmatprep.subr.bf16.mxu0 %v3375_v16  ;;  %2828 = vmatprep.subr.bf16.mxu1 %v3375_v16 }
 0xf73   :  { %2809 = vmatpush3.bf16.msra.mxu0 %v2944_v3  ;;  %2829 = vmatpush3.bf16.msra.mxu1 %v2945_v6 }
 0xf74   :  { %2810 = vmatprep.subr.bf16.mxu0 %v3375_v16  ;;  %2830 = vmatprep.subr.bf16.mxu1 %v3375_v16 }
 0xf77   :  { %2811 = vmatpush3.bf16.msra.mxu0 %v2946_v9  ;;  %2831 = vmatpush3.bf16.msra.mxu1 %v2947_v53 }
 0xf78   :  { %2812 = vmatprep.subr.bf16.mxu0 %v3375_v16  ;;  %2832 = vmatprep.subr.bf16.mxu1 %v3375_v16 }
 0xf7b   :  { %2813 = vmatpush3.bf16.msra.mxu0 %v2948_v2  ;;  %2833 = vmatpush3.bf16.msra.mxu1 %v2949_v50 }
 0xf7c   :  { %2814 = vmatprep.subr.bf16.mxu0 %v3375_v16  ;;  %2834 = vmatprep.subr.bf16.mxu1 %v3375_v16 }
 0xf7f   :  { %2815 = vmatpush3.bf16.msra.mxu0 %v2950_v26  ;;  %2835 = vmatpush3.bf16.msra.mxu1 %v2951_v7 }
0x1035   :  { %v2341_v8 = vpop.f32.mrb[92].mxu0  ;;  %v2382_v33 = vpop.f32.mrb[92].mxu1 }
0x1036   :  { %v2389_v38 = vadd.f32 %v2341_v8, %v4775_v34  ;;  %v2391_v54 = vadd.f32 %v2382_v33, %v4776_v11  ;;  %v2343_v61 = vpop.f32.mrb[93].mxu0  ;;  %v2384_v13 = vpop.f32.mrb[93].mxu1 }
0x1037   :  { %v2390_v10 = vadd.f32 %v2343_v61, %v4777_v56  ;;  %v2392_v58 = vadd.f32 %v2384_v13, %v4778_v62  ;;  %v2345_v55 = vpop.f32.mrb[94].mxu0  ;;  %v2386_v21 = vpop.f32.mrb[94].mxu1 }
0x1038   :  { %v2393_v22 = vmul.f32 0.5, %v2389_v38  ;;  %v2346_v4 = vpop.f32.mrb[95].mxu0  ;;  %v2387_v23 = vpop.f32.mrb[95].mxu1 }
0x1039   :  { %v2397_v25 = vmul.f32 0.5, %v2390_v10  ;;  %v2402_v19 = vmul.f32 0.5, %v2392_v58 }
0x103a   :  { %3102 = vtanh.f32 %v2393_v22 }
0x103b   :  { %3104 = vtanh.f32 %v2397_v25 }
0x103c   :  { %3106 = vtanh.f32 %v2391_v54 }
0x103d   :  { %3108 = vtanh.f32 %v2402_v19 }
0x1044   :  { %v3103_v59 = vpop.eup %3102 }
0x1045   :  { %v3105_v24 = vpop.eup %3104  ;;  %v2395_v28 = vmul.f32 0.5, %v3103_v59 }
0x1046   :  { %v2399_v29 = vmul.f32 0.5, %v3105_v24  ;;  %v3107_v40 = vpop.eup %3106 }
0x1047   :  { %v2396_v39 = vadd.f32 0.5, %v2395_v28  ;;  %v3109_v47 = vpop.eup %3108 }
0x1048   :  { %v2400_v43 = vadd.f32 0.5, %v2399_v29  ;;  %v2404_v37 = vmul.f32 0.5, %v3109_v47 }
0x1049   :  { %v2407_v5 = vmul.f32 %v3107_v40, %v2396_v39 }
0x104a   :  { %v2406_v44 = vmul.f32 %v2400_v43, %v4602_v18  ;;  %v2405_v48 = vadd.f32 0.5, %v2404_v37 }
0x104c   :  { %v2408_v45 = vadd.f32 %v2407_v5, %v2406_v44 }
0x104e   :  { %3110 = vtanh.f32 %v2408_v45 }
0x1058   :  { %v3111_v49 = vpop.eup %3110 }
0x1059   :  { %v2410_v51 = vmul.f32 %v3111_v49, %v2405_v48 }
0x105b   :  { %v2416_v41 = vpack.c.bf16 %v2410_v51, %v2410_v51 }
0x105d   :  { %2817 = vmatmul.mubr.bf16.vlgmr.msra.gmra.mrb[96].mxu0 %v2416_v41  ;;  %2837 = vmatmul.mubr.bf16.vlgmr.msra.gmra.mrb[96].mxu1 %v2416_v41 }
0x1130   :  { %v2522_v20 = vpop.f32.mrb[96].mxu0  ;;  %v2633_v46 = vpop.f32.mrb[96].mxu1 }
0x1131   :  { %v2523_v17 = vadd.f32 %v2764_v52, %v2522_v20  ;;  %v2634_v18 = vadd.f32 %v2773_v60, %v2633_v46  ;;  %v2818_v57 = vpop.f32.mrb[97].mxu0  ;;  %v2838_v42 = vpop.f32.mrb[97].mxu1 }
0x1132   :  { %v2525_v35 = vpop.f32.mrb[98].mxu0  ;;  %v2636_v12 = vpop.f32.mrb[98].mxu1 }
0x1133   :  { %2639 = vst [vmem:[#allocation13] sm:$0xff] %v2523_v17  ;;  %v2642_v1 = vmul.f32 0.5, %v2634_v18  ;;  %2640 = vst [vmem:[#allocation14] sm:$0xff] %v2634_v18  ;;  %v2819_v14 = vpop.f32.mrb[99].mxu0  ;;  %v2839_v27 = vpop.f32.mrb[99].mxu1 }
0x1134   :  { %3299 = shalt.err (!%p3296_p2)
}
0x1135   :  { %s3300_s16 = scalar_lea.hbm %s4672_s10, 128 }
0x1136   :  { %p3301_p3 = scmp.ne.s32.totalorder %s4672_s10, %s3300_s16  ;;  %p3304_p4 = scmp.lt.u32.totalorder %s3300_s16, %s4672_s10 }
0x1138   :  { %p3306_p5 = pnand %p3304_p4, %p3301_p3 }
0x113a   :  { %3309 = shalt.err (!%p3306_p5)
}
0x113b   :  { %2667 = dma.vmem_to_hbm [thread:$0]  %s2665_s29, 128, %s4672_s10, [#allocation15]   ;;  %v2643_v15 = vmul.f32 1.442695, %v2642_v1 }
0x113c   :  { %s3310_s13 = scalar_lea.vmem %s4616_s12, 128  ;;  %p3315_p7 = scmp.lt.s32.totalorder %s4616_s12, %s4616_s12 }
0x113d   :  { %p3311_p6 = scmp.ne.s32.totalorder %s4616_s12, %s3310_s13  ;;  %p3316_p8 = scmp.lt.s32.totalorder %s3310_s13, %s3310_s13 }
0x113f   :  { %p3317_p9 = por %p3316_p8, %p3315_p7 }
0x1141   :  { %p3318_p10 = pnand %p3317_p9, %p3311_p6 }
0x1143   :  { %3321 = shalt.err (!%p3318_p10)
}
0x1144   :  { %s3322_s25 = scalar_lea.hbm %s4671_s9, 128 }
0x1145   :  { %p3323_p11 = scmp.ne.s32.totalorder %s4671_s9, %s3322_s25  ;;  %p3326_p12 = scmp.lt.u32.totalorder %s3322_s25, %s4671_s9 }
0x1147   :  { %p3328_p13 = pnand %p3326_p12, %p3323_p11 }
0x1149   :  { %3331 = shalt.err (!%p3328_p13)
}
0x114a   :  { %2657 = dma.vmem_to_hbm [thread:$0]  %s4616_s12, 128, %s4671_s9, [#allocation6]   ;;  %3112 = vpow2.f32 %v2643_v15  ;;  %v2641_v16 = vld [vmem:[%s4670_s8] sm:$0xff] }
0x114b   :  { %s3379_s24 = smov [#allocation16]  }
0x114c   :  { %s2674_s22 = sshll.u32 %s3379_s24, 4  ;;  %s2675_s22 = int_to_ptr.vmem [resolvable:$true] %s2674_s22 }
0x114d   :  { %s3332_s1 = scalar_lea.vmem %s2675_s22, 128  ;;  %p3337_p1 = scmp.lt.s32.totalorder %s2675_s22, %s2675_s22 }
0x114e   :  { %p3333_p0 = scmp.ne.s32.totalorder %s2675_s22, %s3332_s1  ;;  %p3338_p2 = scmp.lt.s32.totalorder %s3332_s1, %s3332_s1 }
0x1150   :  { %p3339_p3 = por %p3338_p2, %p3337_p1 }
0x1152   :  { %p3340_p4 = pnand %p3339_p3, %p3333_p0 }
0x1154   :  { %v3113_v36 = vpop.eup %3112 }
0x1155   :  { %v2645_v30 = vmul.f32 %v3113_v36, %v2641_v16 }
0x1157   :  { %v2646_v31 = vadd.f32 %v2645_v30, %v2523_v17 }
0x1159   :  { %2647 = vst [vmem:[#allocation16] sm:$0xff] %v2646_v31 }
0x115a   :  { %3343 = shalt.err (!%p3340_p4)
}
0x115b   :  { %s3344_s30 = scalar_lea.hbm %s4673_s11, 128 }
0x115c   :  { %p3345_p5 = scmp.ne.s32.totalorder %s4673_s11, %s3344_s30  ;;  %p3348_p6 = scmp.lt.u32.totalorder %s3344_s30, %s4673_s11 }
0x115e   :  { %p3350_p7 = pnand %p3348_p6, %p3345_p5 }
0x1160   :  { %3353 = shalt.err (!%p3350_p7)
}
0x1161   :  { %2677 = dma.vmem_to_hbm [thread:$0]  %s2675_s22, 128, %s4673_s11, [#allocation15]  }
0x1162   :  { %3360 = dma.done.wait [#allocation6], 128  }
0x1163   :  { %3361 = vsyncadd [#allocation6], 4294967168 }
0x1164   :  { %3362 = dma.done.wait [#allocation15], 256  }
0x1165   :  { %3363 = vsyncadd [#allocation15], 4294967040 }
0x1166   :  { %2687 = vsyncpa [#allocation5], 1 }
0x1167   :  { %2688 = vsyncpa [#allocation8], 1 }
0x1168   :  { %2689 = vsyncpa [#allocation11], 1 }
0x1169   :  { %2690 = vsyncpa [#allocation6], 1 }
0x116a   :  { %2691 = vsyncpa [#allocation15], 1 }

</bundles_post_ra>
